<compile_context>
chip_gen: v5e
topology: v5e:2x2
jax: 0.10.0
libtpu: 0.0.40
codegen_flags: <defaults>
</compile_context>

<pallas_src>
import functools

import jax
import jax.numpy as jnp
from jax.experimental import pallas as pl
from jax.experimental.pallas import tpu as pltpu

BN_EPS = 1e-3          # torchvision efficientnet_v2 BatchNorm eps
STEM_COUT = 32
PROJ_COUT = 1280
NUM_CLASSES = 2
CLS_PAD = 128          # lane-dense classifier output width (logits = out[:, :2])


# ----------------------------- fused Pallas kernel ------------------------------

def _fused_forward_kernel(p_ref, sw_ref, sb_ref, pw_ref, pb_ref, cw_ref, cb_ref,
                          o_ref, acc_ref, *, spatial):
    """Per spatial row-tile: stem matmul+SiLU -> 1x1 proj matmul+SiLU -> pooled-sum
    accumulation; on the last grid step: avg-pool finalize + Linear(1280, CLS_PAD)."""
    t = pl.program_id(0)
    batch = p_ref.shape[0]

    @pl.when(t == 0)
    def _init():
        acc_ref[...] = jnp.zeros_like(acc_ref)

    # Static unroll over the (small) batch: everything stays resident in VMEM/vregs.
    for b in range(batch):
        x = p_ref[b]                                             # (ts, K) bf16
        # stem conv as matmul; BN scale pre-folded into sw, bias in f32
        h = jnp.dot(x, sw_ref[...], preferred_element_type=jnp.float32)
        h = h + sb_ref[...]
        h = h * pl.reciprocal(1.0 + jnp.exp(-h), approx=True)    # SiLU (EUP recip)
        # 1x1 projection to 1280 channels (+ folded BN bias + SiLU)
        y = jnp.dot(h.astype(jnp.bfloat16), pw_ref[...],
                    preferred_element_type=jnp.float32)
        y = y + pb_ref[...]
        y = y * pl.reciprocal(1.0 + jnp.exp(-y), approx=True)    # SiLU
        # partial sum for global average pooling
        acc_ref[b:b + 1, :] += jnp.sum(y, axis=0, keepdims=True)

    @pl.when(t == pl.num_programs(0) - 1)
    def _finalize():
        pooled = acc_ref[...] * (1.0 / spatial)                  # AdaptiveAvgPool2d(1)
        # Dropout(0.2) is identity at inference; Linear(1280, 2) padded to 128 lanes.
        logits = jnp.dot(pooled, cw_ref[...],
                         preferred_element_type=jnp.float32) + cb_ref[...]
        o_ref[...] = logits


def fused_forward(patches, stem_w, stem_b, proj_w, proj_b, cls_w, cls_b, *, tile_s):
    """patches: (B, S, K) bf16 im2col rows of the stem conv; returns (B, CLS_PAD) f32."""
    B, S, K = patches.shape
    assert S % tile_s == 0
    T = S // tile_s
    kernel = functools.partial(_fused_forward_kernel, spatial=S)
    return pl.pallas_call(
        kernel,
        out_shape=jax.ShapeDtypeStruct((B, CLS_PAD), jnp.float32),
        grid_spec=pltpu.PrefetchScalarGridSpec(
            num_scalar_prefetch=0,
            grid=(T,),
            in_specs=[
                pl.BlockSpec((B, tile_s, K), lambda t: (0, t, 0)),       # patches tile
                pl.BlockSpec((K, STEM_COUT), lambda t: (0, 0)),          # stem weight
                pl.BlockSpec((1, STEM_COUT), lambda t: (0, 0)),          # stem BN bias
                pl.BlockSpec((STEM_COUT, PROJ_COUT), lambda t: (0, 0)),  # proj weight
                pl.BlockSpec((1, PROJ_COUT), lambda t: (0, 0)),          # proj BN bias
                pl.BlockSpec((PROJ_COUT, CLS_PAD), lambda t: (0, 0)),    # classifier W
                pl.BlockSpec((1, CLS_PAD), lambda t: (0, 0)),            # classifier b
            ],
            out_specs=pl.BlockSpec((B, CLS_PAD), lambda t: (0, 0)),
            scratch_shapes=[pltpu.VMEM((B, PROJ_COUT), jnp.float32)],    # pooled-sum acc
        ),
        compiler_params=pltpu.CompilerParams(
            dimension_semantics=("arbitrary",),          # pooled-sum reduction axis
            vmem_limit_bytes=32 * 1024 * 1024),
    )(patches, stem_w, stem_b, proj_w, proj_b, cls_w, cls_b)


# ------------------------------- glue (JAX) --------------------------------

def im2col_3x3_s2_p1(x_nhwc):
    """Extract 3x3/stride-2/pad-1 patches. Returns (B, Ho*Wo, 9*C), Ho, Wo."""
    B, H, W, C = x_nhwc.shape
    xp = jnp.pad(x_nhwc, ((0, 0), (1, 1), (1, 1), (0, 0)))
    Ho = (H + 2 - 3) // 2 + 1
    Wo = (W + 2 - 3) // 2 + 1
    cols = []
    for i in range(3):
        for j in range(3):
            cols.append(xp[:, i:i + 2 * Ho:2, j:j + 2 * Wo:2, :])
    patches = jnp.concatenate(cols, axis=-1)            # (B, Ho, Wo, 9*C)
    return patches.reshape(B, Ho * Wo, 9 * C), Ho, Wo


def _choose_spatial_tile(S, target=256):
    """Largest multiple-of-8 divisor of S that is <= target (rows per grid step)."""
    if S <= target:
        return S
    best = 8
    for cand in range(8, target + 1, 8):
        if S % cand == 0:
            best = cand
    return best


def init_params(key):
    k1, k2, k3, k4 = jax.random.split(key, 4)
    # fresh BN (eval): gamma=1, beta=0, mean=0, var=1 -> scale = 1/sqrt(1+eps), bias = 0.
    # With real stats: w' = w * gamma/sqrt(var+eps); bias = beta - mean*gamma/sqrt(var+eps).
    bn_scale = 1.0 / jnp.sqrt(1.0 + BN_EPS)
    stem_w = (jax.random.normal(k1, (3, 3, 4, STEM_COUT), jnp.float32) * 0.1
              ).reshape(9 * 4, STEM_COUT)                      # (kh,kw,cin) flattened
    proj_w = jax.random.normal(k2, (STEM_COUT, PROJ_COUT), jnp.float32) * 0.05
    cls_w = jax.random.normal(k3, (PROJ_COUT, NUM_CLASSES), jnp.float32) * 0.02
    cls_b = jax.random.normal(k4, (1, NUM_CLASSES), jnp.float32) * 0.01
    return {
        # BN scale folded into conv weights; weights stored bf16 for the MXU.
        "stem_w": (stem_w * bn_scale).astype(jnp.bfloat16),
        "stem_b": jnp.zeros((1, STEM_COUT), jnp.float32),
        "proj_w": (proj_w * bn_scale).astype(jnp.bfloat16),
        "proj_b": jnp.zeros((1, PROJ_COUT), jnp.float32),
        # classifier padded to a lane-dense 128-wide output; logits = out[:, :2]
        "cls_w": jnp.pad(cls_w, ((0, 0), (0, CLS_PAD - NUM_CLASSES))),
        "cls_b": jnp.pad(cls_b, ((0, 0), (0, CLS_PAD - NUM_CLASSES))),
    }


def model_forward(params, x_nchw, weight):
    """Mirrors ModelClass.forward(x, weight) for inference."""
    B, Cin, H, W = x_nchw.shape
    assert Cin == 3
    x = jnp.transpose(x_nchw, (0, 2, 3, 1))                          # NCHW -> NHWC
    # torch: weight_channel = cat([val.repeat(1,1,H,W) for val in weight]);
    #        x = cat((x, weight_channel), dim=1)   -> channel order [R,G,B,weight]
    wchan = jnp.broadcast_to(weight.reshape(B, 1, 1, 1).astype(x.dtype), (B, H, W, 1))
    x4 = jnp.concatenate([x, wchan], axis=-1)                        # (B, H, W, 4)

    patches, Ho, Wo = im2col_3x3_s2_p1(x4)                           # (B, Ho*Wo, 36)
    patches = patches.astype(jnp.bfloat16)                           # bf16 MXU operands
    S = Ho * Wo
    assert S % 8 == 0, "spatial rows must be sublane-aligned"
    tile_s = _choose_spatial_tile(S)

    out = fused_forward(patches, params["stem_w"], params["stem_b"],
                        params["proj_w"], params["proj_b"],
                        params["cls_w"], params["cls_b"], tile_s=tile_s)
    return out[:, :NUM_CLASSES]                                      # (B, 2) logits


# ---------------------------------- main ------------------------------------

if __name__ == "__main__":
    IMAGE_SIZE = 16
    B = 2

    key = jax.random.PRNGKey(0)
    kp, kx, kw = jax.random.split(key, 3)
    params = init_params(kp)

    x = jax.random.normal(kx, (B, 3, IMAGE_SIZE, IMAGE_SIZE), jnp.float32)
    weight = jax.random.uniform(kw, (B,), jnp.float32)   # one scalar per sample

    logits = model_forward(params, x, weight)
    jax.block_until_ready(logits)
    assert logits.shape == (B, NUM_CLASSES) and logits.dtype == jnp.float32
    print("KERNEL_OK")
</pallas_src>

<mosaic_0001>
module attributes {stable_mosaic.version = 11 : i64} {
  func.func @_fused_forward_kernel(%arg0: i32, %arg1: memref<2x64x36xbf16, #tpu.memory_space<vmem>>, %arg2: memref<36x32xbf16, #tpu.memory_space<vmem>>, %arg3: memref<1x32xf32, #tpu.memory_space<vmem>>, %arg4: memref<32x1280xbf16, #tpu.memory_space<vmem>>, %arg5: memref<1x1280xf32, #tpu.memory_space<vmem>>, %arg6: memref<1280x128xf32, #tpu.memory_space<vmem>>, %arg7: memref<1x128xf32, #tpu.memory_space<vmem>>, %arg8: memref<2x128xf32, #tpu.memory_space<vmem>>, %arg9: memref<2x1280xf32, #tpu.memory_space<vmem>>) attributes {dimension_semantics = [#tpu.dimension_semantics<arbitrary>], iteration_bounds = array<i64: 1>, scalar_prefetch = 0 : i64, scratch_operands = 1 : i64, tpu.core_type = #tpu.core_type<tc>, window_params = [{transform_indices = @transform_0, window_bounds = array<i64: 2, 64, 36>}, {pipeline_mode = #tpu.pipeline_mode<synchronous>, transform_indices = @transform_1, window_bounds = array<i64: 36, 32>}, {pipeline_mode = #tpu.pipeline_mode<synchronous>, transform_indices = @transform_2, window_bounds = array<i64: 1, 32>}, {pipeline_mode = #tpu.pipeline_mode<synchronous>, transform_indices = @transform_3, window_bounds = array<i64: 32, 1280>}, {pipeline_mode = #tpu.pipeline_mode<synchronous>, transform_indices = @transform_4, window_bounds = array<i64: 1, 1280>}, {pipeline_mode = #tpu.pipeline_mode<synchronous>, transform_indices = @transform_5, window_bounds = array<i64: 1280, 128>}, {pipeline_mode = #tpu.pipeline_mode<synchronous>, transform_indices = @transform_6, window_bounds = array<i64: 1, 128>}, {pipeline_mode = #tpu.pipeline_mode<synchronous>, transform_indices = @transform_7, window_bounds = array<i64: 2, 128>}]} {
    %c0_i32 = arith.constant 0 : i32
    %0 = arith.cmpi eq, %arg0, %c0_i32 : i32
    %1 = arith.extui %0 : i1 to i32
    %c0_i32_0 = arith.constant 0 : i32
    %2 = arith.cmpi ne, %1, %c0_i32_0 : i32
    scf.if %2 {
      %cst_44 = arith.constant 0.000000e+00 : f32
      %70 = vector.broadcast %cst_44 : f32 to vector<2x1280xf32>
      %c0_45 = arith.constant 0 : index
      %c0_46 = arith.constant 0 : index
      %71 = vector.load %arg9[%c0_45, %c0_46] : memref<2x1280xf32, #tpu.memory_space<vmem>>, vector<2x1280xf32>
      tpu.vector_store %arg9[%c0_45, %c0_46], %70 {strides = array<i32>} : memref<2x1280xf32, #tpu.memory_space<vmem>>, vector<2x1280xf32>,
    } else {
    }
    %c0 = arith.constant 0 : index
    %c0_1 = arith.constant 0 : index
    %c0_2 = arith.constant 0 : index
    %3 = vector.load %arg1[%c0, %c0_1, %c0_2] : memref<2x64x36xbf16, #tpu.memory_space<vmem>>, vector<1x64x36xbf16>
    %4 = vector.shape_cast %3 : vector<1x64x36xbf16> to vector<64x36xbf16>
    %c0_3 = arith.constant 0 : index
    %c0_4 = arith.constant 0 : index
    %5 = vector.load %arg2[%c0_3, %c0_4] : memref<36x32xbf16, #tpu.memory_space<vmem>>, vector<36x32xbf16>
    %cst = arith.constant dense<0.000000e+00> : vector<64x32xf32>
    %6 = tpu.matmul %4, %5, %cst {dimension_numbers = #tpu.dot_dimension_numbers<[1], [0], [0], [1], [0, 0, 1, 1], [], []>} : vector<64x36xbf16>, vector<36x32xbf16>, vector<64x32xf32> -> vector<64x32xf32>
    %c0_5 = arith.constant 0 : index
    %c0_6 = arith.constant 0 : index
    %7 = vector.load %arg3[%c0_5, %c0_6] : memref<1x32xf32, #tpu.memory_space<vmem>>, vector<1x32xf32>
    %8 = vector.broadcast %7 : vector<1x32xf32> to vector<64x32xf32>
    %9 = arith.addf %6, %8 : vector<64x32xf32>
    %cst_7 = arith.constant 0.000000e+00 : f32
    %10 = vector.broadcast %cst_7 : f32 to vector<64x32xf32>
    %11 = arith.subf %10, %9 : vector<64x32xf32>
    %12 = math.exp %11 : vector<64x32xf32>
    %cst_8 = arith.constant 1.000000e+00 : f32
    %13 = vector.broadcast %cst_8 : f32 to vector<64x32xf32>
    %14 = arith.addf %13, %12 : vector<64x32xf32>
    %15 = tpu.reciprocal %14 {approx = true} : vector<64x32xf32> -> vector<64x32xf32>
    %16 = arith.mulf %9, %15 : vector<64x32xf32>
    %17 = arith.truncf %16 : vector<64x32xf32> to vector<64x32xbf16>
    %c0_9 = arith.constant 0 : index
    %c0_10 = arith.constant 0 : index
    %18 = vector.load %arg4[%c0_9, %c0_10] : memref<32x1280xbf16, #tpu.memory_space<vmem>>, vector<32x1280xbf16>
    %cst_11 = arith.constant dense<0.000000e+00> : vector<64x1280xf32>
    %19 = tpu.matmul %17, %18, %cst_11 {dimension_numbers = #tpu.dot_dimension_numbers<[1], [0], [0], [1], [0, 0, 1, 1], [], []>} : vector<64x32xbf16>, vector<32x1280xbf16>, vector<64x1280xf32> -> vector<64x1280xf32>
    %c0_12 = arith.constant 0 : index
    %c0_13 = arith.constant 0 : index
    %20 = vector.load %arg5[%c0_12, %c0_13] : memref<1x1280xf32, #tpu.memory_space<vmem>>, vector<1x1280xf32>
    %21 = vector.broadcast %20 : vector<1x1280xf32> to vector<64x1280xf32>
    %22 = arith.addf %19, %21 : vector<64x1280xf32>
    %cst_14 = arith.constant 0.000000e+00 : f32
    %23 = vector.broadcast %cst_14 : f32 to vector<64x1280xf32>
    %24 = arith.subf %23, %22 : vector<64x1280xf32>
    %25 = math.exp %24 : vector<64x1280xf32>
    %cst_15 = arith.constant 1.000000e+00 : f32
    %26 = vector.broadcast %cst_15 : f32 to vector<64x1280xf32>
    %27 = arith.addf %26, %25 : vector<64x1280xf32>
    %28 = tpu.reciprocal %27 {approx = true} : vector<64x1280xf32> -> vector<64x1280xf32>
    %29 = arith.mulf %22, %28 : vector<64x1280xf32>
    %c0_16 = arith.constant 0 : index
    %c0_17 = arith.constant 0 : index
    %30 = vector.load %arg9[%c0_16, %c0_17] : memref<2x1280xf32, #tpu.memory_space<vmem>>, vector<1x1280xf32>
    %cst_18 = arith.constant dense<0.000000e+00> : vector<1280xf32>
    %31 = vector.multi_reduction <add>, %29, %cst_18 [0] : vector<64x1280xf32> to vector<1280xf32>
    %32 = vector.shape_cast %31 : vector<1280xf32> to vector<1x1280xf32>
    %33 = arith.addf %30, %32 : vector<1x1280xf32>
    %c0_19 = arith.constant 0 : index
    %c0_20 = arith.constant 0 : index
    %34 = vector.load %arg9[%c0_19, %c0_20] : memref<2x1280xf32, #tpu.memory_space<vmem>>, vector<1x1280xf32>
    tpu.vector_store %arg9[%c0_19, %c0_20], %33 {strides = array<i32>} : memref<2x1280xf32, #tpu.memory_space<vmem>>, vector<1x1280xf32>,
    %c1 = arith.constant 1 : index
    %c0_21 = arith.constant 0 : index
    %c0_22 = arith.constant 0 : index
    %35 = vector.load %arg1[%c1, %c0_21, %c0_22] : memref<2x64x36xbf16, #tpu.memory_space<vmem>>, vector<1x64x36xbf16>
    %36 = vector.shape_cast %35 : vector<1x64x36xbf16> to vector<64x36xbf16>
    %c0_23 = arith.constant 0 : index
    %c0_24 = arith.constant 0 : index
    %37 = vector.load %arg2[%c0_23, %c0_24] : memref<36x32xbf16, #tpu.memory_space<vmem>>, vector<36x32xbf16>
    %cst_25 = arith.constant dense<0.000000e+00> : vector<64x32xf32>
    %38 = tpu.matmul %36, %37, %cst_25 {dimension_numbers = #tpu.dot_dimension_numbers<[1], [0], [0], [1], [0, 0, 1, 1], [], []>} : vector<64x36xbf16>, vector<36x32xbf16>, vector<64x32xf32> -> vector<64x32xf32>
    %c0_26 = arith.constant 0 : index
    %c0_27 = arith.constant 0 : index
    %39 = vector.load %arg3[%c0_26, %c0_27] : memref<1x32xf32, #tpu.memory_space<vmem>>, vector<1x32xf32>
    %40 = vector.broadcast %39 : vector<1x32xf32> to vector<64x32xf32>
    %41 = arith.addf %38, %40 : vector<64x32xf32>
    %cst_28 = arith.constant 0.000000e+00 : f32
    %42 = vector.broadcast %cst_28 : f32 to vector<64x32xf32>
    %43 = arith.subf %42, %41 : vector<64x32xf32>
    %44 = math.exp %43 : vector<64x32xf32>
    %cst_29 = arith.constant 1.000000e+00 : f32
    %45 = vector.broadcast %cst_29 : f32 to vector<64x32xf32>
    %46 = arith.addf %45, %44 : vector<64x32xf32>
    %47 = tpu.reciprocal %46 {approx = true} : vector<64x32xf32> -> vector<64x32xf32>
    %48 = arith.mulf %41, %47 : vector<64x32xf32>
    %49 = arith.truncf %48 : vector<64x32xf32> to vector<64x32xbf16>
    %c0_30 = arith.constant 0 : index
    %c0_31 = arith.constant 0 : index
    %50 = vector.load %arg4[%c0_30, %c0_31] : memref<32x1280xbf16, #tpu.memory_space<vmem>>, vector<32x1280xbf16>
    %cst_32 = arith.constant dense<0.000000e+00> : vector<64x1280xf32>
    %51 = tpu.matmul %49, %50, %cst_32 {dimension_numbers = #tpu.dot_dimension_numbers<[1], [0], [0], [1], [0, 0, 1, 1], [], []>} : vector<64x32xbf16>, vector<32x1280xbf16>, vector<64x1280xf32> -> vector<64x1280xf32>
    %c0_33 = arith.constant 0 : index
    %c0_34 = arith.constant 0 : index
    %52 = vector.load %arg5[%c0_33, %c0_34] : memref<1x1280xf32, #tpu.memory_space<vmem>>, vector<1x1280xf32>
    %53 = vector.broadcast %52 : vector<1x1280xf32> to vector<64x1280xf32>
    %54 = arith.addf %51, %53 : vector<64x1280xf32>
    %cst_35 = arith.constant 0.000000e+00 : f32
    %55 = vector.broadcast %cst_35 : f32 to vector<64x1280xf32>
    %56 = arith.subf %55, %54 : vector<64x1280xf32>
    %57 = math.exp %56 : vector<64x1280xf32>
    %cst_36 = arith.constant 1.000000e+00 : f32
    %58 = vector.broadcast %cst_36 : f32 to vector<64x1280xf32>
    %59 = arith.addf %58, %57 : vector<64x1280xf32>
    %60 = tpu.reciprocal %59 {approx = true} : vector<64x1280xf32> -> vector<64x1280xf32>
    %61 = arith.mulf %54, %60 : vector<64x1280xf32>
    %c1_37 = arith.constant 1 : index
    %c0_38 = arith.constant 0 : index
    %62 = vector.load %arg9[%c1_37, %c0_38] : memref<2x1280xf32, #tpu.memory_space<vmem>>, vector<1x1280xf32>
    %cst_39 = arith.constant dense<0.000000e+00> : vector<1280xf32>
    %63 = vector.multi_reduction <add>, %61, %cst_39 [0] : vector<64x1280xf32> to vector<1280xf32>
    %64 = vector.shape_cast %63 : vector<1280xf32> to vector<1x1280xf32>
    %65 = arith.addf %62, %64 : vector<1x1280xf32>
    %c1_40 = arith.constant 1 : index
    %c0_41 = arith.constant 0 : index
    %66 = vector.load %arg9[%c1_40, %c0_41] : memref<2x1280xf32, #tpu.memory_space<vmem>>, vector<1x1280xf32>
    tpu.vector_store %arg9[%c1_40, %c0_41], %65 {strides = array<i32>} : memref<2x1280xf32, #tpu.memory_space<vmem>>, vector<1x1280xf32>,
    %c0_i32_42 = arith.constant 0 : i32
    %67 = arith.cmpi eq, %arg0, %c0_i32_42 : i32
    %68 = arith.extui %67 : i1 to i32
    %c0_i32_43 = arith.constant 0 : i32
    %69 = arith.cmpi ne, %68, %c0_i32_43 : i32
    scf.if %69 {
      %c0_44 = arith.constant 0 : index
      %c0_45 = arith.constant 0 : index
      %70 = vector.load %arg9[%c0_44, %c0_45] : memref<2x1280xf32, #tpu.memory_space<vmem>>, vector<2x1280xf32>
      %cst_46 = arith.constant 1.562500e-02 : f32
      %71 = vector.broadcast %cst_46 : f32 to vector<2x1280xf32>
      %72 = arith.mulf %70, %71 : vector<2x1280xf32>
      %c0_47 = arith.constant 0 : index
      %c0_48 = arith.constant 0 : index
      %73 = vector.load %arg6[%c0_47, %c0_48] : memref<1280x128xf32, #tpu.memory_space<vmem>>, vector<1280x128xf32>
      %cst_49 = arith.constant dense<0.000000e+00> : vector<2x128xf32>
      %74 = tpu.matmul %72, %73, %cst_49 {dimension_numbers = #tpu.dot_dimension_numbers<[1], [0], [0], [1], [0, 0, 1, 1], [], []>} : vector<2x1280xf32>, vector<1280x128xf32>, vector<2x128xf32> -> vector<2x128xf32>
      %c0_50 = arith.constant 0 : index
      %c0_51 = arith.constant 0 : index
      %75 = vector.load %arg7[%c0_50, %c0_51] : memref<1x128xf32, #tpu.memory_space<vmem>>, vector<1x128xf32>
      %76 = vector.broadcast %75 : vector<1x128xf32> to vector<2x128xf32>
      %77 = arith.addf %74, %76 : vector<2x128xf32>
      %c0_52 = arith.constant 0 : index
      %c0_53 = arith.constant 0 : index
      %78 = vector.load %arg8[%c0_52, %c0_53] : memref<2x128xf32, #tpu.memory_space<vmem>>, vector<2x128xf32>
      tpu.vector_store %arg8[%c0_52, %c0_53], %77 {strides = array<i32>} : memref<2x128xf32, #tpu.memory_space<vmem>>, vector<2x128xf32>,
    } else {
    }
    return
  }
  func.func @transform_0(%arg0: i32) -> (i32, i32, i32) {
    %c0_i32 = arith.constant 0 : i32
    %c0_i32_0 = arith.constant 0 : i32
    %c0_i32_1 = arith.constant 0 : i32
    return %c0_i32, %arg0, %c0_i32_0 : i32, i32, i32
  }
  func.func @transform_1(%arg0: i32) -> (i32, i32) {
    %c0_i32 = arith.constant 0 : i32
    %c0_i32_0 = arith.constant 0 : i32
    %c0_i32_1 = arith.constant 0 : i32
    return %c0_i32, %c0_i32_0 : i32, i32
  }
  func.func @transform_2(%arg0: i32) -> (i32, i32) {
    %c0_i32 = arith.constant 0 : i32
    %c0_i32_0 = arith.constant 0 : i32
    %c0_i32_1 = arith.constant 0 : i32
    return %c0_i32, %c0_i32_0 : i32, i32
  }
  func.func @transform_3(%arg0: i32) -> (i32, i32) {
    %c0_i32 = arith.constant 0 : i32
    %c0_i32_0 = arith.constant 0 : i32
    %c0_i32_1 = arith.constant 0 : i32
    return %c0_i32, %c0_i32_0 : i32, i32
  }
  func.func @transform_4(%arg0: i32) -> (i32, i32) {
    %c0_i32 = arith.constant 0 : i32
    %c0_i32_0 = arith.constant 0 : i32
    %c0_i32_1 = arith.constant 0 : i32
    return %c0_i32, %c0_i32_0 : i32, i32
  }
  func.func @transform_5(%arg0: i32) -> (i32, i32) {
    %c0_i32 = arith.constant 0 : i32
    %c0_i32_0 = arith.constant 0 : i32
    %c0_i32_1 = arith.constant 0 : i32
    return %c0_i32, %c0_i32_0 : i32, i32
  }
  func.func @transform_6(%arg0: i32) -> (i32, i32) {
    %c0_i32 = arith.constant 0 : i32
    %c0_i32_0 = arith.constant 0 : i32
    %c0_i32_1 = arith.constant 0 : i32
    return %c0_i32, %c0_i32_0 : i32, i32
  }
  func.func @transform_7(%arg0: i32) -> (i32, i32) {
    %c0_i32 = arith.constant 0 : i32
    %c0_i32_0 = arith.constant 0 : i32
    %c0_i32_1 = arith.constant 0 : i32
    return %c0_i32, %c0_i32_0 : i32, i32
  }
}

</mosaic_0001>

<bundles_post_ra>
// kernel: tpu_custom_call.1
= control target key start
LH: loop header
LB: loop body
LE: loop exit
PB: predicated region body
PF: predicated region fallthrough
CT: control target
= control target key end

     0   :  { %12 = vsyncpa [#allocation4], 0  ;;  %s5646_s0 = inlined_call_operand.vmem [shape: bf16[2,64,36], index: 0, kind: input, shape index: {}]   ;;  %s5647_s1 = inlined_call_operand.vmem [shape: bf16[36,32], index: 1, kind: input, shape index: {}]   ;;  %s5648_s2 = inlined_call_operand.vmem [shape: f32[1,32], index: 2, kind: input, shape index: {}]   ;;  %s5649_s3 = inlined_call_operand.hbm [shape: bf16[32,1280], index: 3, kind: input, shape index: {}]   ;;  %s5650_s4 = inlined_call_operand.vmem [shape: f32[1,1280], index: 4, kind: input, shape index: {}]   ;;  %s5651_s5 = inlined_call_operand.hbm [shape: f32[1280,128], index: 5, kind: input, shape index: {}]   ;;  %s5652_s6 = inlined_call_operand.vmem [shape: f32[1,128], index: 6, kind: input, shape index: {}]   ;;  %s5653_s7 = inlined_call_operand.hbm [shape: f32[2,128], index: 7, kind: output, shape index: {}]  }
   0x1   :  { %13 = vsyncpa [#allocation7], 0 }
   0x2   :  { %14 = vsyncpa [#allocation5], 0  ;;  %s25_s26 = sshll.u32 %s5649_s3, 4  ;;  %s4129_s27 = smov [#allocation3]   ;;  %s26_s26 = int_to_ptr.hbm [resolvable:$true] %s25_s26 }
   0x3   :  { %s27_s28 = sshll.u32 %s4129_s27, 4  ;;  %s40_s8 = sshll.u32 %s5651_s5, 4  ;;  %s28_s28 = int_to_ptr.vmem [resolvable:$true] %s27_s28  ;;  %s41_s8 = int_to_ptr.hbm [resolvable:$true] %s40_s8 }
   0x4   :  { %s4130_s9 = smov 640   ;;  %s4131_s10 = smov 40  }
   0x5   :  { %33 = dma.hbm_to_vmem [thread:$0]  %s26_s26, 2560, %s28_s28, [#allocation4], %s4130_s9, %s4130_s9, %s4131_s10  }
   0x6   :  { %s4132_s11 = smov [#allocation6]   ;;  %s4133_s13 = smov 128  }
   0x7   :  { %s42_s12 = sshll.u32 %s4132_s11, 4  ;;  %s4134_s14 = smov 8   ;;  %s43_s12 = int_to_ptr.vmem [resolvable:$true] %s42_s12 }
   0x8   :  { %48 = dma.hbm_to_vmem [thread:$0]  %s41_s8, 20480, %s43_s12, [#allocation7], %s4133_s13, %s4133_s13, %s4134_s14  }
   0x9   :  { %4123 = dma.done.wait [#allocation4], 2560  }
   0xa   :  { %4124 = vsyncadd [#allocation4], 4294964736 }
   0xb   :  { %4125 = dma.done.wait [#allocation7], 20480  }
   0xc   :  { %4126 = vsyncadd [#allocation7], 4294946816  ;;  %v79_v0 = vld [vmem:[%s5647_s1 + $0x10] sm:$0x3]  ;;  %vm132_vm0 = vcmask 1041408   ;;  %v3288_v4 = vld [vmem:[%s5647_s1 + $0x8] sm:$0xff] }
   0xd   :  { %v113_v1 = vunpack.c.l.b16 %v79_v0  ;;  %v3287_v5 = vld [vmem:[%s5647_s1] sm:$0xff]  ;;  %vm119_vm1 = vcmask 293888   ;;  %v3284_v7 = vld [vmem:[%s5646_s0 + $0x8] sm:$0xff]  ;;  %v3285_v11 = vld [vmem:[%s5646_s0 + $0x10] sm:$0xff]  ;;  %vm361_vm2 = vcmask 261120   ;;  %vm1295_vm3 = vcmask 1040384  }
   0xe   :  { %v3283_v6 = vld [vmem:[%s5646_s0] sm:$0xff]  ;;  %v3307_v9 = vld [vmem:[#allocation3 + $0x8c] sm:$0xf0]  ;;  %v3286_v12 = vld [vmem:[%s5646_s0 + $0x18] sm:$0xff]  ;;  %vm1297_vm4 = vcmask 1042434   ;;  %vm1300_vm5 = vcmask 1044484  }
   0xf   :  { %v116_v2 = vpack.c.b16 %v113_v1, %v113_v1  ;;  %v3073_v8 = vld [vmem:[#allocation3 + $0x68] sm:$0xf]  ;;  %v3033_v13 = vld [vmem:[#allocation3 + $0x18] sm:$0xf]  ;;  %v3297_v14 = vld [vmem:[#allocation3 + $0x3c] sm:$0xf0] }
  0x10   :  { %v3074_v10 = vor.u32 %v3307_v9, %v3073_v8  ;;  %v3034_v15 = vor.u32 %v3297_v14, %v3033_v13  ;;  %v3049_v16 = vld [vmem:[#allocation3 + $0x50] sm:$0xf]  ;;  %v3304_v17 = vld [vmem:[#allocation3 + $0x74] sm:$0xf0]  ;;  %v3299_v18 = vld [vmem:[#allocation3 + $0x54] sm:$0xf] }
  0x11   :  { %v134_v3 = vsel %vm132_vm0, %v116_v2, 0  ;;  %v3050_v19 = vor.u32 %v3304_v17, %v3049_v16  ;;  %v3051_v20 = vld [vmem:[#allocation3 + $0x78] sm:$0xf0]  ;;  %v3057_v21 = vld [vmem:[#allocation3 + $0x58] sm:$0xf]  ;;  %vm1302_vm6 = vcmask 1046534  }
  0x12   :  { %141 = vmatpush.bf16.msra.mxu0 %v134_v3  ;;  %v3305_v22 = vld [vmem:[#allocation3 + $0x7c] sm:$0xf0]  ;;  %v3054_v23 = vor.u32 %v3299_v18, %v3051_v20  ;;  %v4212_v25 = vld [vmem:[%s5648_s2] ss:$0 sm:$0xff]  ;;  %v3294_v27 = vld [vmem:[#allocation3 + $0x24] sm:$0xf0] }
  0x13   :  { %v3058_v24 = vor.u32 %v3305_v22, %v3057_v21  ;;  %380 = vmatpush.bf16.msra.mxu1 %v3050_v19  ;;  %v3009_v26 = vld [vmem:[#allocation3] sm:$0xf]  ;;  %v3289_v28 = vld [vmem:[#allocation3 + $0x4] sm:$0xf]  ;;  %v3011_v30 = vld [vmem:[#allocation3 + $0x28] sm:$0xf0] }
  0x14   :  { %409 = vmatpush.bf16.msra.mxu2 %v3054_v23  ;;  %v3010_v29 = vor.u32 %v3294_v27, %v3009_v26  ;;  %v3017_v31 = vld [vmem:[#allocation3 + $0x8] sm:$0xf]  ;;  %v3295_v32 = vld [vmem:[#allocation3 + $0x2c] sm:$0xf0]  ;;  %v3014_v33 = vor.u32 %v3289_v28, %v3011_v30  ;;  %v1332_v51 = vld [vmem:[%s5647_s1 + $0x10] sm:$0x3] }
  0x15   :  { %438 = vmatpush.bf16.msra.mxu3 %v3058_v24  ;;  %v3018_v34 = vor.u32 %v3295_v32, %v3017_v31  ;;  %v1366_v53 = vunpack.c.l.b16 %v1332_v51  ;;  %v3314_v20 = vld [vmem:[%s5647_s1 + $0x8] sm:$0xff]  ;;  %v3065_v21 = vld [vmem:[#allocation3 + $0x60] sm:$0xf]  ;;  %v3306_v22 = vld [vmem:[#allocation3 + $0x84] sm:$0xf0]  ;;  %vm1304_vm7 = vcmask 1045508  }
  0x16   :  { %142 = vmatpush.bf16.msra.mxu0 %v3288_v4  ;;  %v3066_v24 = vor.u32 %v3306_v22, %v3065_v21  ;;  %v3300_v26 = vld [vmem:[#allocation3 + $0x5c] sm:$0xf]  ;;  %v3059_v27 = vld [vmem:[#allocation3 + $0x80] sm:$0xf0]  ;;  %v3067_v32 = vld [vmem:[#allocation3 + $0x88] sm:$0xf0] }
  0x17   :  { %381 = vmatpush.bf16.msra.mxu1 %v3010_v29  ;;  %v1369_v55 = vpack.c.b16 %v1366_v53, %v1366_v53  ;;  %v3062_v29 = vor.u32 %v3300_v26, %v3059_v27  ;;  %v3313_v30 = vld [vmem:[%s5647_s1] sm:$0xff]  ;;  %v3312_v22 = vld [vmem:[%s5646_s0 + $0x38] sm:$0xff]  ;;  %vm1306_vm8 = vcmask 1043456   ;;  %s4136_s28 = smov [#allocation8]   ;;  %s2968_s8 = sshll.u32 %s5653_s7, 4  ;;  %s2969_s8 = int_to_ptr.hbm [resolvable:$true] %s2968_s8 }
  0x18   :  { %410 = vmatpush.bf16.msra.mxu2 %v3014_v33  ;;  %v3301_v31 = vld [vmem:[#allocation3 + $0x64] sm:$0xf]  ;;  %v3290_v33 = vld [vmem:[#allocation3 + $0xc] sm:$0xf]  ;;  %s2966_s29 = sshll.u32 %s4136_s28, 4  ;;  %s2967_s29 = int_to_ptr.vmem [resolvable:$true] %s2966_s29 }
  0x19   :  { %439 = vmatpush.bf16.msra.mxu3 %v3018_v34  ;;  %v1385_v58 = vsel %vm132_vm0, %v1369_v55, 0 }
  0x1a   :  { %143 = vmatpush.bf16.msra.mxu0 %v3287_v5 }
  0x1b   :  { %467 = vmatpush.bf16.msrb.mxu1 %v3062_v29 }
  0x1c   :  { %496 = vmatpush.bf16.msrb.mxu2 %v3066_v24 }
  0x1d   :  { %3003 = vmatmul.msk.bf16.vlgmr.msra.gmra.mxu0 %vm119_vm1, %v3283_v6 }
  0x1e   :  { %554 = vmatpush.bf16.msrb.mxu0 %v3074_v10 }
  0x22   :  { %555 = vmatpush.bf16.msrb.mxu0 %v3034_v15 }
  0x26   :  { %1392 = vmatpush.bf16.msra.mxu0 %v1385_v58 }
  0x2a   :  { %1393 = vmatpush.bf16.msra.mxu0 %v3314_v20 }
  0x2d   :  { %3004 = vmatmul.msk.bf16.gmra.mxu0 %vm119_vm1, %v3284_v7 }
  0x2e   :  { %1394 = vmatpush.bf16.msra.mxu0 %v3313_v30 }
  0x3d   :  { %3005 = vmatmul.msk.bf16.gmra.mxu0 %vm119_vm1, %v3285_v11 }
  0x4d   :  { %3006 = vmatmul.msk.bf16.gmra.mxu0 %vm119_vm1, %v3286_v12 }
  0x9a   :  { %v145_v35 = vpop.f32.mrf.mxu0 }
  0x9b   :  { %v146_v36 = vadd.f32 %v4212_v25, %v145_v35 }
  0x9d   :  { %v165_v37 = vsub.f32 0.0, %v146_v36 }
  0x9f   :  { %v173_v38 = vmul.f32 1.442695, %v165_v37  ;;  %v3019_v37 = vld [vmem:[#allocation3 + $0x30] sm:$0xf0] }
  0xa1   :  { %3346 = vpow2.f32 %v173_v38  ;;  %v3025_v38 = vld [vmem:[#allocation3 + $0x10] sm:$0xf] }
  0xa2   :  { %v147_v39 = vpop.f32.mrf.mxu0 }
  0xa3   :  { %v148_v40 = vadd.f32 %v4212_v25, %v147_v39 }
  0xa5   :  { %v166_v41 = vsub.f32 0.0, %v148_v40 }
  0xa7   :  { %v175_v42 = vmul.f32 1.442695, %v166_v41  ;;  %v3347_v43 = vpop.eup %3346  ;;  %v3296_v41 = vld [vmem:[#allocation3 + $0x34] sm:$0xf0] }
  0xa8   :  { %v189_v46 = vadd.f32 1.0, %v3347_v43  ;;  %v3026_v43 = vor.u32 %v3296_v41, %v3025_v38 }
  0xa9   :  { %3348 = vpow2.f32 %v175_v42  ;;  %v3291_v42 = vld [vmem:[#allocation3 + $0x14] sm:$0xf] }
  0xaa   :  { %v150_v44 = vpop.f32.mrf.mxu0  ;;  %3350 = vrcp.f32 %v189_v46  ;;  %497 = vmatpush.bf16.msrb.mxu2 %v3026_v43 }
  0xab   :  { %v151_v45 = vadd.f32 %v4212_v25, %v150_v44  ;;  %v3027_v44 = vld [vmem:[#allocation3 + $0x38] sm:$0xf0] }
  0xac   :  { %v3030_v46 = vor.u32 %v3291_v42, %v3027_v44 }
  0xad   :  { %v167_v47 = vsub.f32 0.0, %v151_v45 }
  0xaf   :  { %v3349_v48 = vpop.eup %3348  ;;  %v177_v49 = vmul.f32 1.442695, %v167_v47 }
  0xb0   :  { %v190_v50 = vadd.f32 1.0, %v3349_v48  ;;  %v3351_v57 = vpop.eup %3350 }
  0xb1   :  { %v205_v62 = vmul.f32 %v3351_v57, %v146_v36  ;;  %v3070_v36 = vor.u32 %v3301_v31, %v3067_v32 }
  0xb2   :  { %3352 = vrcp.f32 %v190_v50  ;;  %v152_v52 = vpop.f32.mrf.mxu0 }
  0xb3   :  { %3354 = vpow2.f32 %v177_v49  ;;  %v153_v54 = vadd.f32 %v4212_v25, %v152_v52  ;;  %525 = vmatpush.bf16.msrb.mxu3 %v3070_v36 }
  0xb5   :  { %v168_v56 = vsub.f32 0.0, %v153_v54 }
  0xb7   :  { %v179_v59 = vmul.f32 1.442695, %v168_v56  ;;  %526 = vmatpush.bf16.msrb.mxu3 %v3030_v46 }
  0xb8   :  { %v3353_v60 = vpop.eup %3352 }
  0xb9   :  { %v3355_v61 = vpop.eup %3354  ;;  %v206_v63 = vmul.f32 %v3353_v60, %v148_v40  ;;  %3356 = vpow2.f32 %v179_v59  ;;  %v3022_v40 = vor.u32 %v3290_v33, %v3019_v37 }
  0xba   :  { %v155_v0 = vpop.f32.mrf.mxu0  ;;  %v191_v3 = vadd.f32 1.0, %v3355_v61 }
  0xbb   :  { %v4222_v1 = vpack.c.bf16 %v206_v63, %v205_v62  ;;  %v4225_v2 = vadd.f32 %v4212_v25, %v155_v0  ;;  %468 = vmatpush.bf16.msrb.mxu1 %v3022_v40  ;;  %v3309_v63 = vld [vmem:[%s5646_s0 + $0x20] sm:$0xff]  ;;  %v3081_v0 = vld [vmem:[#allocation3 + $0x70] sm:$0xf] }
  0xbc   :  { %3358 = vrcp.f32 %v191_v3  ;;  %v3302_v3 = vld [vmem:[#allocation3 + $0x6c] sm:$0xf] }
  0xbd   :  { %v169_v4 = vsub.f32 0.0, %v4225_v2  ;;  %3087 = vmatmul.msk.bf16.vlgmr.msra.gmra.mxu1 %vm361_vm2, %v4222_v1  ;;  %3091 = vmatmul.msk.bf16.vlgmr.msra.gmra.mxu2 %vm361_vm2, %v4222_v1 }
  0xbe   :  { %3095 = vmatmul.msk.bf16.vlgmr.msra.gmra.mxu3 %vm361_vm2, %v4222_v1  ;;  %3111 = vmatmul.msk.bf16.vlgmr.msrb.gmra.mxu0 %vm361_vm2, %v4222_v1 }
  0xbf   :  { %v3357_v5 = vpop.eup %3356  ;;  %v181_v6 = vmul.f32 1.442695, %v169_v4 }
  0xc0   :  { %v192_v7 = vadd.f32 1.0, %v3357_v5  ;;  %v3075_v5 = vld [vmem:[#allocation3 + $0x90] sm:$0xf0] }
  0xc2   :  { %3360 = vrcp.f32 %v192_v7  ;;  %v157_v8 = vpop.f32.mrf.mxu0  ;;  %v3359_v11 = vpop.eup %3358  ;;  %v3310_v7 = vld [vmem:[%s5646_s0 + $0x28] sm:$0xff] }
  0xc3   :  { %3362 = vpow2.f32 %v181_v6  ;;  %v158_v9 = vadd.f32 %v4212_v25, %v157_v8  ;;  %v207_v15 = vmul.f32 %v3359_v11, %v151_v45  ;;  %v3078_v6 = vor.u32 %v3302_v3, %v3075_v5  ;;  %v3303_v8 = vld [vmem:[#allocation3 + $0x74] sm:$0xf]  ;;  %v3292_v11 = vld [vmem:[#allocation3 + $0x1c] sm:$0xf] }
  0xc5   :  { %v170_v10 = vsub.f32 0.0, %v158_v9  ;;  %583 = vmatpush.bf16.msra.mxu1 %v3078_v6 }
  0xc7   :  { %v183_v12 = vmul.f32 1.442695, %v170_v10 }
  0xc8   :  { %v3361_v13 = vpop.eup %3360 }
  0xc9   :  { %v3363_v14 = vpop.eup %3362  ;;  %v208_v16 = vmul.f32 %v3361_v13, %v153_v54  ;;  %3364 = vpow2.f32 %v183_v12  ;;  %v3035_v12 = vld [vmem:[#allocation3 + $0x40] sm:$0xf0]  ;;  %v3041_v13 = vld [vmem:[#allocation3 + $0x20] sm:$0xf] }
  0xca   :  { %v160_v17 = vpop.f32.mrf.mxu0  ;;  %v193_v23 = vadd.f32 1.0, %v3363_v14  ;;  %v3038_v14 = vor.u32 %v3292_v11, %v3035_v12 }
  0xcb   :  { %v4237_v18 = vpack.c.bf16 %v208_v16, %v207_v15  ;;  %v4240_v19 = vadd.f32 %v4212_v25, %v160_v17  ;;  %v3298_v15 = vld [vmem:[#allocation3 + $0x44] sm:$0xf0]  ;;  %v3293_v16 = vld [vmem:[#allocation3 + $0x24] sm:$0xf]  ;;  %v3043_v17 = vld [vmem:[#allocation3 + $0x48] sm:$0xf0] }
  0xcc   :  { %3366 = vrcp.f32 %v193_v23  ;;  %v3042_v20 = vor.u32 %v3298_v15, %v3041_v13  ;;  %v3046_v21 = vor.u32 %v3293_v16, %v3043_v17  ;;  %584 = vmatpush.bf16.msra.mxu1 %v3038_v14  ;;  %v4323_v23 = vld [vmem:[%s5650_s4] sm:$0xff] }
  0xcd   :  { %v171_v28 = vsub.f32 0.0, %v4240_v19  ;;  %3088 = vmatmul.msk.bf16.gmra.mxu1 %vm361_vm2, %v4237_v18  ;;  %3092 = vmatmul.msk.bf16.gmra.mxu2 %vm361_vm2, %v4237_v18  ;;  %v4326_v24 = vperm.slane %v4323_v23, 0  ;;  %v4329_v26 = vperm.slane %v4323_v23, 6  ;;  %v4343_v32 = vperm.slane %v4323_v23, 1 }
  0xce   :  { %3096 = vmatmul.msk.bf16.gmra.mxu3 %vm361_vm2, %v4237_v18  ;;  %3112 = vmatmul.msk.bf16.gmra.mxu0 %vm361_vm2, %v4237_v18 }
  0xcf   :  { %v3365_v34 = vpop.eup %3364  ;;  %v185_v35 = vmul.f32 1.442695, %v171_v28 }
  0xd0   :  { %v194_v39 = vadd.f32 1.0, %v3365_v34  ;;  %v4349_v34 = vperm.slane %v4323_v23, 2 }
  0xd2   :  { %3368 = vrcp.f32 %v194_v39  ;;  %v162_v45 = vpop.f32.mrf.mxu0  ;;  %v3367_v49 = vpop.eup %3366 }
  0xd3   :  { %3370 = vpow2.f32 %v185_v35  ;;  %v163_v47 = vadd.f32 %v4212_v25, %v162_v45  ;;  %v209_v53 = vmul.f32 %v3367_v49, %v4225_v2  ;;  %v3308_v2 = vld [vmem:[#allocation3 + $0x94] sm:$0xf0] }
  0xd4   :  { %v3082_v4 = vor.u32 %v3308_v2, %v3081_v0 }
  0xd5   :  { %v172_v48 = vsub.f32 0.0, %v163_v47 }
  0xd6   :  { %612 = vmatpush.bf16.msra.mxu2 %v3082_v4 }
  0xd7   :  { %v187_v50 = vmul.f32 1.442695, %v172_v48 }
  0xd8   :  { %v3369_v51 = vpop.eup %3368 }
  0xd9   :  { %v3371_v52 = vpop.eup %3370  ;;  %v210_v54 = vmul.f32 %v3369_v51, %v158_v9  ;;  %3372 = vpow2.f32 %v187_v50  ;;  %v3083_v9 = vld [vmem:[#allocation3 + $0x98] sm:$0xf0] }
  0xda   :  { %v195_v56 = vadd.f32 1.0, %v3371_v52  ;;  %v3086_v10 = vor.u32 %v3303_v8, %v3083_v9  ;;  %613 = vmatpush.bf16.msra.mxu2 %v3042_v20 }
  0xdb   :  { %v4259_v55 = vpack.c.bf16 %v210_v54, %v209_v53 }
  0xdc   :  { %3374 = vrcp.f32 %v195_v56  ;;  %641 = vmatpush.bf16.msra.mxu3 %v3086_v10 }
  0xdd   :  { %3089 = vmatmul.msk.bf16.gmra.mxu1 %vm361_vm2, %v4259_v55  ;;  %3093 = vmatmul.msk.bf16.gmra.mxu2 %vm361_vm2, %v4259_v55 }
  0xde   :  { %3097 = vmatmul.msk.bf16.gmra.mxu3 %vm361_vm2, %v4259_v55  ;;  %3113 = vmatmul.msk.bf16.gmra.mxu0 %vm361_vm2, %v4259_v55 }
  0xdf   :  { %v3373_v25 = vpop.eup %3372 }
  0xe0   :  { %v196_v57 = vadd.f32 1.0, %v3373_v25  ;;  %642 = vmatpush.bf16.msra.mxu3 %v3046_v21 }
  0xe2   :  { %3376 = vrcp.f32 %v196_v57  ;;  %v3375_v58 = vpop.eup %3374 }
  0xe3   :  { %v211_v60 = vmul.f32 %v3375_v58, %v4240_v19  ;;  %v3311_v19 = vld [vmem:[%s5646_s0 + $0x30] sm:$0xff] }
  0xe8   :  { %v3377_v59 = vpop.eup %3376 }
  0xe9   :  { %v212_v61 = vmul.f32 %v3377_v59, %v163_v47 }
  0xeb   :  { %v4270_v62 = vpack.c.bf16 %v212_v61, %v211_v60 }
  0xed   :  { %3090 = vmatmul.msk.bf16.gmra.mxu1 %vm361_vm2, %v4270_v62  ;;  %3094 = vmatmul.msk.bf16.gmra.mxu2 %vm361_vm2, %v4270_v62 }
  0xee   :  { %3098 = vmatmul.msk.bf16.gmra.mxu3 %vm361_vm2, %v4270_v62  ;;  %3114 = vmatmul.msk.bf16.gmra.mxu0 %vm361_vm2, %v4270_v62 }
  0xfd   :  { %3099 = vmatmul.msk.bf16.vlgmr.msrb.gmra.mxu1 %vm361_vm2, %v4222_v1  ;;  %3103 = vmatmul.msk.bf16.vlgmr.msrb.gmra.mxu2 %vm361_vm2, %v4222_v1 }
  0xfe   :  { %3107 = vmatmul.msk.bf16.vlgmr.msrb.gmra.mxu3 %vm361_vm2, %v4222_v1  ;;  %3159 = vmatmul.msk.bf16.vlgmr.msra.gmra.mxu0 %vm119_vm1, %v3309_v63 }
 0x10d   :  { %3100 = vmatmul.msk.bf16.gmra.mxu1 %vm361_vm2, %v4237_v18  ;;  %3104 = vmatmul.msk.bf16.gmra.mxu2 %vm361_vm2, %v4237_v18 }
 0x10e   :  { %3108 = vmatmul.msk.bf16.gmra.mxu3 %vm361_vm2, %v4237_v18  ;;  %3160 = vmatmul.msk.bf16.gmra.mxu0 %vm119_vm1, %v3310_v7 }
 0x11d   :  { %3101 = vmatmul.msk.bf16.gmra.mxu1 %vm361_vm2, %v4259_v55  ;;  %3105 = vmatmul.msk.bf16.gmra.mxu2 %vm361_vm2, %v4259_v55 }
 0x11e   :  { %3109 = vmatmul.msk.bf16.gmra.mxu3 %vm361_vm2, %v4259_v55  ;;  %3161 = vmatmul.msk.bf16.gmra.mxu0 %vm119_vm1, %v3311_v19 }
 0x12d   :  { %3102 = vmatmul.msk.bf16.gmra.mxu1 %vm361_vm2, %v4270_v62  ;;  %3106 = vmatmul.msk.bf16.gmra.mxu2 %vm361_vm2, %v4270_v62 }
 0x12e   :  { %3110 = vmatmul.msk.bf16.gmra.mxu3 %vm361_vm2, %v4270_v62  ;;  %3162 = vmatmul.msk.bf16.gmra.mxu0 %vm119_vm1, %v3312_v22 }
 0x13a   :  { %v383_v27 = vpop.f32.mrf.mxu1 }
 0x13b   :  { %v4332_v28 = vadd.f32 %v383_v27, %v4326_v24  ;;  %v557_v29 = vpop.f32.mrf.mxu0 }
 0x13c   :  { %v4335_v30 = vadd.f32 %v557_v29, %v4329_v26 }
 0x13d   :  { %v664_v31 = vsub.f32 0.0, %v4332_v28  ;;  %3115 = vmatmul.msk.bf16.vlgmr.msra.gmra.mxu1 %vm361_vm2, %v4222_v1  ;;  %3119 = vmatmul.msk.bf16.vlgmr.msra.gmra.mxu2 %vm361_vm2, %v4222_v1 }
 0x13e   :  { %v670_v33 = vsub.f32 0.0, %v4335_v30  ;;  %3123 = vmatmul.msk.bf16.vlgmr.msra.gmra.mxu3 %vm361_vm2, %v4222_v1 }
 0x13f   :  { %v744_v35 = vmul.f32 1.442695, %v664_v31 }
 0x140   :  { %v756_v36 = vmul.f32 1.442695, %v670_v33  ;;  %v412_v37 = vpop.f32.mrf.mxu2 }
 0x141   :  { %3378 = vpow2.f32 %v744_v35  ;;  %v4352_v38 = vadd.f32 %v412_v37, %v4343_v32  ;;  %v441_v39 = vpop.f32.mrf.mxu3 }
 0x142   :  { %3380 = vpow2.f32 %v756_v36  ;;  %v4355_v40 = vadd.f32 %v441_v39, %v4349_v34  ;;  %v385_v41 = vpop.f32.mrf.mxu1 }
 0x143   :  { %v665_v42 = vsub.f32 0.0, %v4352_v38  ;;  %v4359_v1 = vadd.f32 %v385_v41, %v4326_v24  ;;  %v559_v43 = vpop.f32.mrf.mxu0 }
 0x144   :  { %v666_v44 = vsub.f32 0.0, %v4355_v40  ;;  %v4363_v45 = vadd.f32 %v559_v43, %v4329_v26 }
 0x145   :  { %v746_v46 = vmul.f32 1.442695, %v665_v42  ;;  %v674_v47 = vsub.f32 0.0, %v4359_v1 }
 0x146   :  { %v748_v48 = vmul.f32 1.442695, %v666_v44  ;;  %v680_v49 = vsub.f32 0.0, %v4363_v45 }
 0x147   :  { %v3379_v50 = vpop.eup %3378  ;;  %3382 = vpow2.f32 %v746_v46  ;;  %v764_v51 = vmul.f32 1.442695, %v674_v47 }
 0x148   :  { %v3381_v52 = vpop.eup %3380  ;;  %3384 = vpow2.f32 %v748_v48  ;;  %v776_v53 = vmul.f32 1.442695, %v680_v49  ;;  %v414_v54 = vpop.f32.mrf.mxu2  ;;  %v904_v56 = vadd.f32 1.0, %v3379_v50 }
 0x149   :  { %3386 = vpow2.f32 %v764_v51  ;;  %v4368_v25 = vadd.f32 %v414_v54, %v4343_v32  ;;  %v443_v57 = vpop.f32.mrf.mxu3  ;;  %v910_v58 = vadd.f32 1.0, %v3381_v52 }
 0x14a   :  { %v4371_v59 = vadd.f32 %v443_v57, %v4349_v34  ;;  %v388_v60 = vpop.f32.mrf.mxu1  ;;  %3388 = vpow2.f32 %v776_v53 }
 0x14b   :  { %v675_v61 = vsub.f32 0.0, %v4368_v25  ;;  %v4375_v63 = vadd.f32 %v388_v60, %v4326_v24  ;;  %v562_v0 = vpop.f32.mrf.mxu0  ;;  %3390 = vrcp.f32 %v904_v56 }
 0x14c   :  { %v676_v2 = vsub.f32 0.0, %v4371_v59  ;;  %v4379_v3 = vadd.f32 %v562_v0, %v4329_v26  ;;  %3392 = vrcp.f32 %v910_v58  ;;  %v3207_v0 = vld [vmem:[#allocation3 + $0x78] sm:$0xf0] }
 0x14d   :  { %v3383_v4 = vpop.eup %3382  ;;  %v766_v5 = vmul.f32 1.442695, %v675_v61  ;;  %v684_v6 = vsub.f32 0.0, %v4375_v63  ;;  %3116 = vmatmul.msk.bf16.gmra.mxu1 %vm361_vm2, %v4237_v18  ;;  %3120 = vmatmul.msk.bf16.gmra.mxu2 %vm361_vm2, %v4237_v18  ;;  %v3325_v61 = vld [vmem:[#allocation3 + $0x54] sm:$0xf] }
 0x14e   :  { %v3385_v7 = vpop.eup %3384  ;;  %v905_v8 = vadd.f32 1.0, %v3383_v4  ;;  %v690_v9 = vsub.f32 0.0, %v4379_v3  ;;  %3124 = vmatmul.msk.bf16.gmra.mxu3 %vm361_vm2, %v4237_v18  ;;  %v768_v12 = vmul.f32 1.442695, %v676_v2 }
 0x14f   :  { %v3387_v10 = vpop.eup %3386  ;;  %v906_v11 = vadd.f32 1.0, %v3385_v7  ;;  %3394 = vpow2.f32 %v766_v5  ;;  %v784_v14 = vmul.f32 1.442695, %v684_v6  ;;  %v3210_v6 = vor.u32 %v3325_v61, %v3207_v0 }
 0x150   :  { %3396 = vrcp.f32 %v905_v8  ;;  %v914_v13 = vadd.f32 1.0, %v3387_v10  ;;  %v417_v15 = vpop.f32.mrf.mxu2  ;;  %v3389_v19 = vpop.eup %3388  ;;  %v796_v20 = vmul.f32 1.442695, %v690_v9 }
 0x151   :  { %3398 = vrcp.f32 %v906_v11  ;;  %v4390_v16 = vadd.f32 %v417_v15, %v4343_v32  ;;  %v446_v17 = vpop.f32.mrf.mxu3  ;;  %v3391_v22 = vpop.eup %3390  ;;  %v920_v27 = vadd.f32 1.0, %v3389_v19  ;;  %1659 = vmatpush.bf16.msrb.mxu2 %v3210_v6 }
 0x152   :  { %3400 = vrcp.f32 %v914_v13  ;;  %v4393_v21 = vadd.f32 %v446_v17, %v4349_v34  ;;  %v390_v18 = vpop.f32.mrf.mxu1  ;;  %v3393_v35 = vpop.eup %3392  ;;  %v1064_v51 = vmul.f32 %v3391_v22, %v4332_v28 }
 0x153   :  { %3402 = vpow2.f32 %v768_v12  ;;  %v685_v29 = vsub.f32 0.0, %v4390_v16  ;;  %v4397_v31 = vadd.f32 %v390_v18, %v4326_v24  ;;  %v564_v33 = vpop.f32.mrf.mxu0  ;;  %v1070_v56 = vmul.f32 %v3393_v35, %v4335_v30 }
 0x154   :  { %3404 = vpow2.f32 %v784_v14  ;;  %v686_v36 = vsub.f32 0.0, %v4393_v21  ;;  %v4401_v37 = vadd.f32 %v564_v33, %v4329_v26 }
 0x155   :  { %v3395_v39 = vpop.eup %3394  ;;  %3406 = vrcp.f32 %v920_v27  ;;  %v786_v41 = vmul.f32 1.442695, %v685_v29  ;;  %v694_v42 = vsub.f32 0.0, %v4397_v31  ;;  %v3205_v27 = vld [vmem:[#allocation3 + $0x50] sm:$0xf] }
 0x156   :  { %v3397_v43 = vpop.eup %3396  ;;  %v915_v44 = vadd.f32 1.0, %v3395_v39  ;;  %3408 = vpow2.f32 %v796_v20  ;;  %v788_v46 = vmul.f32 1.442695, %v686_v36  ;;  %v700_v47 = vsub.f32 0.0, %v4401_v37  ;;  %v3330_v39 = vld [vmem:[#allocation3 + $0x74] sm:$0xf0] }
 0x157   :  { %v3399_v48 = vpop.eup %3398  ;;  %3410 = vpow2.f32 %v786_v41  ;;  %v804_v49 = vmul.f32 1.442695, %v694_v42  ;;  %v1065_v30 = vmul.f32 %v3397_v43, %v4352_v38 }
 0x158   :  { %v3401_v50 = vpop.eup %3400  ;;  %3412 = vrcp.f32 %v915_v44  ;;  %v816_v52 = vmul.f32 1.442695, %v700_v47  ;;  %v419_v53 = vpop.f32.mrf.mxu2  ;;  %v1066_v19 = vmul.f32 %v3399_v48, %v4355_v40  ;;  %v3206_v44 = vor.u32 %v3330_v39, %v3205_v27 }
 0x159   :  { %v3403_v54 = vpop.eup %3402  ;;  %v1074_v57 = vmul.f32 %v3401_v50, %v4359_v1  ;;  %3414 = vpow2.f32 %v788_v46  ;;  %v4409_v58 = vadd.f32 %v419_v53, %v4343_v32  ;;  %v448_v60 = vpop.f32.mrf.mxu3 }
 0x15a   :  { %v3405_v2 = vpop.eup %3404  ;;  %v916_v4 = vadd.f32 1.0, %v3403_v54  ;;  %3416 = vpow2.f32 %v804_v49  ;;  %v4412_v28 = vadd.f32 %v448_v60, %v4349_v34  ;;  %v393_v5 = vpop.f32.mrf.mxu1  ;;  %1630 = vmatpush.bf16.msrb.mxu1 %v3206_v44 }
 0x15b   :  { %v3407_v7 = vpop.eup %3406  ;;  %v924_v8 = vadd.f32 1.0, %v3405_v2  ;;  %3418 = vpow2.f32 %v816_v52  ;;  %v695_v1 = vsub.f32 0.0, %v4409_v58  ;;  %v567_v9 = vpop.f32.mrf.mxu0  ;;  %v4419_v13 = vadd.f32 %v393_v5, %v4326_v24 }
 0x15c   :  { %v3409_v10 = vpop.eup %3408  ;;  %v1080_v11 = vmul.f32 %v3407_v7, %v4363_v45  ;;  %3420 = vrcp.f32 %v916_v4  ;;  %v696_v12 = vsub.f32 0.0, %v4412_v28  ;;  %v4422_v38 = vadd.f32 %v567_v9, %v4329_v26 }
 0x15d   :  { %v3411_v14 = vpop.eup %3410  ;;  %3422 = vrcp.f32 %v924_v8  ;;  %v930_v15 = vadd.f32 1.0, %v3409_v10  ;;  %v806_v17 = vmul.f32 1.442695, %v695_v1  ;;  %3117 = vmatmul.msk.bf16.gmra.mxu1 %vm361_vm2, %v4259_v55  ;;  %3121 = vmatmul.msk.bf16.gmra.mxu2 %vm361_vm2, %v4259_v55  ;;  %v1147_v20 = vadd.f32 %v1074_v57, %v1064_v51 }
 0x15e   :  { %v3413_v45 = vpop.eup %3412  ;;  %v925_v18 = vadd.f32 1.0, %v3411_v14  ;;  %v704_v22 = vsub.f32 0.0, %v4419_v13  ;;  %3125 = vmatmul.msk.bf16.gmra.mxu3 %vm361_vm2, %v4259_v55  ;;  %v1225_v33 = vadd.f32 %v1080_v11, %v1070_v56  ;;  %v710_v36 = vsub.f32 0.0, %v4422_v38 }
 0x15f   :  { %v3415_v29 = vpop.eup %3414  ;;  %v1075_v35 = vmul.f32 %v3413_v45, %v4368_v25  ;;  %3424 = vrcp.f32 %v930_v15  ;;  %v808_v40 = vmul.f32 1.442695, %v696_v12 }
 0x160   :  { %v3417_v41 = vpop.eup %3416  ;;  %3426 = vrcp.f32 %v925_v18  ;;  %v926_v42 = vadd.f32 1.0, %v3415_v29  ;;  %v422_v43 = vpop.f32.mrf.mxu2  ;;  %v824_v55 = vmul.f32 1.442695, %v704_v22  ;;  %v836_v57 = vmul.f32 1.442695, %v710_v36 }
 0x161   :  { %v3419_v46 = vpop.eup %3418  ;;  %v1160_v47 = vadd.f32 %v1075_v35, %v1065_v30  ;;  %v934_v48 = vadd.f32 1.0, %v3417_v41  ;;  %3428 = vpow2.f32 %v806_v17  ;;  %v451_v49 = vpop.f32.mrf.mxu3  ;;  %v4435_v25 = vadd.f32 %v422_v43, %v4343_v32 }
 0x162   :  { %v3421_v50 = vpop.eup %3420  ;;  %3430 = vrcp.f32 %v926_v42  ;;  %v940_v51 = vadd.f32 1.0, %v3419_v46  ;;  %v4438_v52 = vadd.f32 %v451_v49, %v4349_v34  ;;  %v395_v53 = vpop.f32.mrf.mxu1 }
 0x163   :  { %v3423_v54 = vpop.eup %3422  ;;  %v1076_v56 = vmul.f32 %v3421_v50, %v4371_v59  ;;  %3432 = vrcp.f32 %v934_v48  ;;  %v4442_v60 = vadd.f32 %v395_v53, %v4326_v24  ;;  %v569_v61 = vpop.f32.mrf.mxu0  ;;  %v705_v2 = vsub.f32 0.0, %v4435_v25 }
 0x164   :  { %v1084_v0 = vmul.f32 %v3423_v54, %v4375_v63  ;;  %3434 = vrcp.f32 %v940_v51  ;;  %v706_v4 = vsub.f32 0.0, %v4438_v52  ;;  %v4449_v59 = vadd.f32 %v569_v61, %v4329_v26 }
 0x165   :  { %v3425_v5 = vpop.eup %3424  ;;  %v1173_v6 = vadd.f32 %v1076_v56, %v1066_v19  ;;  %3436 = vpow2.f32 %v808_v40  ;;  %v714_v7 = vsub.f32 0.0, %v4442_v60  ;;  %v826_v63 = vmul.f32 1.442695, %v705_v2 }
 0x166   :  { %v3427_v30 = vpop.eup %3426  ;;  %v4451_v8 = vadd.f32 %v1147_v20, %v1084_v0  ;;  %v1090_v1 = vmul.f32 %v3425_v5, %v4379_v3  ;;  %3438 = vpow2.f32 %v824_v55  ;;  %v828_v11 = vmul.f32 1.442695, %v706_v4 }
 0x167   :  { %v3429_v9 = vpop.eup %3428  ;;  %v1085_v10 = vmul.f32 %v3427_v30, %v4390_v16  ;;  %3440 = vpow2.f32 %v836_v57  ;;  %v844_v12 = vmul.f32 1.442695, %v714_v7  ;;  %v720_v45 = vsub.f32 0.0, %v4449_v59 }
 0x168   :  { %v3431_v14 = vpop.eup %3430  ;;  %v4455_v15 = vadd.f32 %v1225_v33, %v1090_v1  ;;  %v935_v17 = vadd.f32 1.0, %v3429_v9  ;;  %3442 = vpow2.f32 %v826_v63  ;;  %v424_v19 = vpop.f32.mrf.mxu2  ;;  %v4484_v50 = vperm.slane %v4323_v23, 3 }
 0x169   :  { %v3433_v20 = vpop.eup %3432  ;;  %v4458_v18 = vadd.f32 %v1160_v47, %v1085_v10  ;;  %v1086_v3 = vmul.f32 %v3431_v14, %v4393_v21  ;;  %3444 = vpow2.f32 %v828_v11  ;;  %v4462_v22 = vadd.f32 %v424_v19, %v4343_v32  ;;  %v453_v16 = vpop.f32.mrf.mxu3 }
 0x16a   :  { %v3435_v27 = vpop.eup %3434  ;;  %3446 = vrcp.f32 %v935_v17  ;;  %v856_v29 = vmul.f32 1.442695, %v720_v45  ;;  %v4465_v33 = vadd.f32 %v453_v16, %v4349_v34  ;;  %v398_v35 = vpop.f32.mrf.mxu1  ;;  %v1094_v61 = vmul.f32 %v3433_v20, %v4397_v31 }
 0x16b   :  { %v3437_v36 = vpop.eup %3436  ;;  %v4467_v39 = vadd.f32 %v1173_v6, %v1086_v3  ;;  %3448 = vpow2.f32 %v844_v12  ;;  %v715_v41 = vsub.f32 0.0, %v4462_v22  ;;  %v572_v42 = vpop.f32.mrf.mxu0  ;;  %v4472_v47 = vadd.f32 %v398_v35, %v4326_v24 }
 0x16c   :  { %v3439_v21 = vpop.eup %3438  ;;  %v936_v40 = vadd.f32 1.0, %v3437_v36  ;;  %3450 = vpow2.f32 %v856_v29  ;;  %v716_v46 = vsub.f32 0.0, %v4465_v33  ;;  %v4479_v49 = vadd.f32 %v572_v42, %v4329_v26 }
 0x16d   :  { %v3441_v43 = vpop.eup %3440  ;;  %v944_v44 = vadd.f32 1.0, %v3439_v21  ;;  %3118 = vmatmul.msk.bf16.gmra.mxu1 %vm361_vm2, %v4270_v62  ;;  %3122 = vmatmul.msk.bf16.gmra.mxu2 %vm361_vm2, %v4270_v62  ;;  %v846_v54 = vmul.f32 1.442695, %v715_v41  ;;  %v724_v56 = vsub.f32 0.0, %v4472_v47  ;;  %v1149_v3 = vadd.f32 %v4451_v8, %v1094_v61 }
 0x16e   :  { %v3443_v48 = vpop.eup %3442  ;;  %3452 = vrcp.f32 %v936_v40  ;;  %v950_v55 = vadd.f32 1.0, %v3441_v43  ;;  %3126 = vmatmul.msk.bf16.gmra.mxu3 %vm361_vm2, %v4270_v62  ;;  %v730_v2 = vsub.f32 0.0, %v4479_v49  ;;  %v1100_v62 = vmul.f32 %v3435_v27, %v4401_v37 }
 0x16f   :  { %v3445_v51 = vpop.eup %3444  ;;  %3454 = vrcp.f32 %v944_v44  ;;  %v945_v53 = vadd.f32 1.0, %v3443_v48  ;;  %v848_v6 = vmul.f32 1.442695, %v716_v46  ;;  %v864_v12 = vmul.f32 1.442695, %v724_v56 }
 0x170   :  { %v3447_v57 = vpop.eup %3446  ;;  %3456 = vrcp.f32 %v950_v55  ;;  %v946_v0 = vadd.f32 1.0, %v3445_v51  ;;  %v427_v4 = vpop.f32.mrf.mxu2  ;;  %v876_v45 = vmul.f32 1.442695, %v730_v2  ;;  %v1227_v21 = vadd.f32 %v4455_v15, %v1100_v62  ;;  %v3331_v56 = vld [vmem:[#allocation3 + $0x7c] sm:$0xf0] }
 0x171   :  { %v3449_v5 = vpop.eup %3448  ;;  %3458 = vrcp.f32 %v945_v53  ;;  %v4491_v7 = vadd.f32 %v427_v4, %v4343_v32  ;;  %v456_v30 = vpop.f32.mrf.mxu3  ;;  %v1095_v63 = vmul.f32 %v3447_v57, %v4409_v58  ;;  %v4527_v2 = vld [vmem:[%s5648_s2] ss:$0 sm:$0xff] }
 0x172   :  { %v3451_v1 = vpop.eup %3450  ;;  %3460 = vrcp.f32 %v946_v0  ;;  %v954_v9 = vadd.f32 1.0, %v3449_v5  ;;  %v4495_v31 = vadd.f32 %v456_v30, %v4349_v34  ;;  %v400_v10 = vpop.f32.mrf.mxu1 }
 0x173   :  { %v960_v11 = vadd.f32 1.0, %v3451_v1  ;;  %3462 = vpow2.f32 %v846_v54  ;;  %v725_v37 = vsub.f32 0.0, %v4491_v7  ;;  %v4498_v14 = vpop.f32.mrf.mxu0  ;;  %v4502_v58 = vadd.f32 %v400_v10, %v4326_v24  ;;  %v3213_v54 = vld [vmem:[#allocation3 + $0x58] sm:$0xf]  ;;  %v3215_v10 = vld [vmem:[#allocation3 + $0x80] sm:$0xf0] }
 0x174   :  { %v3453_v17 = vpop.eup %3452  ;;  %3464 = vrcp.f32 %v954_v9  ;;  %v726_v19 = vsub.f32 0.0, %v4495_v31  ;;  %v1162_v24 = vadd.f32 %v4458_v18, %v1095_v63  ;;  %v3326_v9 = vld [vmem:[#allocation3 + $0x5c] sm:$0xf] }
 0x175   :  { %v3455_v20 = vpop.eup %3454  ;;  %v1096_v16 = vmul.f32 %v3453_v17, %v4412_v28  ;;  %3466 = vrcp.f32 %v960_v11  ;;  %v866_v27 = vmul.f32 1.442695, %v725_v37  ;;  %v734_v41 = vsub.f32 0.0, %v4502_v58 }
 0x176   :  { %v3457_v29 = vpop.eup %3456  ;;  %v1104_v35 = vmul.f32 %v3455_v20, %v4419_v13  ;;  %3468 = vpow2.f32 %v848_v6  ;;  %v868_v36 = vmul.f32 1.442695, %v726_v19  ;;  %v4536_v6 = vperm.slane %v4323_v23, 5 }
 0x177   :  { %v3459_v42 = vpop.eup %3458  ;;  %v1110_v40 = vmul.f32 %v3457_v29, %v4422_v38  ;;  %3470 = vpow2.f32 %v864_v12  ;;  %v884_v44 = vmul.f32 1.442695, %v734_v41  ;;  %v1175_v48 = vadd.f32 %v4467_v39, %v1096_v16 }
 0x178   :  { %v3461_v8 = vpop.eup %3460  ;;  %v1150_v43 = vadd.f32 %v1149_v3, %v1104_v35  ;;  %v1105_v28 = vmul.f32 %v3459_v42, %v4435_v25  ;;  %3472 = vpow2.f32 %v876_v45  ;;  %v429_v46 = vpop.f32.mrf.mxu2  ;;  %v3218_v29 = vor.u32 %v3326_v9, %v3215_v10  ;;  %v3167_v42 = vld [vmem:[#allocation3 + $0x28] sm:$0xf0]  ;;  %v3320_v9 = vld [vmem:[#allocation3 + $0x24] sm:$0xf0] }
 0x179   :  { %v3463_v13 = vpop.eup %3462  ;;  %v4513_v55 = vadd.f32 %v1227_v21, %v1110_v40  ;;  %v1106_v51 = vmul.f32 %v3461_v8, %v4438_v52  ;;  %3474 = vpow2.f32 %v866_v27  ;;  %v458_v15 = vpop.f32.mrf.mxu3  ;;  %v4519_v25 = vadd.f32 %v429_v46, %v4343_v32 }
 0x17a   :  { %v3465_v18 = vpop.eup %3464  ;;  %v4516_v53 = vadd.f32 %v1162_v24, %v1105_v28  ;;  %v955_v38 = vadd.f32 1.0, %v3463_v13  ;;  %3476 = vpow2.f32 %v868_v36  ;;  %v470_v57 = vpop.f32.mrf.mxu1  ;;  %v3214_v52 = vor.u32 %v3331_v56, %v3213_v54  ;;  %1717 = vmatpush.bf16.msrb.mxu0 %v3218_v29 }
 0x17b   :  { %v3467_v61 = vpop.eup %3466  ;;  %v4521_v0 = vadd.f32 %v1175_v48, %v1106_v51  ;;  %v1114_v39 = vmul.f32 %v3465_v18, %v4442_v60  ;;  %3478 = vpow2.f32 %v884_v44  ;;  %v1396_v4 = vpop.f32.mrf.mxu0  ;;  %v4530_v62 = vadd.f32 %v458_v15, %v4349_v34 }
 0x17c   :  { %v3469_v5 = vpop.eup %3468  ;;  %3480 = vrcp.f32 %v955_v38  ;;  %v4533_v32 = vperm.slane %v4323_v23, 4  ;;  %1688 = vmatpush.bf16.msrb.mxu3 %v3214_v52  ;;  %v735_v1 = vsub.f32 0.0, %v4519_v25  ;;  %v4540_v63 = vadd.f32 %v470_v57, %v4484_v50 }
 0x17d   :  { %v3471_v60 = vpop.eup %3470  ;;  %v956_v30 = vadd.f32 1.0, %v3469_v5  ;;  %v4542_v12 = vadd.f32 %v1150_v43, %v1114_v39  ;;  %v1120_v34 = vmul.f32 %v3467_v61, %v4449_v59  ;;  %v4547_v23 = vadd.f32 %v4498_v14, %v4329_v26  ;;  %v3315_v59 = vld [vmem:[#allocation3 + $0x4] sm:$0xf] }
 0x17e   :  { %v3473_v11 = vpop.eup %3472  ;;  %v964_v37 = vadd.f32 1.0, %v3471_v60  ;;  %v736_v19 = vsub.f32 0.0, %v4530_v62  ;;  %v4551_v20 = vadd.f32 %v4527_v2, %v1396_v4  ;;  %v667_v27 = vsub.f32 0.0, %v4540_v63 }
 0x17f   :  { %v3475_v17 = vpop.eup %3474  ;;  %3482 = vrcp.f32 %v956_v30  ;;  %v970_v45 = vadd.f32 1.0, %v3473_v11  ;;  %v886_v14 = vmul.f32 1.442695, %v735_v1  ;;  %v3170_v8 = vor.u32 %v3315_v59, %v3167_v42 }
 0x180   :  { %v3477_v3 = vpop.eup %3476  ;;  %3484 = vrcp.f32 %v964_v37  ;;  %v965_v16 = vadd.f32 1.0, %v3475_v17  ;;  %v499_v35 = vpop.f32.mrf.mxu2  ;;  %v1416_v41 = vsub.f32 0.0, %v4551_v20  ;;  %v888_v46 = vmul.f32 1.442695, %v736_v19 }
 0x181   :  { %v3479_v36 = vpop.eup %3478  ;;  %3486 = vrcp.f32 %v970_v45  ;;  %v966_v26 = vadd.f32 1.0, %v3477_v3  ;;  %v528_v21 = vpop.f32.mrf.mxu3  ;;  %v4556_v43 = vadd.f32 %v499_v35, %v4533_v32  ;;  %v750_v51 = vmul.f32 1.442695, %v667_v27  ;;  %1660 = vmatpush.bf16.msrb.mxu2 %v3170_v8 }
 0x182   :  { %v3481_v24 = vpop.eup %3480  ;;  %3488 = vrcp.f32 %v965_v16  ;;  %v974_v40 = vadd.f32 1.0, %v3479_v36  ;;  %v472_v28 = vpop.f32.mrf.mxu1  ;;  %v4560_v13 = vadd.f32 %v528_v21, %v4536_v6  ;;  %v1229_v54 = vadd.f32 %v4513_v55, %v1120_v34  ;;  %v3165_v55 = vld [vmem:[#allocation3] sm:$0xf] }
 0x183   :  { %v1115_v44 = vmul.f32 %v3481_v24, %v4462_v22  ;;  %3490 = vrcp.f32 %v966_v26  ;;  %v1398_v48 = vpop.f32.mrf.mxu0  ;;  %v668_v15 = vsub.f32 0.0, %v4556_v43  ;;  %v4564_v18 = vadd.f32 %v472_v28, %v4484_v50 }
 0x184   :  { %3492 = vrcp.f32 %v974_v40  ;;  %v1424_v56 = vmul.f32 1.442695, %v1416_v41  ;;  %v669_v22 = vsub.f32 0.0, %v4560_v13  ;;  %v4573_v1 = vadd.f32 %v4527_v2, %v1398_v48 }
 0x185   :  { %v3483_v38 = vpop.eup %3482  ;;  %3494 = vpow2.f32 %v886_v14  ;;  %v1164_v61 = vadd.f32 %v4516_v53, %v1115_v44  ;;  %v752_v52 = vmul.f32 1.442695, %v668_v15  ;;  %v677_v4 = vsub.f32 0.0, %v4564_v18 }
 0x186   :  { %v3485_v57 = vpop.eup %3484  ;;  %v1116_v39 = vmul.f32 %v3483_v38, %v4465_v33  ;;  %3496 = vpow2.f32 %v888_v46  ;;  %v754_v30 = vmul.f32 1.442695, %v669_v22  ;;  %v1417_v45 = vsub.f32 0.0, %v4573_v1 }
 0x187   :  { %v3487_v5 = vpop.eup %3486  ;;  %v1124_v60 = vmul.f32 %v3485_v57, %v4472_v47  ;;  %3498 = vpow2.f32 %v750_v51  ;;  %v770_v33 = vmul.f32 1.442695, %v677_v4  ;;  %v740_v42 = vsub.f32 0.0, %v4547_v23 }
 0x188   :  { %v3489_v10 = vpop.eup %3488  ;;  %v1177_v11 = vadd.f32 %v4521_v0, %v1116_v39  ;;  %v1130_v53 = vmul.f32 %v3487_v5, %v4479_v49  ;;  %v501_v34 = vpop.f32.mrf.mxu2  ;;  %3500 = vpow2.f32 %v1424_v56  ;;  %v3166_v0 = vor.u32 %v3320_v9, %v3165_v55 }
 0x189   :  { %v3491_v37 = vpop.eup %3490  ;;  %v1152_v17 = vadd.f32 %v4542_v12, %v1124_v60  ;;  %v1125_v47 = vmul.f32 %v3489_v10, %v4491_v7  ;;  %v530_v19 = vpop.f32.mrf.mxu3  ;;  %3502 = vpow2.f32 %v752_v52  ;;  %v1426_v12 = vmul.f32 1.442695, %v1417_v45 }
 0x18a   :  { %v3493_v3 = vpop.eup %3492  ;;  %v4580_v16 = vadd.f32 %v1229_v54, %v1130_v53  ;;  %v1126_v27 = vmul.f32 %v3491_v37, %v4495_v31  ;;  %v475_v49 = vpop.f32.mrf.mxu1  ;;  %3504 = vpow2.f32 %v754_v30  ;;  %1631 = vmatpush.bf16.msrb.mxu1 %v3166_v0  ;;  %v4587_v14 = vadd.f32 %v501_v34, %v4533_v32 }
 0x18b   :  { %v3495_v29 = vpop.eup %3494  ;;  %v1165_v59 = vadd.f32 %v1164_v61, %v1125_v47  ;;  %v1134_v35 = vmul.f32 %v3493_v3, %v4502_v58  ;;  %v1401_v36 = vpop.f32.mrf.mxu0  ;;  %3506 = vpow2.f32 %v770_v33  ;;  %v4592_v40 = vadd.f32 %v530_v19, %v4536_v6 }
 0x18c   :  { %v4584_v7 = vadd.f32 %v1177_v11, %v1126_v27  ;;  %v975_v26 = vadd.f32 1.0, %v3495_v29  ;;  %v3497_v41 = vpop.eup %3496  ;;  %3508 = vpow2.f32 %v1426_v12  ;;  %v678_v58 = vsub.f32 0.0, %v4587_v14 }
 0x18d   :  { %v1153_v31 = vadd.f32 %v1152_v17, %v1134_v35  ;;  %v3499_v21 = vpop.eup %3498  ;;  %v976_v24 = vadd.f32 1.0, %v3497_v41  ;;  %v4595_v46 = vadd.f32 %v475_v49, %v4484_v50  ;;  %v896_v56 = vmul.f32 1.442695, %v740_v42 }
 0x18e   :  { %3510 = vrcp.f32 %v975_v26  ;;  %v3501_v8 = vpop.eup %3500  ;;  %v907_v44 = vadd.f32 1.0, %v3499_v21  ;;  %v772_v61 = vmul.f32 1.442695, %v678_v58  ;;  %v679_v39 = vsub.f32 0.0, %v4592_v40 }
 0x18f   :  { %v1154_v28 = vrot.slane %v1153_v31, 4  ;;  %v3503_v48 = vpop.eup %3502  ;;  %v1440_v51 = vadd.f32 1.0, %v3501_v8  ;;  %3512 = vrcp.f32 %v976_v24  ;;  %v687_v30 = vsub.f32 0.0, %v4595_v46 }
 0x190   :  { %v504_v15 = vpop.f32.mrf.mxu2  ;;  %v3505_v38 = vpop.eup %3504  ;;  %3514 = vrcp.f32 %v907_v44  ;;  %v908_v60 = vadd.f32 1.0, %v3503_v48  ;;  %v4600_v11 = vadd.f32 %v4527_v2, %v1401_v36  ;;  %v774_v17 = vmul.f32 1.442695, %v679_v39 }
 0x191   :  { %v1155_v54 = vadd.f32 %v1154_v28, %v1153_v31  ;;  %v533_v22 = vpop.f32.mrf.mxu3  ;;  %v3507_v57 = vpop.eup %3506  ;;  %3516 = vrcp.f32 %v1440_v51  ;;  %v4603_v53 = vadd.f32 %v504_v15, %v4533_v32  ;;  %v909_v37 = vadd.f32 1.0, %v3505_v38 }
 0x192   :  { %v477_v52 = vpop.f32.mrf.mxu1  ;;  %v3509_v4 = vpop.eup %3508  ;;  %3518 = vpow2.f32 %v896_v56  ;;  %v1418_v47 = vsub.f32 0.0, %v4600_v11  ;;  %v4608_v45 = vadd.f32 %v533_v22, %v4536_v6  ;;  %v917_v3 = vadd.f32 1.0, %v3507_v57  ;;  %v3173_v56 = vld [vmem:[#allocation3 + $0x8] sm:$0xf]  ;;  %v3321_v22 = vld [vmem:[#allocation3 + $0x2c] sm:$0xf0] }
 0x193   :  { %v1156_v5 = vrot.slane %v1155_v54, 2  ;;  %v1403_v55 = vpop.f32.mrf.mxu0  ;;  %v1441_v10 = vadd.f32 1.0, %v3509_v4  ;;  %v790_v0 = vmul.f32 1.442695, %v687_v30  ;;  %v688_v49 = vsub.f32 0.0, %v4603_v53 }
 0x194   :  { %v3511_v9 = vpop.eup %3510  ;;  %v1428_v41 = vmul.f32 1.442695, %v1418_v47  ;;  %v689_v31 = vsub.f32 0.0, %v4608_v45  ;;  %v4619_v44 = vadd.f32 %v477_v52, %v4484_v50  ;;  %v4629_v39 = vadd.f32 %v4527_v2, %v1403_v55 }
 0x195   :  { %v1157_v33 = vadd.f32 %v1156_v5, %v1155_v54  ;;  %v1135_v34 = vmul.f32 %v3511_v9, %v4519_v25  ;;  %3520 = vrcp.f32 %v1441_v10  ;;  %v3513_v27 = vpop.eup %3512  ;;  %v792_v28 = vmul.f32 1.442695, %v688_v49 }
 0x196   :  { %3522 = vrcp.f32 %v908_v60  ;;  %v3515_v35 = vpop.eup %3514  ;;  %v1136_v24 = vmul.f32 %v3513_v27, %v4530_v62  ;;  %v1419_v9 = vsub.f32 0.0, %v4629_v39  ;;  %v3174_v10 = vor.u32 %v3321_v22, %v3173_v56 }
 0x197   :  { %v1166_v19 = vadd.f32 %v1165_v59, %v1135_v34  ;;  %3524 = vpow2.f32 %v772_v61  ;;  %v1158_v12 = vrot.slane %v1157_v33, 1  ;;  %v3517_v26 = vpop.eup %3516  ;;  %v4616_v8 = vmul.f32 %v3515_v35, %v4540_v63 }
 0x198   :  { %v506_v29 = vpop.f32.mrf.mxu2  ;;  %3526 = vrcp.f32 %v909_v37  ;;  %v4612_v59 = vpop.eup %3518  ;;  %v1456_v54 = vmul.f32 %v3517_v26, %v4551_v20  ;;  %v794_v63 = vmul.f32 1.442695, %v689_v31  ;;  %v697_v61 = vsub.f32 0.0, %v4619_v44  ;;  %1689 = vmatpush.bf16.msrb.mxu3 %v3174_v10  ;;  %v3175_v31 = vld [vmem:[#allocation3 + $0x30] sm:$0xf0] }
 0x199   :  { %v1167_v25 = vrot.slane %v1166_v19, 4  ;;  %v535_v36 = vpop.f32.mrf.mxu3  ;;  %3528 = vpow2.f32 %v774_v17  ;;  %v4623_v15 = vadd.f32 %v1158_v12, %v1157_v33  ;;  %v4632_v5 = vadd.f32 %v4584_v7, %v1136_v24 }
 0x19a   :  { %v480_v42 = vpop.f32.mrf.mxu1  ;;  %3530 = vrcp.f32 %v917_v3  ;;  %v4647_v3 = vadd.f32 %v506_v29, %v4533_v32  ;;  %v4650_v27 = vadd.f32 %v535_v36, %v4536_v6  ;;  %v3316_v29 = vld [vmem:[#allocation3 + $0xc] sm:$0xf] }
 0x19b   :  { %v1168_v21 = vadd.f32 %v1167_v25, %v1166_v19  ;;  %v3521_v58 = vpop.eup %3520  ;;  %3532 = vpow2.f32 %v790_v0  ;;  %v4621_v48 = vpop.f32.mrf.mxu0  ;;  %v1430_v19 = vmul.f32 1.442695, %v1419_v9  ;;  %v1180_v49 = vrot.slane %v4632_v5, 4 }
 0x19c   :  { %v3523_v51 = vpop.eup %3522  ;;  %v1457_v62 = vmul.f32 %v3521_v58, %v4573_v1  ;;  %3534 = vpow2.f32 %v1428_v41  ;;  %v810_v1 = vmul.f32 1.442695, %v697_v61  ;;  %v698_v25 = vsub.f32 0.0, %v4647_v3  ;;  %v3327_v58 = vld [vmem:[#allocation3 + $0x64] sm:$0xf] }
 0x19d   :  { %v1169_v38 = vrot.slane %v1168_v21, 2  ;;  %v3525_v57 = vpop.eup %3524  ;;  %3536 = vpow2.f32 %v792_v28  ;;  %v4640_v55 = vmul.f32 %v3523_v51, %v4556_v43  ;;  %v699_v26 = vsub.f32 0.0, %v4650_v27  ;;  %v3223_v28 = vld [vmem:[#allocation3 + $0x88] sm:$0xf0] }
 0x19e   :  { %v3527_v52 = vpop.eup %3526  ;;  %v4634_v60 = vpack.c.bf16 %v1457_v62, %v1456_v54  ;;  %v918_v20 = vadd.f32 1.0, %v3525_v57  ;;  %v4658_v41 = vadd.f32 %v480_v42, %v4484_v50  ;;  %v3178_v10 = vor.u32 %v3316_v29, %v3175_v31 }
 0x19f   :  { %v1170_v4 = vadd.f32 %v1169_v38, %v1168_v21  ;;  %v3529_v30 = vpop.eup %3528  ;;  %v812_v38 = vmul.f32 1.442695, %v698_v25  ;;  %v814_v54 = vmul.f32 1.442695, %v699_v26  ;;  %v3221_v25 = vld [vmem:[#allocation3 + $0x60] sm:$0xf] }
 0x1a0   :  { %v4637_v33 = vpop.f32.mrf.mxu2  ;;  %v3531_v34 = vpop.eup %3530  ;;  %3538 = vrcp.f32 %v918_v20  ;;  %v919_v17 = vadd.f32 1.0, %v3529_v30  ;;  %3243 = vmatmul.msk.bf16.vlgmr.msrb.gmra.mxu1 %vm361_vm2, %v4634_v60  ;;  %3247 = vmatmul.msk.bf16.vlgmr.msrb.gmra.mxu2 %vm361_vm2, %v4634_v60  ;;  %v707_v62 = vsub.f32 0.0, %v4658_v41  ;;  %v4672_v20 = vadd.f32 %v4527_v2, %v4621_v48 }
 0x1a1   :  { %v1171_v37 = vrot.slane %v1170_v4, 1  ;;  %v538_v7 = vpop.f32.mrf.mxu3  ;;  %v3533_v47 = vpop.eup %3532  ;;  %3540 = vpow2.f32 %v794_v63  ;;  %v1077_v21 = vmul.f32 %v3531_v34, %v4564_v18  ;;  %3251 = vmatmul.msk.bf16.vlgmr.msrb.gmra.mxu3 %vm361_vm2, %v4634_v60  ;;  %v1069_v18 = vmul.f32 %v3527_v52, %v4560_v13  ;;  %1718 = vmatpush.bf16.msrb.mxu0 %v3178_v10 }
 0x1a2   :  { %v4652_v43 = vpop.f32.mrf.mxu1  ;;  %3542 = vrcp.f32 %v919_v17  ;;  %v927_v35 = vadd.f32 1.0, %v3533_v47  ;;  %v3535_v12 = vpop.eup %3534 }
 0x1a3   :  { %v1172_v0 = vadd.f32 %v1171_v37, %v1170_v4  ;;  %3544 = vpow2.f32 %v810_v1  ;;  %v1442_v24 = vadd.f32 1.0, %v3535_v12  ;;  %v3537_v51 = vpop.eup %3536  ;;  %v1408_v42 = vpop.f32.mrf.mxu0  ;;  %v830_v4 = vmul.f32 1.442695, %v707_v62 }
 0x1a4   :  { %3546 = vrcp.f32 %v927_v35  ;;  %v928_v57 = vadd.f32 1.0, %v3537_v51  ;;  %v1186_v13 = vadd.f32 %v1077_v21, %v4616_v8  ;;  %3255 = vmatmul.msk.bf16.vlgmr.msrb.gmra.mxu0 %vm361_vm2, %v4634_v60 }
 0x1a5   :  { %v1287_v36 = vrot.slane %v1172_v0, 7  ;;  %3548 = vpow2.f32 %v1430_v19  ;;  %v4681_v19 = vadd.f32 %v4637_v33, %v4533_v32  ;;  %v4684_v0 = vadd.f32 %v538_v7, %v4536_v6  ;;  %v3332_v33 = vld [vmem:[#allocation3 + $0x84] sm:$0xf0] }
 0x1a6   :  { %v3539_v56 = vpop.eup %3538  ;;  %3550 = vrcp.f32 %v1442_v24 }
 0x1a7   :  { %v4666_v22 = vsel %vm1295_vm3, %v4623_v15, %v1287_v36  ;;  %v3541_v63 = vpop.eup %3540  ;;  %v1078_v61 = vmul.f32 %v3539_v56, %v4587_v14  ;;  %3552 = vpow2.f32 %v812_v38  ;;  %v3226_v15 = vor.u32 %v3327_v58, %v3223_v28 }
 0x1a8   :  { %v511_v30 = vpop.f32.mrf.mxu2  ;;  %v3543_v1 = vpop.eup %3542  ;;  %3554 = vrcp.f32 %v928_v57  ;;  %v929_v9 = vadd.f32 1.0, %v3541_v63  ;;  %v1420_v14 = vsub.f32 0.0, %v4672_v20  ;;  %v708_v31 = vsub.f32 0.0, %v4681_v19 }
 0x1a9   :  { %v540_v34 = vpop.f32.mrf.mxu3  ;;  %v3545_v37 = vpop.eup %3544  ;;  %v1079_v52 = vmul.f32 %v3543_v1, %v4592_v40  ;;  %3556 = vpow2.f32 %v814_v54  ;;  %1775 = vmatpush.bf16.msra.mxu2 %v3226_v15  ;;  %v1199_v40 = vadd.f32 %v1078_v61, %v4640_v55  ;;  %v709_v36 = vsub.f32 0.0, %v4684_v0 }
 0x1aa   :  { %v4677_v17 = vpop.f32.mrf.mxu1  ;;  %v3547_v47 = vpop.eup %3546  ;;  %3558 = vrcp.f32 %v929_v9  ;;  %v937_v48 = vadd.f32 1.0, %v3545_v37  ;;  %v1432_v12 = vmul.f32 1.442695, %v1420_v14  ;;  %v832_v28 = vmul.f32 1.442695, %v708_v31 }
 0x1ab   :  { %v3549_v8 = vpop.eup %3548  ;;  %v1087_v35 = vmul.f32 %v3547_v47, %v4595_v46  ;;  %3560 = vpow2.f32 %v830_v4  ;;  %v1212_v24 = vadd.f32 %v1079_v52, %v1069_v18  ;;  %v4696_v46 = vadd.f32 %v4652_v43, %v4484_v50  ;;  %v1411_v57 = vpop.f32.mrf.mxu0 }
 0x1ac   :  { %v3551_v26 = vpop.eup %3550  ;;  %3562 = vrcp.f32 %v937_v48  ;;  %v1443_v29 = vadd.f32 1.0, %v3549_v8  ;;  %v834_v51 = vmul.f32 1.442695, %v709_v36  ;;  %v4701_v56 = vadd.f32 %v4527_v2, %v1408_v42 }
 0x1ad   :  { %v3553_v21 = vpop.eup %3552  ;;  %v4690_v7 = vadd.f32 %v1186_v13, %v1087_v35  ;;  %3564 = vpow2.f32 %v1432_v12  ;;  %v717_v62 = vsub.f32 0.0, %v4696_v46  ;;  %v3222_v18 = vor.u32 %v3332_v33, %v3221_v25 }
 0x1ae   :  { %v3555_v55 = vpop.eup %3554  ;;  %3566 = vrcp.f32 %v1443_v29  ;;  %v938_v58 = vadd.f32 1.0, %v3553_v21  ;;  %v4704_v4 = vadd.f32 %v511_v30, %v4533_v32  ;;  %v4707_v1 = vadd.f32 %v540_v34, %v4536_v6 }
 0x1af   :  { %v3557_v38 = vpop.eup %3556  ;;  %v1088_v54 = vmul.f32 %v3555_v55, %v4603_v53  ;;  %v850_v42 = vmul.f32 1.442695, %v717_v62  ;;  %1746 = vmatpush.bf16.msra.mxu1 %v3222_v18  ;;  %v1421_v14 = vsub.f32 0.0, %v4701_v56  ;;  %v1458_v34 = vmul.f32 %v3551_v26, %v4600_v11 }
 0x1b0   :  { %v514_v63 = vpop.f32.mrf.mxu2  ;;  %v3559_v61 = vpop.eup %3558  ;;  %3568 = vrcp.f32 %v938_v58  ;;  %v939_v43 = vadd.f32 1.0, %v3557_v38  ;;  %v718_v30 = vsub.f32 0.0, %v4704_v4  ;;  %v719_v8 = vsub.f32 0.0, %v4707_v1 }
 0x1b1   :  { %v543_v9 = vpop.f32.mrf.mxu3  ;;  %v3561_v10 = vpop.eup %3560  ;;  %v4709_v53 = vadd.f32 %v1199_v40, %v1088_v54  ;;  %v1089_v15 = vmul.f32 %v3559_v61, %v4608_v45  ;;  %3570 = vpow2.f32 %v832_v28  ;;  %v1434_v35 = vmul.f32 1.442695, %v1421_v14 }
 0x1b2   :  { %v487_v37 = vpop.f32.mrf.mxu1  ;;  %v3563_v13 = vpop.eup %3562  ;;  %3572 = vrcp.f32 %v939_v43  ;;  %v947_v52 = vadd.f32 1.0, %v3561_v10  ;;  %v852_v12 = vmul.f32 1.442695, %v718_v30  ;;  %v854_v31 = vmul.f32 1.442695, %v719_v8 }
 0x1b3   :  { %v3565_v47 = vpop.eup %3564  ;;  %v4715_v48 = vadd.f32 %v1212_v24, %v1089_v15  ;;  %3574 = vpow2.f32 %v834_v51  ;;  %v1097_v25 = vmul.f32 %v3563_v13, %v4619_v44  ;;  %v4722_v11 = vadd.f32 %v4677_v17, %v4484_v50  ;;  %v1413_v18 = vpop.f32.mrf.mxu0 }
 0x1b4   :  { %v3567_v45 = vpop.eup %3566  ;;  %3576 = vrcp.f32 %v947_v52  ;;  %v1444_v40 = vadd.f32 1.0, %v3565_v47  ;;  %v4725_v26 = vadd.f32 %v4527_v2, %v1411_v57  ;;  %v4728_v33 = vadd.f32 %v514_v63, %v4533_v32 }
 0x1b5   :  { %v1459_v29 = vmul.f32 %v3567_v45, %v4629_v39  ;;  %3578 = vpow2.f32 %v850_v42  ;;  %v4733_v44 = vadd.f32 %v543_v9, %v4536_v6  ;;  %v727_v17 = vsub.f32 0.0, %v4722_v11 }
 0x1b6   :  { %v3569_v36 = vpop.eup %3568  ;;  %3580 = vrcp.f32 %v1444_v40  ;;  %v1422_v28 = vsub.f32 0.0, %v4725_v26  ;;  %v4740_v54 = vadd.f32 %v1180_v49, %v4632_v5  ;;  %v728_v62 = vsub.f32 0.0, %v4728_v33 }
 0x1b7   :  { %v3571_v21 = vpop.eup %3570  ;;  %v4730_v24 = vpack.c.bf16 %v1459_v29, %v1458_v34  ;;  %3582 = vpow2.f32 %v1434_v35  ;;  %v1188_v61 = vadd.f32 %v4690_v7, %v1097_v25  ;;  %v870_v9 = vmul.f32 1.442695, %v727_v17 }
 0x1b8   :  { %v516_v39 = vpop.f32.mrf.mxu2  ;;  %v3573_v55 = vpop.eup %3572  ;;  %v948_v58 = vadd.f32 1.0, %v3571_v21  ;;  %3584 = vpow2.f32 %v852_v12  ;;  %v1098_v49 = vmul.f32 %v3569_v36, %v4647_v3  ;;  %v1436_v15 = vmul.f32 1.442695, %v1422_v28 }
 0x1b9   :  { %v545_v51 = vpop.f32.mrf.mxu3  ;;  %v3575_v38 = vpop.eup %3574  ;;  %3586 = vpow2.f32 %v854_v31  ;;  %3244 = vmatmul.msk.bf16.gmra.mxu1 %vm361_vm2, %v4730_v24  ;;  %3248 = vmatmul.msk.bf16.gmra.mxu2 %vm361_vm2, %v4730_v24  ;;  %v729_v42 = vsub.f32 0.0, %v4733_v44  ;;  %v4756_v14 = vadd.f32 %v487_v37, %v4484_v50  ;;  %v4759_v7 = vadd.f32 %v4527_v2, %v1413_v18 }
 0x1ba   :  { %v4747_v57 = vpop.f32.mrf.mxu1  ;;  %v3577_v63 = vpop.eup %3576  ;;  %3588 = vrcp.f32 %v948_v58  ;;  %v949_v43 = vadd.f32 1.0, %v3575_v38  ;;  %3252 = vmatmul.msk.bf16.gmra.mxu3 %vm361_vm2, %v4730_v24  ;;  %v1099_v47 = vmul.f32 %v3573_v55, %v4650_v27  ;;  %3256 = vmatmul.msk.bf16.gmra.mxu0 %vm361_vm2, %v4730_v24  ;;  %v872_v3 = vmul.f32 1.442695, %v728_v62 }
 0x1bb   :  { %v3579_v5 = vpop.eup %3578  ;;  %v1107_v10 = vmul.f32 %v3577_v63, %v4658_v41  ;;  %v737_v45 = vsub.f32 0.0, %v4756_v14  ;;  %v1423_v50 = vsub.f32 0.0, %v4759_v7  ;;  %v4769_v40 = vadd.f32 %v516_v39, %v4533_v32  ;;  %v238_v32 = vld [vmem:[%s5650_s4 + $0x8] sm:$0x3]  ;;  %v3229_v63 = vld [vmem:[#allocation3 + $0x68] sm:$0xf] }
 0x1bc   :  { %v3581_v13 = vpop.eup %3580  ;;  %3590 = vrcp.f32 %v949_v43  ;;  %v957_v52 = vadd.f32 1.0, %v3579_v5  ;;  %v4772_v27 = vadd.f32 %v545_v51, %v4536_v6  ;;  %v1201_v25 = vadd.f32 %v4709_v53, %v1098_v49  ;;  %v3328_v5 = vld [vmem:[#allocation3 + $0x6c] sm:$0xf] }
 0x1bd   :  { %v3583_v30 = vpop.eup %3582  ;;  %v4762_v34 = vadd.f32 %v1188_v61, %v1107_v10  ;;  %3592 = vpow2.f32 %v870_v9  ;;  %v874_v31 = vmul.f32 1.442695, %v729_v42  ;;  %v890_v55 = vmul.f32 1.442695, %v737_v45  ;;  %v3333_v61 = vld [vmem:[#allocation3 + $0x8c] sm:$0xf0] }
 0x1be   :  { %v3585_v41 = vpop.eup %3584  ;;  %3594 = vrcp.f32 %v957_v52  ;;  %v1445_v8 = vadd.f32 1.0, %v3583_v30  ;;  %v738_v58 = vsub.f32 0.0, %v4769_v40  ;;  %v1214_v53 = vadd.f32 %v4715_v48, %v1099_v47  ;;  %v3231_v30 = vld [vmem:[#allocation3 + $0x90] sm:$0xf0] }
 0x1bf   :  { %v3587_v37 = vpop.eup %3586  ;;  %v958_v2 = vadd.f32 1.0, %v3585_v41  ;;  %3596 = vpow2.f32 %v1436_v15  ;;  %v739_v17 = vsub.f32 0.0, %v4772_v27  ;;  %v1438_v18 = vmul.f32 1.442695, %v1423_v50 }
 0x1c0   :  { %v615_v35 = vpop.f32.mrf.mxu2  ;;  %v3589_v12 = vpop.eup %3588  ;;  %3598 = vrcp.f32 %v1445_v8  ;;  %v959_v29 = vadd.f32 1.0, %v3587_v37  ;;  %v3230_v9 = vor.u32 %v3333_v61, %v3229_v63  ;;  %v4794_v49 = vperm.slane %v238_v32, 0  ;;  %v3183_v37 = vld [vmem:[#allocation3 + $0x38] sm:$0xf0] }
 0x1c1   :  { %v4775_v36 = vpop.f32.mrf.mxu3  ;;  %v1108_v21 = vmul.f32 %v3589_v12, %v4681_v19  ;;  %3600 = vrcp.f32 %v958_v2  ;;  %v4050_v19 = vld [vmem:[%s5650_s4] sm:$0xff]  ;;  %v1460_v15 = vmul.f32 %v3581_v13, %v4672_v20  ;;  %v892_v52 = vmul.f32 1.442695, %v738_v58  ;;  %v3317_v13 = vld [vmem:[#allocation3 + $0x14] sm:$0xf] }
 0x1c2   :  { %v4782_v6 = vpop.f32.mrf.mxu1  ;;  %v3591_v39 = vpop.eup %3590  ;;  %3602 = vrcp.f32 %v959_v29  ;;  %v4789_v28 = vperm.slane %v4050_v19, 7  ;;  %1804 = vmatpush.bf16.msra.mxu3 %v3230_v9  ;;  %v894_v47 = vmul.f32 1.442695, %v739_v17  ;;  %v3234_v41 = vor.u32 %v3328_v5, %v3231_v30  ;;  %v3181_v17 = vld [vmem:[#allocation3 + $0x10] sm:$0xf] }
 0x1c3   :  { %v3593_v51 = vpop.eup %3592  ;;  %v4791_v38 = vadd.f32 %v1201_v25, %v1108_v21  ;;  %v1109_v62 = vmul.f32 %v3591_v39, %v4684_v0  ;;  %3604 = vpow2.f32 %v872_v3  ;;  %v3186_v25 = vor.u32 %v3317_v13, %v3183_v37  ;;  %v3322_v19 = vld [vmem:[#allocation3 + $0x34] sm:$0xf0] }
 0x1c4   :  { %v3595_v43 = vpop.eup %3594  ;;  %v967_v48 = vadd.f32 1.0, %v3593_v51  ;;  %3606 = vpow2.f32 %v874_v31  ;;  %v4801_v3 = vadd.f32 %v4747_v57, %v4789_v28  ;;  %1833 = vmatpush.bf16.msra.mxu0 %v3234_v41  ;;  %v4806_v29 = vadd.f32 %v615_v35, %v4794_v49 }
 0x1c5   :  { %v3597_v10 = vpop.eup %3596  ;;  %v4797_v42 = vadd.f32 %v1214_v53, %v1109_v62  ;;  %3608 = vpow2.f32 %v890_v55  ;;  %v1117_v45 = vmul.f32 %v3595_v43, %v4696_v46  ;;  %v4808_v31 = vperm.slane %v238_v32, 1  ;;  %1776 = vmatpush.bf16.msra.mxu2 %v3186_v25 }
 0x1c6   :  { %v3599_v0 = vpop.eup %3598  ;;  %3610 = vrcp.f32 %v967_v48  ;;  %v1446_v20 = vadd.f32 1.0, %v3597_v10  ;;  %v671_v46 = vsub.f32 0.0, %v4801_v3  ;;  %v980_v39 = vadd.f32 1.0, %v4612_v59 }
 0x1c7   :  { %v3601_v8 = vpop.eup %3600  ;;  %v1461_v50 = vmul.f32 %v3599_v0, %v4701_v56  ;;  %3612 = vpow2.f32 %v1438_v18  ;;  %v1182_v32 = vrot.slane %v4740_v54, 2  ;;  %v1190_v51 = vadd.f32 %v4762_v34, %v1117_v45 }
 0x1c8   :  { %v617_v2 = vpop.f32.mrf.mxu2  ;;  %v3603_v12 = vpop.eup %3602  ;;  %3614 = vpow2.f32 %v892_v52  ;;  %v672_v63 = vsub.f32 0.0, %v4806_v29  ;;  %v4825_v61 = vadd.f32 %v4775_v36, %v4808_v31  ;;  %v758_v48 = vmul.f32 1.442695, %v671_v46 }
 0x1c9   :  { %v646_v57 = vpop.f32.mrf.mxu3  ;;  %v3605_v21 = vpop.eup %3604  ;;  %v4810_v55 = vpack.c.bf16 %v1461_v50, %v1460_v15  ;;  %3616 = vpow2.f32 %v894_v47  ;;  %v3182_v9 = vor.u32 %v3322_v19, %v3181_v17  ;;  %v4832_v10 = vadd.f32 %v4782_v6, %v4789_v28 }
 0x1ca   :  { %v591_v56 = vpop.f32.mrf.mxu1  ;;  %v3607_v58 = vpop.eup %3606  ;;  %v968_v53 = vadd.f32 1.0, %v3605_v21  ;;  %3618 = vrcp.f32 %v1446_v20  ;;  %v4835_v15 = vadd.f32 %v617_v2, %v4794_v49  ;;  %v1183_v52 = vadd.f32 %v1182_v32, %v4740_v54 }
 0x1cb   :  { %v3609_v35 = vpop.eup %3608  ;;  %v969_v62 = vadd.f32 1.0, %v3607_v58  ;;  %3245 = vmatmul.msk.bf16.gmra.mxu1 %vm361_vm2, %v4810_v55  ;;  %3249 = vmatmul.msk.bf16.gmra.mxu2 %vm361_vm2, %v4810_v55  ;;  %v1118_v41 = vmul.f32 %v3601_v8, %v4704_v4  ;;  %v673_v6 = vsub.f32 0.0, %v4825_v61  ;;  %v760_v37 = vmul.f32 1.442695, %v672_v63 }
 0x1cc   :  { %v3611_v18 = vpop.eup %3610  ;;  %3620 = vrcp.f32 %v968_v53  ;;  %v977_v59 = vadd.f32 1.0, %v3609_v35  ;;  %3253 = vmatmul.msk.bf16.gmra.mxu3 %vm361_vm2, %v4810_v55  ;;  %3257 = vmatmul.msk.bf16.gmra.mxu0 %vm361_vm2, %v4810_v55  ;;  %v4842_v2 = vadd.f32 %v646_v57, %v4808_v31  ;;  %v682_v25 = vsub.f32 0.0, %v4835_v15 }
 0x1cd   :  { %v3613_v34 = vpop.eup %3612  ;;  %v1127_v43 = vmul.f32 %v3611_v18, %v4722_v11  ;;  %3622 = vrcp.f32 %v969_v62  ;;  %v1119_v11 = vmul.f32 %v3603_v12, %v4707_v1  ;;  %1747 = vmatpush.bf16.msra.mxu1 %v3182_v9  ;;  %v681_v12 = vsub.f32 0.0, %v4832_v10 }
 0x1ce   :  { %3624 = vrcp.f32 %v977_v59  ;;  %v1447_v5 = vadd.f32 1.0, %v3613_v34  ;;  %v3615_v36 = vpop.eup %3614  ;;  %v1184_v8 = vrot.slane %v1183_v52, 1  ;;  %v4848_v46 = vadd.f32 %v591_v56, %v4789_v28 }
 0x1cf   :  { %3626 = vrcp.f32 %v980_v39  ;;  %v1191_v30 = vadd.f32 %v1190_v51, %v1127_v43  ;;  %v3617_v47 = vpop.eup %3616  ;;  %v978_v45 = vadd.f32 1.0, %v3615_v36  ;;  %v1216_v21 = vadd.f32 %v4797_v42, %v1119_v11 }
 0x1d0   :  { %v620_v0 = vpop.f32.mrf.mxu2  ;;  %3628 = vrcp.f32 %v1447_v5  ;;  %v3619_v20 = vpop.eup %3618  ;;  %v979_v13 = vadd.f32 1.0, %v3617_v47  ;;  %v762_v53 = vmul.f32 1.442695, %v673_v6  ;;  %v1203_v35 = vadd.f32 %v4791_v38, %v1118_v41  ;;  %v3189_v5 = vld [vmem:[#allocation3 + $0x18] sm:$0xf] }
 0x1d1   :  { %v649_v50 = vpop.f32.mrf.mxu3  ;;  %3630 = vpow2.f32 %v758_v48  ;;  %v4853_v17 = vadd.f32 %v620_v0, %v4794_v49  ;;  %v683_v42 = vsub.f32 0.0, %v4842_v2  ;;  %v1462_v51 = vmul.f32 %v3619_v20, %v4725_v26  ;;  %v3323_v41 = vld [vmem:[#allocation3 + $0x3c] sm:$0xf0] }
 0x1d2   :  { %v593_v54 = vpop.f32.mrf.mxu1  ;;  %v3621_v1 = vpop.eup %3620  ;;  %3632 = vrcp.f32 %v978_v45  ;;  %v780_v18 = vmul.f32 1.442695, %v682_v25  ;;  %v691_v34 = vsub.f32 0.0, %v4848_v46  ;;  %v4864_v43 = vadd.f32 %v649_v50, %v4808_v31 }
 0x1d3   :  { %v3623_v4 = vpop.eup %3622  ;;  %3634 = vrcp.f32 %v979_v13  ;;  %v1128_v39 = vmul.f32 %v3621_v1, %v4728_v33  ;;  %v778_v33 = vmul.f32 1.442695, %v681_v12  ;;  %v692_v9 = vsub.f32 0.0, %v4853_v17 }
 0x1d4   :  { %v3625_v58 = vpop.eup %3624  ;;  %v1129_v57 = vmul.f32 %v3623_v4, %v4733_v44  ;;  %3636 = vpow2.f32 %v760_v37  ;;  %v4868_v26 = vadd.f32 %v593_v54, %v4789_v28  ;;  %v782_v47 = vmul.f32 1.442695, %v683_v42 }
 0x1d5   :  { %v4855_v19 = vpop.eup %3626  ;;  %v1137_v32 = vmul.f32 %v3625_v58, %v4756_v14  ;;  %v1204_v48 = vadd.f32 %v1203_v35, %v1128_v39  ;;  %3638 = vpow2.f32 %v762_v53  ;;  %v4875_v6 = vadd.f32 %v1184_v8, %v1183_v52 }
 0x1d6   :  { %v3629_v56 = vpop.eup %3628  ;;  %v1217_v62 = vadd.f32 %v1216_v21, %v1129_v57  ;;  %3640 = vpow2.f32 %v778_v33  ;;  %v798_v1 = vmul.f32 1.442695, %v691_v34  ;;  %v800_v52 = vmul.f32 1.442695, %v692_v9 }
 0x1d7   :  { %v3631_v44 = vpop.eup %3630  ;;  %v1192_v59 = vadd.f32 %v1191_v30, %v1137_v32  ;;  %v1463_v63 = vmul.f32 %v3629_v56, %v4759_v7  ;;  %3642 = vpow2.f32 %v780_v18  ;;  %v3190_v12 = vor.u32 %v3323_v41, %v3189_v5 }
 0x1d8   :  { %v622_v38 = vpop.f32.mrf.mxu2  ;;  %v3633_v14 = vpop.eup %3632  ;;  %v911_v20 = vadd.f32 1.0, %v3631_v44  ;;  %3644 = vpow2.f32 %v782_v47  ;;  %v701_v8 = vsub.f32 0.0, %v4868_v26 }
 0x1d9   :  { %v651_v36 = vpop.f32.mrf.mxu3  ;;  %v3635_v11 = vpop.eup %3634  ;;  %v1193_v30 = vrot.slane %v1192_v59, 4  ;;  %v4870_v0 = vpack.c.bf16 %v1463_v63, %v1462_v51  ;;  %v1138_v7 = vmul.f32 %v3633_v14, %v4769_v40  ;;  %1805 = vmatpush.bf16.msra.mxu3 %v3190_v12  ;;  %v4889_v57 = vadd.f32 %v622_v38, %v4794_v49 }
 0x1da   :  { %v4873_v45 = vpop.f32.mrf.mxu1  ;;  %v1139_v50 = vmul.f32 %v3635_v11, %v4772_v27  ;;  %v3637_v13 = vpop.eup %3636  ;;  %v693_v27 = vsub.f32 0.0, %v4864_v43  ;;  %3646 = vrcp.f32 %v911_v20  ;;  %v1288_v38 = vrot.slane %v4875_v6, 6 }
 0x1db   :  { %v1194_v37 = vadd.f32 %v1193_v30, %v1192_v59  ;;  %v1205_v54 = vadd.f32 %v1204_v48, %v1138_v7  ;;  %3246 = vmatmul.msk.bf16.gmra.mxu1 %vm361_vm2, %v4870_v0  ;;  %3250 = vmatmul.msk.bf16.gmra.mxu2 %vm361_vm2, %v4870_v0  ;;  %v3639_v21 = vpop.eup %3638  ;;  %v912_v39 = vadd.f32 1.0, %v3637_v13  ;;  %3648 = vpow2.f32 %v798_v1 }
 0x1dc   :  { %v1218_v40 = vadd.f32 %v1217_v62, %v1139_v50  ;;  %3254 = vmatmul.msk.bf16.gmra.mxu3 %vm361_vm2, %v4870_v0  ;;  %3258 = vmatmul.msk.bf16.gmra.mxu0 %vm361_vm2, %v4870_v0  ;;  %v3641_v42 = vpop.eup %3640  ;;  %3650 = vpow2.f32 %v800_v52  ;;  %v802_v51 = vmul.f32 1.442695, %v693_v27  ;;  %v818_v59 = vmul.f32 1.442695, %v701_v8 }
 0x1dd   :  { %v1195_v25 = vrot.slane %v1194_v37, 2  ;;  %v1206_v4 = vrot.slane %v1205_v54, 4  ;;  %v3643_v33 = vpop.eup %3642  ;;  %v702_v63 = vsub.f32 0.0, %v4889_v57  ;;  %3652 = vrcp.f32 %v912_v39 }
 0x1de   :  { %v1219_v58 = vrot.slane %v1218_v40, 4  ;;  %v913_v48 = vadd.f32 1.0, %v3639_v21  ;;  %v3645_v9 = vpop.eup %3644  ;;  %v921_v30 = vadd.f32 1.0, %v3641_v42  ;;  %v4900_v7 = vadd.f32 %v651_v36, %v4808_v31 }
 0x1df   :  { %v1196_v53 = vadd.f32 %v1195_v25, %v1194_v37  ;;  %v1207_v35 = vadd.f32 %v1206_v4, %v1205_v54  ;;  %v922_v50 = vadd.f32 1.0, %v3643_v33  ;;  %3654 = vpow2.f32 %v802_v51  ;;  %v3318_v25 = vld [vmem:[#allocation3 + $0x1c] sm:$0xf]  ;;  %v3191_v4 = vld [vmem:[#allocation3 + $0x40] sm:$0xf0] }
 0x1e0   :  { %v4891_v32 = vpop.f32.mrf.mxu2  ;;  %v1220_v56 = vadd.f32 %v1219_v58, %v1218_v40  ;;  %v4902_v47 = vpop.eup %3646  ;;  %3656 = vpow2.f32 %v818_v59  ;;  %v820_v6 = vmul.f32 1.442695, %v702_v63  ;;  %v703_v40 = vsub.f32 0.0, %v4900_v7 }
 0x1e1   :  { %v4893_v62 = vpop.f32.mrf.mxu3  ;;  %v1197_v18 = vrot.slane %v1196_v53, 1  ;;  %v1208_v44 = vrot.slane %v1207_v35, 2  ;;  %v3649_v20 = vpop.eup %3648  ;;  %3658 = vrcp.f32 %v913_v48  ;;  %v4907_v36 = vadd.f32 %v4873_v45, %v4789_v28  ;;  %v3239_v45 = vld [vmem:[#allocation3 + $0x98] sm:$0xf0]  ;;  %v3237_v48 = vld [vmem:[#allocation3 + $0x70] sm:$0xf] }
 0x1e2   :  { %v4896_v34 = vpop.f32.mrf.mxu1  ;;  %v1221_v14 = vrot.slane %v1220_v56, 2  ;;  %v3651_v54 = vpop.eup %3650  ;;  %3660 = vrcp.f32 %v921_v30  ;;  %v923_v12 = vadd.f32 1.0, %v3645_v9  ;;  %v822_v59 = vmul.f32 1.442695, %v703_v40  ;;  %v3334_v9 = vld [vmem:[#allocation3 + $0x94] sm:$0xf0] }
 0x1e3   :  { %v1198_v5 = vadd.f32 %v1197_v18, %v1196_v53  ;;  %v1209_v11 = vadd.f32 %v1208_v44, %v1207_v35  ;;  %v4910_v21 = vpop.eup %3652  ;;  %3662 = vrcp.f32 %v922_v50  ;;  %v931_v53 = vadd.f32 1.0, %v3649_v20  ;;  %v3329_v35 = vld [vmem:[#allocation3 + $0x74] sm:$0xf] }
 0x1e4   :  { %v1222_v41 = vadd.f32 %v1221_v14, %v1220_v56  ;;  %v932_v51 = vadd.f32 1.0, %v3651_v54  ;;  %3664 = vpow2.f32 %v820_v6  ;;  %v711_v63 = vsub.f32 0.0, %v4907_v36 }
 0x1e5   :  { %v1289_v13 = vrot.slane %v1198_v5, 5  ;;  %v1210_v37 = vrot.slane %v1209_v11, 1  ;;  %v3655_v18 = vpop.eup %3654  ;;  %3666 = vrcp.f32 %v923_v12 }
 0x1e6   :  { %v1223_v1 = vrot.slane %v1222_v41, 1  ;;  %v3657_v14 = vpop.eup %3656  ;;  %3668 = vrcp.f32 %v931_v53  ;;  %v838_v30 = vmul.f32 1.442695, %v711_v63  ;;  %v933_v20 = vadd.f32 1.0, %v3655_v18 }
 0x1e7   :  { %v1298_v52 = vsel %vm1297_vm4, %v1288_v38, %v1289_v13  ;;  %v1211_v27 = vadd.f32 %v1210_v37, %v1209_v11  ;;  %v3194_v38 = vor.u32 %v3318_v25, %v3191_v4  ;;  %v4921_v5 = vpop.eup %3658  ;;  %3670 = vrcp.f32 %v932_v51 }
 0x1e8   :  { %v627_v8 = vpop.f32.mrf.mxu2  ;;  %v4914_v58 = vsel %vm132_vm0, %v4666_v22, %v1298_v52  ;;  %v1224_v39 = vadd.f32 %v1223_v1, %v1222_v41  ;;  %v3242_v22 = vor.u32 %v3329_v35, %v3239_v45  ;;  %v4930_v41 = vadd.f32 %v4891_v32, %v4794_v49  ;;  %v4932_v50 = vpop.eup %3660 }
 0x1e9   :  { %v656_v42 = vpop.f32.mrf.mxu3  ;;  %v1290_v56 = vrot.slane %v1211_v27, 4  ;;  %1834 = vmatpush.bf16.msra.mxu0 %v3194_v38  ;;  %v4936_v13 = vadd.f32 %v4893_v62, %v4808_v31  ;;  %v4940_v37 = vadd.f32 %v4896_v34, %v4789_v28  ;;  %v4942_v6 = vpop.eup %3662  ;;  %v941_v54 = vadd.f32 1.0, %v3657_v14 }
 0x1ea   :  { %v601_v33 = vpop.f32.mrf.mxu1  ;;  %v1291_v44 = vrot.slane %v1224_v39, 3  ;;  %1891 = vmatpush.bf16.msrb.mxu2 %v3242_v22  ;;  %3672 = vpow2.f32 %v822_v59  ;;  %v712_v32 = vsub.f32 0.0, %v4930_v41  ;;  %v3238_v1 = vor.u32 %v3334_v9, %v3237_v48  ;;  %v3665_v40 = vpop.eup %3664 }
 0x1eb   :  { %3259 = vmatmul.msk.bf16.vlgmr.msra.gmra.mxu1 %vm361_vm2, %v4634_v60  ;;  %3263 = vmatmul.msk.bf16.vlgmr.msra.gmra.mxu2 %vm361_vm2, %v4634_v60  ;;  %3674 = vpow2.f32 %v838_v30  ;;  %v713_v52 = vsub.f32 0.0, %v4936_v13  ;;  %v721_v62 = vsub.f32 0.0, %v4940_v37  ;;  %v4950_v27 = vadd.f32 %v627_v8, %v4794_v49  ;;  %v4961_v35 = vpop.eup %3666 }
 0x1ec   :  { %v4924_v11 = vsel %vm1300_vm5, %v1290_v56, %v1291_v44  ;;  %3267 = vmatmul.msk.bf16.vlgmr.msra.gmra.mxu3 %vm361_vm2, %v4634_v60  ;;  %3271 = vmatmul.msk.bf16.vlgmr.msra.gmra.mxu0 %vm361_vm2, %v4634_v60  ;;  %v840_v12 = vmul.f32 1.442695, %v712_v32  ;;  %v4953_v25 = vadd.f32 %v656_v42, %v4808_v31  ;;  %v4956_v4 = vadd.f32 %v601_v33, %v4789_v28  ;;  %v4964_v51 = vpop.eup %3668 }
 0x1ed   :  { %1862 = vmatpush.bf16.msrb.mxu1 %v3238_v1  ;;  %3676 = vrcp.f32 %v933_v20  ;;  %v842_v45 = vmul.f32 1.442695, %v713_v52  ;;  %v858_v56 = vmul.f32 1.442695, %v721_v62  ;;  %v722_v8 = vsub.f32 0.0, %v4950_v27  ;;  %v4968_v33 = vpop.eup %3670 }
 0x1ee   :  { %3678 = vpow2.f32 %v840_v12  ;;  %v723_v42 = vsub.f32 0.0, %v4953_v25  ;;  %v731_v18 = vsub.f32 0.0, %v4956_v4  ;;  %v942_v44 = vadd.f32 1.0, %v3665_v40 }
 0x1ef   :  { %3680 = vpow2.f32 %v842_v45  ;;  %v860_v59 = vmul.f32 1.442695, %v722_v8  ;;  %v4135_v1 = vmov 0.0  }
 0x1f0   :  { %v630_v34 = vpop.f32.mrf.mxu2  ;;  %v3673_v14 = vpop.eup %3672  ;;  %3682 = vrcp.f32 %v941_v54  ;;  %v862_v22 = vmul.f32 1.442695, %v723_v42  ;;  %v878_v30 = vmul.f32 1.442695, %v731_v18  ;;  %64 = vst [vmem:[#allocation2] sm:$0xff] %v4135_v1 }
 0x1f1   :  { %v4959_v39 = vadd.f32 %v630_v34, %v4794_v49  ;;  %v659_v53 = vpop.f32.mrf.mxu3  ;;  %v3675_v9 = vpop.eup %3674  ;;  %3684 = vpow2.f32 %v858_v56  ;;  %v943_v54 = vadd.f32 1.0, %v3673_v14  ;;  %65 = vst [vmem:[#allocation2 + $0x8] sm:$0xff] %v4135_v1 }
 0x1f2   :  { %v603_v38 = vpop.f32.mrf.mxu1  ;;  %v4972_v48 = vadd.f32 %v659_v53, %v4808_v31  ;;  %3686 = vpow2.f32 %v860_v59  ;;  %v951_v12 = vadd.f32 1.0, %v3675_v9  ;;  %66 = vst [vmem:[#allocation2 + $0x10] sm:$0xf] %v4135_v1 }
 0x1f3   :  { %v732_v63 = vsub.f32 0.0, %v4959_v39  ;;  %v4976_v40 = vadd.f32 %v603_v38, %v4789_v28  ;;  %v4978_v52 = vpop.eup %3676  ;;  %3688 = vrcp.f32 %v942_v44 }
 0x1f4   :  { %v733_v32 = vsub.f32 0.0, %v4972_v48  ;;  %v3679_v34 = vpop.eup %3678  ;;  %3690 = vpow2.f32 %v862_v22 }
 0x1f5   :  { %v880_v20 = vmul.f32 1.442695, %v732_v63  ;;  %v741_v53 = vsub.f32 0.0, %v4976_v40  ;;  %v3681_v56 = vpop.eup %3680  ;;  %3692 = vpow2.f32 %v878_v30  ;;  %v952_v44 = vadd.f32 1.0, %v3679_v34 }
 0x1f6   :  { %v882_v8 = vmul.f32 1.442695, %v733_v32  ;;  %v3683_v18 = vpop.eup %3682  ;;  %v1140_v63 = vmul.f32 %v4855_v19, %v4547_v23  ;;  %v953_v38 = vadd.f32 1.0, %v3681_v56 }
 0x1f7   :  { %3694 = vpow2.f32 %v880_v20  ;;  %v3685_v59 = vpop.eup %3684 }
 0x1f8   :  { %v632_v62 = vpop.f32.mrf.mxu2  ;;  %3696 = vrcp.f32 %v943_v54  ;;  %v961_v9 = vadd.f32 1.0, %v3685_v59  ;;  %v1231_v32 = vadd.f32 %v4580_v16, %v1140_v63  ;;  %v1071_v63 = vmul.f32 %v4902_v47, %v4801_v3 }
 0x1f9   :  { %v661_v45 = vpop.f32.mrf.mxu3  ;;  %v4982_v42 = vadd.f32 %v632_v62, %v4794_v49  ;;  %v3687_v49 = vpop.eup %3686  ;;  %3698 = vrcp.f32 %v951_v12  ;;  %v1101_v3 = vmul.f32 %v3683_v18, %v4868_v26  ;;  %v1093_v26 = vmul.f32 %v4978_v52, %v4864_v43  ;;  %v3319_v18 = vld [vmem:[#allocation3 + $0x24] sm:$0xf] }
 0x1fa   :  { %v4985_v28 = vadd.f32 %v661_v45, %v4808_v31  ;;  %v898_v31 = vmul.f32 1.442695, %v741_v53  ;;  %v3689_v22 = vpop.eup %3688  ;;  %3700 = vpow2.f32 %v882_v8  ;;  %v962_v30 = vadd.f32 1.0, %v3687_v49 }
 0x1fb   :  { %3260 = vmatmul.msk.bf16.gmra.mxu1 %vm361_vm2, %v4730_v24  ;;  %3264 = vmatmul.msk.bf16.gmra.mxu2 %vm361_vm2, %v4730_v24  ;;  %v742_v14 = vsub.f32 0.0, %v4982_v42  ;;  %v3691_v19 = vpop.eup %3690  ;;  %3702 = vrcp.f32 %v952_v44  ;;  %v1081_v45 = vmul.f32 %v4932_v50, %v4832_v10  ;;  %v1232_v44 = vrot.slane %v1231_v32, 4 }
 0x1fc   :  { %3268 = vmatmul.msk.bf16.gmra.mxu3 %vm361_vm2, %v4730_v24  ;;  %v743_v23 = vsub.f32 0.0, %v4985_v28  ;;  %v3693_v20 = vpop.eup %3692  ;;  %3704 = vrcp.f32 %v953_v38  ;;  %3272 = vmatmul.msk.bf16.gmra.mxu0 %vm361_vm2, %v4730_v24  ;;  %v963_v56 = vadd.f32 1.0, %v3691_v19  ;;  %v1091_v38 = vmul.f32 %v4964_v51, %v4848_v46 }
 0x1fd   :  { %v3695_v1 = vpop.eup %3694  ;;  %v971_v54 = vadd.f32 1.0, %v3693_v20  ;;  %3706 = vpow2.f32 %v898_v31  ;;  %v900_v62 = vmul.f32 1.442695, %v742_v14  ;;  %v1082_v14 = vmul.f32 %v4942_v6, %v4835_v15 }
 0x1fe   :  { %v3697_v34 = vpop.eup %3696  ;;  %3708 = vrcp.f32 %v961_v9  ;;  %v902_v12 = vmul.f32 1.442695, %v743_v23  ;;  %v972_v16 = vadd.f32 1.0, %v3695_v1  ;;  %v1083_v10 = vmul.f32 %v4961_v35, %v4842_v2 }
 0x1ff   :  { %v3699_v53 = vpop.eup %3698  ;;  %3710 = vrcp.f32 %v962_v30  ;;  %v1072_v9 = vmul.f32 %v4910_v21, %v4806_v29  ;;  %v1238_v23 = vadd.f32 %v1081_v45, %v1071_v63  ;;  %v1073_v46 = vmul.f32 %v4921_v5, %v4825_v61  ;;  %v3199_v61 = vld [vmem:[#allocation3 + $0x48] sm:$0xf0]  ;;  %v3197_v5 = vld [vmem:[#allocation3 + $0x20] sm:$0xf] }
 0x200   :  { %v3701_v8 = vpop.eup %3700  ;;  %3712 = vrcp.f32 %v971_v54  ;;  %v1092_v51 = vmul.f32 %v4968_v33, %v4853_v17  ;;  %v1233_v2 = vadd.f32 %v1232_v44, %v1231_v32  ;;  %v1111_v19 = vmul.f32 %v3699_v53, %v4907_v36  ;;  %v3324_v54 = vld [vmem:[#allocation3 + $0x44] sm:$0xf0] }
 0x201   :  { %v3703_v59 = vpop.eup %3702  ;;  %v973_v49 = vadd.f32 1.0, %v3701_v8  ;;  %3714 = vpow2.f32 %v900_v62  ;;  %v1239_v35 = vadd.f32 %v1238_v23, %v1091_v38  ;;  %v1251_v21 = vadd.f32 %v1082_v14, %v1072_v9 }
 0x202   :  { %v3705_v31 = vpop.eup %3704  ;;  %3716 = vpow2.f32 %v902_v12  ;;  %v1264_v30 = vadd.f32 %v1083_v10, %v1073_v46  ;;  %v1102_v33 = vmul.f32 %v3689_v22, %v4889_v57  ;;  %v3202_v1 = vor.u32 %v3319_v18, %v3199_v61 }
 0x203   :  { %v3707_v50 = vpop.eup %3706  ;;  %3718 = vrcp.f32 %v963_v56  ;;  %v1240_v17 = vadd.f32 %v1239_v35, %v1101_v3  ;;  %v1252_v62 = vadd.f32 %v1251_v21, %v1092_v51  ;;  %v1103_v12 = vmul.f32 %v3697_v34, %v4900_v7 }
 0x204   :  { %v3709_v47 = vpop.eup %3708  ;;  %3720 = vrcp.f32 %v972_v16  ;;  %v981_v15 = vadd.f32 1.0, %v3707_v50  ;;  %v3198_v43 = vor.u32 %v3324_v54, %v3197_v5  ;;  %v1112_v57 = vmul.f32 %v3703_v59, %v4930_v41  ;;  %1892 = vmatpush.bf16.msrb.mxu2 %v3202_v1 }
 0x205   :  { %v3711_v6 = vpop.eup %3710  ;;  %3722 = vrcp.f32 %v973_v49  ;;  %v1121_v32 = vmul.f32 %v3709_v47, %v4940_v37  ;;  %v1241_v45 = vadd.f32 %v1240_v17, %v1111_v19  ;;  %v1265_v34 = vadd.f32 %v1264_v30, %v1093_v26 }
 0x206   :  { %v3713_v29 = vpop.eup %3712  ;;  %3724 = vrcp.f32 %v981_v15  ;;  %v1113_v56 = vmul.f32 %v3705_v31, %v4936_v13  ;;  %1863 = vmatpush.bf16.msrb.mxu1 %v3198_v43  ;;  %v1253_v44 = vadd.f32 %v1252_v62, %v1102_v33  ;;  %v1122_v63 = vmul.f32 %v3711_v6, %v4950_v27 }
 0x207   :  { %v3715_v20 = vpop.eup %3714  ;;  %v1131_v37 = vmul.f32 %v3713_v29, %v4956_v4  ;;  %v1242_v16 = vadd.f32 %v1241_v45, %v1121_v32  ;;  %v1234_v59 = vrot.slane %v1233_v2, 2  ;;  %v1266_v4 = vadd.f32 %v1265_v34, %v1103_v12 }
 0x208   :  { %v3717_v36 = vpop.eup %3716  ;;  %v982_v53 = vadd.f32 1.0, %v3715_v20  ;;  %v1254_v49 = vadd.f32 %v1253_v44, %v1112_v57 }
 0x209   :  { %v3719_v52 = vpop.eup %3718  ;;  %v983_v22 = vadd.f32 1.0, %v3717_v36  ;;  %v1243_v14 = vadd.f32 %v1242_v16, %v1131_v37  ;;  %v1267_v10 = vadd.f32 %v1266_v4, %v1113_v56  ;;  %v1235_v46 = vadd.f32 %v1234_v59, %v1233_v2  ;;  %v5044_v2 = vld [vmem:[%s5650_s4] sm:$0xff]  ;;  %v1146_v16 = vld [vmem:[#allocation2 + $0x10] ss:$2 sm:$0x3] }
 0x20a   :  { %v3721_v7 = vpop.eup %3720  ;;  %3726 = vrcp.f32 %v982_v53  ;;  %v1123_v38 = vmul.f32 %v3719_v52, %v4953_v25  ;;  %v1255_v9 = vadd.f32 %v1254_v49, %v1122_v63  ;;  %v5053_v17 = vperm.slane %v5044_v2, 0  ;;  %v1144_v52 = vld [vmem:[#allocation2] ss:$2 sm:$0xff] }
 0x20b   :  { %3261 = vmatmul.msk.bf16.gmra.mxu1 %vm361_vm2, %v4810_v55  ;;  %3265 = vmatmul.msk.bf16.gmra.mxu2 %vm361_vm2, %v4810_v55  ;;  %v3723_v8 = vpop.eup %3722  ;;  %3728 = vrcp.f32 %v983_v22  ;;  %v1132_v13 = vmul.f32 %v3721_v7, %v4959_v39  ;;  %v1314_v22 = vlaneseq  ;;  %v5066_v56 = vperm.slane %v5044_v2, 2 }
 0x20c   :  { %3269 = vmatmul.msk.bf16.gmra.mxu3 %vm361_vm2, %v4810_v55  ;;  %v3725_v41 = vpop.eup %3724  ;;  %3273 = vmatmul.msk.bf16.gmra.mxu0 %vm361_vm2, %v4810_v55  ;;  %v1133_v50 = vmul.f32 %v3723_v8, %v4972_v48  ;;  %v1268_v3 = vadd.f32 %v1267_v10, %v1123_v38  ;;  %v5660_v38 = vmov 0 }
 0x20d   :  { %v1141_v31 = vmul.f32 %v3725_v41, %v4976_v40  ;;  %v1256_v51 = vadd.f32 %v1255_v9, %v1132_v13  ;;  %v1236_v40 = vrot.slane %v1235_v46, 1  ;;  %vm5073_vm9 = vcmp.lt.s32.totalorder %v1314_v22, 256 }
 0x20e   :  { %v1269_v6 = vadd.f32 %v1268_v3, %v1133_v50  ;;  %v5661_v38 = vsel %vm5073_vm9, 4294967295, %v5660_v38  ;;  %v5081_v13 = vperm.slane %v5044_v2, 1 }
 0x20f   :  { %v1244_v27 = vadd.f32 %v1243_v14, %v1141_v31  ;;  %5662 = vst [vmem:[#allocation12_spill] sm:$0xff] %v5661_v38  ;;  %v2593_v38 = vld [vmem:[#allocation6 + $0xc0] sm:$0xff] }
 0x210   :  { %v3727_v23 = vpop.eup %3726 }
 0x211   :  { %v3729_v47 = vpop.eup %3728  ;;  %v1245_v25 = vrot.slane %v1244_v27, 4  ;;  %v1142_v15 = vmul.f32 %v3727_v23, %v4982_v42  ;;  %v1237_v42 = vadd.f32 %v1236_v40, %v1235_v46 }
 0x212   :  { %v1143_v35 = vmul.f32 %v3729_v47, %v4985_v28 }
 0x213   :  { %v1246_v19 = vadd.f32 %v1245_v25, %v1244_v27  ;;  %v1257_v39 = vadd.f32 %v1256_v51, %v1142_v15  ;;  %v1292_v36 = vrot.slane %v1237_v42, 2 }
 0x214   :  { %v1270_v29 = vadd.f32 %v1269_v6, %v1143_v35 }
 0x215   :  { %v1247_v21 = vrot.slane %v1246_v19, 2  ;;  %v1258_v30 = vrot.slane %v1257_v39, 4 }
 0x216   :  { %v1271_v48 = vrot.slane %v1270_v29, 4 }
 0x217   :  { %v1248_v26 = vadd.f32 %v1247_v21, %v1246_v19  ;;  %v1259_v18 = vadd.f32 %v1258_v30, %v1257_v39 }
 0x218   :  { %v1272_v61 = vadd.f32 %v1271_v48, %v1270_v29 }
 0x219   :  { %v1249_v28 = vrot.slane %v1248_v26, 1  ;;  %v1260_v5 = vrot.slane %v1259_v18, 2 }
 0x21a   :  { %v1273_v20 = vrot.slane %v1272_v61, 2 }
 0x21b   :  { %3262 = vmatmul.msk.bf16.gmra.mxu1 %vm361_vm2, %v4870_v0  ;;  %3266 = vmatmul.msk.bf16.gmra.mxu2 %vm361_vm2, %v4870_v0  ;;  %v1250_v32 = vadd.f32 %v1249_v28, %v1248_v26  ;;  %v1261_v1 = vadd.f32 %v1260_v5, %v1259_v18 }
 0x21c   :  { %3270 = vmatmul.msk.bf16.gmra.mxu3 %vm361_vm2, %v4870_v0  ;;  %v1274_v54 = vadd.f32 %v1273_v20, %v1272_v61  ;;  %3274 = vmatmul.msk.bf16.gmra.mxu0 %vm361_vm2, %v4870_v0 }
 0x21d   :  { %v1633_v33 = vpop.f32.mrf.mxu1  ;;  %v1293_v62 = vrot.slane %v1250_v32, 1  ;;  %v1262_v12 = vrot.slane %v1261_v1, 1 }
 0x21e   :  { %v1275_v53 = vrot.slane %v1274_v54, 1  ;;  %v5058_v43 = vadd.f32 %v1633_v33, %v5053_v17 }
 0x21f   :  { %v1303_v45 = vsel %vm1302_vm6, %v1292_v36, %v1293_v62  ;;  %v1263_v44 = vadd.f32 %v1262_v12, %v1261_v1 }
 0x220   :  { %v1305_v57 = vsel %vm1304_vm7, %v4924_v11, %v1303_v45  ;;  %v1276_v37 = vadd.f32 %v1275_v53, %v1274_v54  ;;  %v1914_v41 = vsub.f32 0.0, %v5058_v43 }
 0x221   :  { %v1307_v34 = vsel %vm1306_vm8, %v4914_v58, %v1305_v57  ;;  %v5078_v58 = vperm.slane %v5044_v2, 3  ;;  %v1720_v9 = vpop.f32.mrf.mxu0 }
 0x222   :  { %v1311_v8 = vadd.f32 %v1307_v34, %v1144_v52  ;;  %v1294_v63 = vrot.slane %v1276_v37, 7  ;;  %v1994_v50 = vmul.f32 1.442695, %v1914_v41 }
 0x223   :  { %v1662_v7 = vpop.f32.mrf.mxu2  ;;  %v5091_v3 = vadd.f32 %v1720_v9, %v5078_v58 }
 0x224   :  { %1313 = vst [vmem:[#allocation2] ss:$2 sm:$0xff] %v1311_v8  ;;  %v1308_v11 = vsel %vm1295_vm3, %v1263_v44, %v1294_v63  ;;  %v1691_v49 = vpop.f32.mrf.mxu3  ;;  %v5098_v46 = vadd.f32 %v1662_v7, %v5081_v13  ;;  %3730 = vpow2.f32 %v1994_v50 }
 0x225   :  { %v1635_v59 = vpop.f32.mrf.mxu1  ;;  %v1312_v14 = vadd.f32 %v1308_v11, %v1146_v16  ;;  %v5084_v31 = vadd.f32 %v1691_v49, %v5066_v56  ;;  %v1917_v15 = vsub.f32 0.0, %v5091_v3 }
 0x226   :  { %v5070_v4 = vadd.f32 %v1635_v59, %v5053_v17  ;;  %v1915_v39 = vsub.f32 0.0, %v5098_v46 }
 0x227   :  { %1318 = vst.msk [vmem:[#allocation2 + $0x10] ss:$2 sm:$0x3] %vm5073_vm9, %v1312_v14  ;;  %v1916_v27 = vsub.f32 0.0, %v5084_v31  ;;  %v2000_v35 = vmul.f32 1.442695, %v1917_v15 }
 0x228   :  { %v1924_v10 = vsub.f32 0.0, %v5070_v4  ;;  %v1996_v18 = vmul.f32 1.442695, %v1915_v39 }
 0x229   :  { %v1998_v51 = vmul.f32 1.442695, %v1916_v27  ;;  %v1722_v40 = vpop.f32.mrf.mxu0 }
 0x22a   :  { %v2014_v23 = vmul.f32 1.442695, %v1924_v10  ;;  %v3731_v30 = vpop.eup %3730  ;;  %v5111_v48 = vadd.f32 %v1722_v40, %v5078_v58 }
 0x22b   :  { %3275 = vmatmul.msk.bf16.vlgmr.msrb.gmra.mxu1 %vm361_vm2, %v4634_v60  ;;  %3279 = vmatmul.msk.bf16.vlgmr.msrb.gmra.mxu2 %vm361_vm2, %v4634_v60  ;;  %v1664_v47 = vpop.f32.mrf.mxu2  ;;  %v2154_v5 = vadd.f32 1.0, %v3731_v30 }
 0x22c   :  { %v5101_v25 = vadd.f32 %v1664_v47, %v5081_v13  ;;  %3732 = vpow2.f32 %v2014_v23  ;;  %v1693_v19 = vpop.f32.mrf.mxu3  ;;  %v1927_v28 = vsub.f32 0.0, %v5111_v48 }
 0x22d   :  { %3734 = vpow2.f32 %v1998_v51  ;;  %v5107_v29 = vadd.f32 %v1693_v19, %v5066_v56 }
 0x22e   :  { %v1925_v6 = vsub.f32 0.0, %v5101_v25  ;;  %3736 = vpow2.f32 %v2000_v35  ;;  %v2020_v1 = vmul.f32 1.442695, %v1927_v28 }
 0x22f   :  { %v1926_v21 = vsub.f32 0.0, %v5107_v29 }
 0x230   :  { %v2016_v60 = vmul.f32 1.442695, %v1925_v6 }
 0x231   :  { %v2018_v61 = vmul.f32 1.442695, %v1926_v21 }
 0x232   :  { %3738 = vpow2.f32 %v2016_v60  ;;  %v3733_v26 = vpop.eup %3732 }
 0x233   :  { %v3735_v42 = vpop.eup %3734  ;;  %3740 = vpow2.f32 %v2018_v61  ;;  %v2164_v32 = vadd.f32 1.0, %v3733_v26 }
 0x234   :  { %v3737_v33 = vpop.eup %3736  ;;  %3742 = vpow2.f32 %v1996_v18  ;;  %v2156_v36 = vadd.f32 1.0, %v3735_v42 }
 0x235   :  { %3744 = vpow2.f32 %v2020_v1  ;;  %v2157_v53 = vadd.f32 1.0, %v3737_v33 }
 0x236   :  { %v1638_v20 = vpop.f32.mrf.mxu1  ;;  %3746 = vrcp.f32 %v2154_v5 }
 0x237   :  { %v5115_v54 = vadd.f32 %v1638_v20, %v5053_v17  ;;  %v1725_v52 = vpop.f32.mrf.mxu0  ;;  %3748 = vrcp.f32 %v2164_v32 }
 0x238   :  { %v3739_v62 = vpop.eup %3738  ;;  %v5119_v57 = vadd.f32 %v1725_v52, %v5078_v58  ;;  %3750 = vrcp.f32 %v2156_v36 }
 0x239   :  { %v1934_v12 = vsub.f32 0.0, %v5115_v54  ;;  %v3741_v37 = vpop.eup %3740  ;;  %v2165_v22 = vadd.f32 1.0, %v3739_v62 }
 0x23a   :  { %v2166_v34 = vadd.f32 1.0, %v3741_v37  ;;  %v1937_v8 = vsub.f32 0.0, %v5119_v57  ;;  %v3743_v63 = vpop.eup %3742 }
 0x23b   :  { %v2034_v45 = vmul.f32 1.442695, %v1934_v12  ;;  %3276 = vmatmul.msk.bf16.gmra.mxu1 %vm361_vm2, %v4730_v24  ;;  %3280 = vmatmul.msk.bf16.gmra.mxu2 %vm361_vm2, %v4730_v24  ;;  %v3745_v11 = vpop.eup %3744  ;;  %v2155_v15 = vadd.f32 1.0, %v3743_v63 }
 0x23c   :  { %v1667_v7 = vpop.f32.mrf.mxu2  ;;  %v2040_v24 = vmul.f32 1.442695, %v1937_v8  ;;  %v5136_v10 = vpop.eup %3746  ;;  %v2167_v50 = vadd.f32 1.0, %v3745_v11 }
 0x23d   :  { %3752 = vpow2.f32 %v2034_v45  ;;  %v5127_v44 = vadd.f32 %v1667_v7, %v5081_v13  ;;  %v1696_v16 = vpop.f32.mrf.mxu3  ;;  %v3749_v27 = vpop.eup %3748 }
 0x23e   :  { %3754 = vrcp.f32 %v2157_v53  ;;  %v5130_v41 = vadd.f32 %v1696_v16, %v5066_v56  ;;  %v1640_v59 = vpop.f32.mrf.mxu1  ;;  %v3751_v51 = vpop.eup %3750 }
 0x23f   :  { %3756 = vrcp.f32 %v2166_v34  ;;  %v1935_v49 = vsub.f32 0.0, %v5127_v44  ;;  %v5134_v14 = vadd.f32 %v1640_v59, %v5053_v17  ;;  %v1727_v35 = vpop.f32.mrf.mxu0  ;;  %v2316_v5 = vmul.f32 %v3751_v51, %v5084_v31 }
 0x240   :  { %3758 = vrcp.f32 %v2165_v22  ;;  %v1936_v9 = vsub.f32 0.0, %v5130_v41  ;;  %v5141_v60 = vadd.f32 %v1727_v35, %v5078_v58  ;;  %v2324_v34 = vmul.f32 %v3749_v27, %v5070_v4 }
 0x241   :  { %3760 = vpow2.f32 %v2040_v24  ;;  %v2036_v23 = vmul.f32 1.442695, %v1935_v49  ;;  %v1944_v47 = vsub.f32 0.0, %v5134_v14 }
 0x242   :  { %3762 = vrcp.f32 %v2167_v50  ;;  %v2038_v6 = vmul.f32 1.442695, %v1936_v9  ;;  %v1947_v18 = vsub.f32 0.0, %v5141_v60  ;;  %v2314_v9 = vmul.f32 %v5136_v10, %v5058_v43 }
 0x243   :  { %v3753_v19 = vpop.eup %3752  ;;  %3764 = vpow2.f32 %v2036_v23  ;;  %v2054_v39 = vmul.f32 1.442695, %v1944_v47 }
 0x244   :  { %v3755_v40 = vpop.eup %3754  ;;  %v2174_v21 = vadd.f32 1.0, %v3753_v19  ;;  %3766 = vpow2.f32 %v2038_v6  ;;  %v1669_v30 = vpop.f32.mrf.mxu2  ;;  %v2060_v36 = vmul.f32 1.442695, %v1947_v18  ;;  %v2398_v35 = vadd.f32 %v2324_v34, %v2314_v9 }
 0x245   :  { %v3757_v26 = vpop.eup %3756  ;;  %3768 = vpow2.f32 %v2054_v39  ;;  %v5145_v61 = vadd.f32 %v1669_v30, %v5081_v13  ;;  %v1698_v42 = vpop.f32.mrf.mxu3  ;;  %v2317_v1 = vmul.f32 %v3755_v40, %v5091_v3 }
 0x246   :  { %v3759_v28 = vpop.eup %3758  ;;  %3770 = vrcp.f32 %v2155_v15  ;;  %v2326_v20 = vmul.f32 %v3757_v26, %v5107_v29  ;;  %v5150_v33 = vadd.f32 %v1698_v42, %v5066_v56 }
 0x247   :  { %v3761_v32 = vpop.eup %3760  ;;  %v1945_v62 = vsub.f32 0.0, %v5145_v61  ;;  %3772 = vrcp.f32 %v2174_v21  ;;  %v2325_v47 = vmul.f32 %v3759_v28, %v5101_v25 }
 0x248   :  { %v3763_v12 = vpop.eup %3762  ;;  %v5154_v53 = vadd.f32 %v2326_v20, %v2316_v5  ;;  %v2177_v52 = vadd.f32 1.0, %v3761_v32  ;;  %v1946_v45 = vsub.f32 0.0, %v5150_v33  ;;  %v1643_v37 = vpop.f32.mrf.mxu1  ;;  %3774 = vpow2.f32 %v2060_v36 }
 0x249   :  { %v3765_v31 = vpop.eup %3764  ;;  %v2327_v29 = vmul.f32 %v3763_v12, %v5111_v48  ;;  %v2056_v22 = vmul.f32 1.442695, %v1945_v62  ;;  %v5159_v7 = vadd.f32 %v1643_v37, %v5053_v17  ;;  %v1730_v63 = vpop.f32.mrf.mxu0 }
 0x24a   :  { %v3767_v3 = vpop.eup %3766  ;;  %3776 = vrcp.f32 %v2177_v52  ;;  %v2175_v8 = vadd.f32 1.0, %v3765_v31  ;;  %v2058_v16 = vmul.f32 1.442695, %v1946_v45  ;;  %v5168_v4 = vadd.f32 %v1730_v63, %v5078_v58 }
 0x24b   :  { %v3769_v59 = vpop.eup %3768  ;;  %v2437_v11 = vadd.f32 %v2327_v29, %v2317_v1  ;;  %v2176_v24 = vadd.f32 1.0, %v3767_v3  ;;  %3778 = vpow2.f32 %v2056_v22  ;;  %v1954_v49 = vsub.f32 0.0, %v5159_v7  ;;  %3277 = vmatmul.msk.bf16.gmra.mxu1 %vm361_vm2, %v4810_v55  ;;  %3281 = vmatmul.msk.bf16.gmra.mxu2 %vm361_vm2, %v4810_v55 }
 0x24c   :  { %v3771_v48 = vpop.eup %3770  ;;  %3780 = vrcp.f32 %v2175_v8  ;;  %v2184_v50 = vadd.f32 1.0, %v3769_v59  ;;  %v1957_v51 = vsub.f32 0.0, %v5168_v4 }
 0x24d   :  { %3782 = vrcp.f32 %v2176_v24  ;;  %v2074_v27 = vmul.f32 1.442695, %v1954_v49  ;;  %v3773_v23 = vpop.eup %3772  ;;  %v2315_v55 = vmul.f32 %v3771_v48, %v5098_v46 }
 0x24e   :  { %3784 = vrcp.f32 %v2184_v50  ;;  %v1672_v15 = vpop.f32.mrf.mxu2  ;;  %v3775_v6 = vpop.eup %3774  ;;  %v2080_v10 = vmul.f32 1.442695, %v1957_v51  ;;  %v2334_v26 = vmul.f32 %v3773_v23, %v5115_v54 }
 0x24f   :  { %3786 = vpow2.f32 %v2058_v16  ;;  %v5176_v19 = vadd.f32 %v1672_v15, %v5081_v13  ;;  %v1701_v39 = vpop.f32.mrf.mxu3  ;;  %v2187_v43 = vadd.f32 1.0, %v3775_v6  ;;  %v2411_v5 = vadd.f32 %v2325_v47, %v2315_v55 }
 0x250   :  { %v3777_v40 = vpop.eup %3776  ;;  %3788 = vpow2.f32 %v2074_v27  ;;  %v5179_v21 = vadd.f32 %v1701_v39, %v5066_v56  ;;  %v1645_v25 = vpop.f32.mrf.mxu1  ;;  %v2399_v29 = vadd.f32 %v2398_v35, %v2334_v26 }
 0x251   :  { %v3779_v30 = vpop.eup %3778  ;;  %v2337_v18 = vmul.f32 %v3777_v40, %v5119_v57  ;;  %v1955_v46 = vsub.f32 0.0, %v5176_v19  ;;  %v5185_v42 = vadd.f32 %v1645_v25, %v5053_v17  ;;  %3790 = vrcp.f32 %v2187_v43  ;;  %v1732_v1 = vpop.f32.mrf.mxu0 }
 0x252   :  { %v3781_v28 = vpop.eup %3780  ;;  %v2185_v20 = vadd.f32 1.0, %v3779_v30  ;;  %v1956_v32 = vsub.f32 0.0, %v5179_v21  ;;  %3792 = vpow2.f32 %v2080_v10  ;;  %v5193_v3 = vadd.f32 %v1732_v1, %v5078_v58 }
 0x253   :  { %v3783_v36 = vpop.eup %3782  ;;  %v2438_v62 = vadd.f32 %v2437_v11, %v2337_v18  ;;  %v2335_v12 = vmul.f32 %v3781_v28, %v5127_v44  ;;  %v2076_v54 = vmul.f32 1.442695, %v1955_v46  ;;  %v1964_v37 = vsub.f32 0.0, %v5185_v42 }
 0x254   :  { %v3785_v52 = vpop.eup %3784  ;;  %v2336_v57 = vmul.f32 %v3783_v36, %v5130_v41  ;;  %3794 = vrcp.f32 %v2185_v20  ;;  %v2078_v45 = vmul.f32 1.442695, %v1956_v32  ;;  %v1967_v11 = vsub.f32 0.0, %v5193_v3 }
 0x255   :  { %v3787_v31 = vpop.eup %3786  ;;  %v2344_v22 = vmul.f32 %v3785_v52, %v5134_v14  ;;  %3796 = vpow2.f32 %v2076_v54  ;;  %v2094_v16 = vmul.f32 1.442695, %v1964_v37  ;;  %v2412_v48 = vadd.f32 %v2411_v5, %v2335_v12 }
 0x256   :  { %v3789_v34 = vpop.eup %3788  ;;  %v2425_v44 = vadd.f32 %v5154_v53, %v2336_v57  ;;  %v2186_v8 = vadd.f32 1.0, %v3787_v31  ;;  %3798 = vpow2.f32 %v2078_v45  ;;  %v1674_v63 = vpop.f32.mrf.mxu2  ;;  %v2100_v23 = vmul.f32 1.442695, %v1967_v11 }
 0x257   :  { %v2400_v41 = vadd.f32 %v2399_v29, %v2344_v22  ;;  %v2194_v59 = vadd.f32 1.0, %v3789_v34  ;;  %v5198_v24 = vadd.f32 %v1674_v63, %v5081_v13  ;;  %v1703_v49 = vpop.f32.mrf.mxu3  ;;  %v3791_v14 = vpop.eup %3790  ;;  %v5228_v45 = vperm.slane %v5044_v2, 4 }
 0x258   :  { %3800 = vrcp.f32 %v2186_v8  ;;  %v5201_v50 = vadd.f32 %v1703_v49, %v5066_v56  ;;  %v1648_v9 = vpop.f32.mrf.mxu1  ;;  %v3793_v53 = vpop.eup %3792  ;;  %v2347_v27 = vmul.f32 %v3791_v14, %v5141_v60 }
 0x259   :  { %3802 = vrcp.f32 %v2194_v59  ;;  %v1965_v47 = vsub.f32 0.0, %v5198_v24  ;;  %v2197_v15 = vadd.f32 1.0, %v3793_v53  ;;  %v5207_v55 = vadd.f32 %v1648_v9, %v5053_v17  ;;  %v1735_v35 = vpop.f32.mrf.mxu0 }
 0x25a   :  { %v3795_v51 = vpop.eup %3794  ;;  %3804 = vpow2.f32 %v2094_v16  ;;  %v1966_v6 = vsub.f32 0.0, %v5201_v50  ;;  %v2439_v40 = vadd.f32 %v2438_v62, %v2347_v27  ;;  %v5216_v28 = vadd.f32 %v1735_v35, %v5078_v58 }
 0x25b   :  { %v3797_v39 = vpop.eup %3796  ;;  %v2345_v43 = vmul.f32 %v3795_v51, %v5145_v61  ;;  %3806 = vpow2.f32 %v2100_v23  ;;  %v2096_v10 = vmul.f32 1.442695, %v1965_v47  ;;  %3278 = vmatmul.msk.bf16.gmra.mxu1 %vm361_vm2, %v4870_v0  ;;  %3282 = vmatmul.msk.bf16.gmra.mxu2 %vm361_vm2, %v4870_v0  ;;  %v1974_v26 = vsub.f32 0.0, %v5207_v55 }
 0x25c   :  { %v3799_v60 = vpop.eup %3798  ;;  %3808 = vrcp.f32 %v2197_v15  ;;  %v2195_v25 = vadd.f32 1.0, %v3797_v39  ;;  %v2098_v30 = vmul.f32 1.442695, %v1966_v6  ;;  %v1977_v0 = vsub.f32 0.0, %v5216_v28 }
 0x25d   :  { %v2413_v18 = vadd.f32 %v2412_v48, %v2345_v43  ;;  %v2196_v46 = vadd.f32 1.0, %v3799_v60  ;;  %3810 = vpow2.f32 %v2096_v10  ;;  %v2114_v5 = vmul.f32 1.442695, %v1974_v26 }
 0x25e   :  { %v3801_v61 = vpop.eup %3800  ;;  %3812 = vrcp.f32 %v2195_v25  ;;  %v1677_v20 = vpop.f32.mrf.mxu2  ;;  %v2120_v29 = vmul.f32 1.442695, %v1977_v0 }
 0x25f   :  { %v3803_v32 = vpop.eup %3802  ;;  %v2346_v1 = vmul.f32 %v3801_v61, %v5150_v33  ;;  %3814 = vrcp.f32 %v2196_v46  ;;  %v5221_v36 = vadd.f32 %v1677_v20, %v5081_v13  ;;  %v1706_v62 = vpop.f32.mrf.mxu3  ;;  %v5254_v61 = vperm.slane %v5044_v2, 7 }
 0x260   :  { %v3805_v12 = vpop.eup %3804  ;;  %v2354_v54 = vmul.f32 %v3803_v32, %v5159_v7  ;;  %3816 = vpow2.f32 %v2098_v30  ;;  %v5225_v52 = vadd.f32 %v1706_v62, %v5066_v56  ;;  %v1650_v57 = vpop.f32.mrf.mxu1 }
 0x261   :  { %v3807_v37 = vpop.eup %3806  ;;  %v2426_v33 = vadd.f32 %v2425_v44, %v2346_v1  ;;  %v2204_v31 = vadd.f32 1.0, %v3805_v12  ;;  %3818 = vpow2.f32 %v2114_v5  ;;  %v1975_v16 = vsub.f32 0.0, %v5221_v36  ;;  %v1737_v63 = vpop.f32.mrf.mxu0 }
 0x262   :  { %v3809_v22 = vpop.eup %3808  ;;  %v2401_v34 = vadd.f32 %v2400_v41, %v2354_v54  ;;  %v2207_v8 = vadd.f32 1.0, %v3807_v37  ;;  %v1976_v7 = vsub.f32 0.0, %v5225_v52  ;;  %v5234_v49 = vadd.f32 %v1650_v57, %v5053_v17 }
 0x263   :  { %v3811_v59 = vpop.eup %3810  ;;  %v2357_v11 = vmul.f32 %v3809_v22, %v5168_v4  ;;  %3820 = vrcp.f32 %v2204_v31  ;;  %v5237_v44 = vadd.f32 %v1737_v63, %v5078_v58  ;;  %v2116_v41 = vmul.f32 1.442695, %v1975_v16 }
 0x264   :  { %v3813_v14 = vpop.eup %3812  ;;  %3822 = vrcp.f32 %v2207_v8  ;;  %v2205_v48 = vadd.f32 1.0, %v3811_v59  ;;  %v2118_v9 = vmul.f32 1.442695, %v1976_v7  ;;  %v1984_v47 = vsub.f32 0.0, %v5234_v49 }
 0x265   :  { %v3815_v53 = vpop.eup %3814  ;;  %v2440_v27 = vadd.f32 %v2439_v40, %v2357_v11  ;;  %v2355_v23 = vmul.f32 %v3813_v14, %v5176_v19  ;;  %3824 = vpow2.f32 %v2120_v29  ;;  %v1987_v17 = vsub.f32 0.0, %v5237_v44 }
 0x266   :  { %v3817_v4 = vpop.eup %3816  ;;  %v2356_v51 = vmul.f32 %v3815_v53, %v5179_v21  ;;  %3826 = vrcp.f32 %v2205_v48  ;;  %v1679_v58 = vpop.f32.mrf.mxu2  ;;  %v2134_v39 = vmul.f32 1.442695, %v1984_v47  ;;  %v5257_v5 = vperm.slane %v5044_v2, 5 }
 0x267   :  { %v3819_v15 = vpop.eup %3818  ;;  %v2414_v6 = vadd.f32 %v2413_v18, %v2355_v23  ;;  %v2206_v35 = vadd.f32 1.0, %v3817_v4  ;;  %3828 = vpow2.f32 %v2116_v41  ;;  %v1708_v43 = vpop.f32.mrf.mxu3  ;;  %v2140_v19 = vmul.f32 1.442695, %v1987_v17 }
 0x268   :  { %v2427_v10 = vadd.f32 %v2426_v33, %v2356_v51  ;;  %v2214_v40 = vadd.f32 1.0, %v3819_v15  ;;  %3830 = vpow2.f32 %v2118_v9  ;;  %v1749_v60 = vpop.f32.mrf.mxu1  ;;  %v5244_v30 = vadd.f32 %v1679_v58, %v5081_v13 }
 0x269   :  { %v3821_v25 = vpop.eup %3820  ;;  %3832 = vrcp.f32 %v2206_v35  ;;  %v5247_v21 = vadd.f32 %v1708_v43, %v5066_v56  ;;  %v5250_v26 = vadd.f32 %v1749_v60, %v5228_v45  ;;  %v1836_v12 = vpop.f32.mrf.mxu0  ;;  %v5265_v31 = vperm.slane %v5044_v2, 6 }
 0x26a   :  { %v3823_v18 = vpop.eup %3822  ;;  %v2364_v46 = vmul.f32 %v3821_v25, %v5185_v42  ;;  %3834 = vrcp.f32 %v2214_v40  ;;  %v1985_v56 = vsub.f32 0.0, %v5244_v30  ;;  %v5268_v8 = vadd.f32 %v1836_v12, %v5254_v61 }
 0x26b   :  { %v3825_v20 = vpop.eup %3824  ;;  %v2367_v13 = vmul.f32 %v3823_v18, %v5193_v3  ;;  %3836 = vpow2.f32 %v2134_v39  ;;  %v1986_v32 = vsub.f32 0.0, %v5247_v21  ;;  %v1918_v42 = vsub.f32 0.0, %v5250_v26 }
 0x26c   :  { %v3827_v1 = vpop.eup %3826  ;;  %v2402_v0 = vadd.f32 %v2401_v34, %v2364_v46  ;;  %v2217_v62 = vadd.f32 1.0, %v3825_v20  ;;  %3838 = vpow2.f32 %v2140_v19  ;;  %v2136_v33 = vmul.f32 1.442695, %v1985_v56 }
 0x26d   :  { %v3829_v54 = vpop.eup %3828  ;;  %v2441_v57 = vadd.f32 %v2440_v27, %v2367_v13  ;;  %v2365_v37 = vmul.f32 %v3827_v1, %v5198_v24  ;;  %v2138_v22 = vmul.f32 1.442695, %v1986_v32  ;;  %v2002_v14 = vmul.f32 1.442695, %v1918_v42 }
 0x26e   :  { %v3831_v3 = vpop.eup %3830  ;;  %3840 = vrcp.f32 %v2217_v62  ;;  %v2215_v29 = vadd.f32 1.0, %v3829_v54  ;;  %v1778_v34 = vpop.f32.mrf.mxu2  ;;  %v1921_v48 = vsub.f32 0.0, %v5268_v8 }
 0x26f   :  { %v3833_v16 = vpop.eup %3832  ;;  %v2415_v7 = vadd.f32 %v2414_v6, %v2365_v37  ;;  %v2216_v63 = vadd.f32 1.0, %v3831_v3  ;;  %3842 = vpow2.f32 %v2136_v33  ;;  %v5271_v59 = vadd.f32 %v1778_v34, %v5257_v5  ;;  %v1807_v24 = vpop.f32.mrf.mxu3 }
 0x270   :  { %v3835_v11 = vpop.eup %3834  ;;  %v2366_v2 = vmul.f32 %v3833_v16, %v5201_v50  ;;  %3844 = vrcp.f32 %v2215_v29  ;;  %v1751_v41 = vpop.f32.mrf.mxu1  ;;  %v5278_v23 = vadd.f32 %v1807_v24, %v5265_v31  ;;  %v2008_v15 = vmul.f32 1.442695, %v1921_v48 }
 0x271   :  { %v3837_v9 = vpop.eup %3836  ;;  %v2374_v53 = vmul.f32 %v3835_v11, %v5207_v55  ;;  %3846 = vrcp.f32 %v2216_v63  ;;  %v1919_v27 = vsub.f32 0.0, %v5271_v59  ;;  %v5281_v50 = vadd.f32 %v1751_v41, %v5228_v45  ;;  %v1838_v55 = vpop.f32.mrf.mxu0 }
 0x272   :  { %v3839_v47 = vpop.eup %3838  ;;  %v2428_v4 = vadd.f32 %v2427_v10, %v2366_v2  ;;  %v2224_v51 = vadd.f32 1.0, %v3837_v9  ;;  %3848 = vpow2.f32 %v2138_v22  ;;  %v1920_v40 = vsub.f32 0.0, %v5278_v23 }
 0x273   :  { %v2403_v17 = vadd.f32 %v2402_v0, %v2374_v53  ;;  %v2227_v58 = vadd.f32 1.0, %v3839_v47  ;;  %v2004_v35 = vmul.f32 1.442695, %v1919_v27  ;;  %v5286_v10 = vadd.f32 %v1838_v55, %v5254_v61 }
 0x274   :  { %v3841_v6 = vpop.eup %3840  ;;  %3850 = vrcp.f32 %v2224_v51  ;;  %v1928_v25 = vsub.f32 0.0, %v5281_v50 }
 0x275   :  { %v3843_v39 = vpop.eup %3842  ;;  %v2377_v43 = vmul.f32 %v3841_v6, %v5216_v28  ;;  %3852 = vrcp.f32 %v2227_v58  ;;  %v1931_v56 = vsub.f32 0.0, %v5286_v10 }
 0x276   :  { %v3845_v19 = vpop.eup %3844  ;;  %v2225_v60 = vadd.f32 1.0, %v3843_v39  ;;  %3854 = vpow2.f32 %v2002_v14  ;;  %v1780_v18 = vpop.f32.mrf.mxu2  ;;  %v2022_v33 = vmul.f32 1.442695, %v1928_v25 }
 0x277   :  { %v3847_v46 = vpop.eup %3846  ;;  %v2442_v20 = vadd.f32 %v2441_v57, %v2377_v43  ;;  %v2375_v13 = vmul.f32 %v3845_v19, %v5221_v36  ;;  %3856 = vpow2.f32 %v2008_v15  ;;  %v1809_v28 = vpop.f32.mrf.mxu3  ;;  %v5293_v0 = vadd.f32 %v1780_v18, %v5257_v5 }
 0x278   :  { %v3849_v32 = vpop.eup %3848  ;;  %v2376_v1 = vmul.f32 %v3847_v46, %v5225_v52  ;;  %3858 = vrcp.f32 %v2225_v60  ;;  %v5296_v62 = vadd.f32 %v1809_v28, %v5265_v31  ;;  %v1754_v42 = vpop.f32.mrf.mxu1  ;;  %v2006_v57 = vmul.f32 1.442695, %v1920_v40 }
 0x279   :  { %v2416_v12 = vadd.f32 %v2415_v7, %v2375_v13  ;;  %v2226_v54 = vadd.f32 1.0, %v3849_v32  ;;  %3860 = vpow2.f32 %v2004_v35  ;;  %v1929_v3 = vsub.f32 0.0, %v5293_v0  ;;  %v1841_v24 = vpop.f32.mrf.mxu0 }
 0x27a   :  { %v3851_v36 = vpop.eup %3850  ;;  %v2429_v37 = vadd.f32 %v2428_v4, %v2376_v1  ;;  %v1930_v22 = vsub.f32 0.0, %v5296_v62  ;;  %v2028_v63 = vmul.f32 1.442695, %v1931_v56  ;;  %v5303_v7 = vadd.f32 %v1754_v42, %v5228_v45 }
 0x27b   :  { %v3853_v29 = vpop.eup %3852  ;;  %v2384_v52 = vmul.f32 %v3851_v36, %v5234_v49  ;;  %3862 = vrcp.f32 %v2226_v54  ;;  %v2024_v14 = vmul.f32 1.442695, %v1929_v3 }
 0x27c   :  { %v3855_v34 = vpop.eup %3854  ;;  %v2387_v16 = vmul.f32 %v3853_v29, %v5237_v44  ;;  %3864 = vpow2.f32 %v2006_v57  ;;  %v2026_v47 = vmul.f32 1.442695, %v1930_v22  ;;  %v5307_v44 = vadd.f32 %v1841_v24, %v5254_v61 }
 0x27d   :  { %v3857_v11 = vpop.eup %3856  ;;  %v2404_v2 = vadd.f32 %v2403_v17, %v2384_v52  ;;  %3866 = vpow2.f32 %v2022_v33  ;;  %v2158_v58 = vadd.f32 1.0, %v3855_v34  ;;  %v1938_v17 = vsub.f32 0.0, %v5303_v7 }
 0x27e   :  { %v3859_v48 = vpop.eup %3858  ;;  %v2443_v41 = vadd.f32 %v2442_v20, %v2387_v16  ;;  %v1783_v9 = vpop.f32.mrf.mxu2  ;;  %3868 = vpow2.f32 %v2028_v63  ;;  %v2161_v39 = vadd.f32 1.0, %v3857_v11  ;;  %v1941_v18 = vsub.f32 0.0, %v5307_v44 }
 0x27f   :  { %v3861_v49 = vpop.eup %3860  ;;  %v2405_v53 = vrot.slane %v2404_v2, 4  ;;  %v2385_v27 = vmul.f32 %v3859_v48, %v5244_v30  ;;  %v1812_v4 = vpop.f32.mrf.mxu3  ;;  %3870 = vpow2.f32 %v2024_v14  ;;  %v2042_v56 = vmul.f32 1.442695, %v1938_v17 }
 0x280   :  { %v2444_v51 = vrot.slane %v2443_v41, 4  ;;  %v1756_v15 = vpop.f32.mrf.mxu1  ;;  %v2159_v30 = vadd.f32 1.0, %v3861_v49  ;;  %3872 = vpow2.f32 %v2026_v47  ;;  %v2048_v3 = vmul.f32 1.442695, %v1941_v18 }
 0x281   :  { %v3863_v6 = vpop.eup %3862  ;;  %v2406_v35 = vadd.f32 %v2405_v53, %v2404_v2  ;;  %v2417_v55 = vadd.f32 %v2416_v12, %v2385_v27  ;;  %3874 = vrcp.f32 %v2158_v58  ;;  %v5312_v28 = vpop.f32.mrf.mxu0  ;;  %v5315_v11 = vadd.f32 %v1783_v9, %v5257_v5 }
 0x282   :  { %v2445_v43 = vadd.f32 %v2444_v51, %v2443_v41  ;;  %v2386_v40 = vmul.f32 %v3863_v6, %v5247_v21  ;;  %v3865_v19 = vpop.eup %3864  ;;  %3876 = vrcp.f32 %v2161_v39  ;;  %v5323_v47 = vadd.f32 %v1812_v4, %v5265_v31 }
 0x283   :  { %v2407_v60 = vrot.slane %v2406_v35, 2  ;;  %v2418_v25 = vrot.slane %v2417_v55, 4  ;;  %v3867_v46 = vpop.eup %3866  ;;  %v2160_v54 = vadd.f32 1.0, %v3865_v19  ;;  %3878 = vrcp.f32 %v2159_v30 }
 0x284   :  { %v2446_v20 = vrot.slane %v2445_v43, 2  ;;  %v2430_v13 = vadd.f32 %v2429_v37, %v2386_v40  ;;  %v3869_v1 = vpop.eup %3868  ;;  %v2168_v22 = vadd.f32 1.0, %v3867_v46  ;;  %3880 = vpow2.f32 %v2042_v56 }
 0x285   :  { %v2419_v32 = vadd.f32 %v2418_v25, %v2417_v55  ;;  %v2408_v42 = vadd.f32 %v2407_v60, %v2406_v35  ;;  %v3871_v36 = vpop.eup %3870  ;;  %v2171_v24 = vadd.f32 1.0, %v3869_v1  ;;  %3882 = vrcp.f32 %v2160_v54 }
 0x286   :  { %v2447_v12 = vadd.f32 %v2446_v20, %v2445_v43  ;;  %v2431_v21 = vrot.slane %v2430_v13, 4  ;;  %v1785_v57 = vpop.f32.mrf.mxu2  ;;  %v3873_v34 = vpop.eup %3872  ;;  %v2169_v41 = vadd.f32 1.0, %v3871_v36  ;;  %3884 = vpow2.f32 %v2048_v3 }
 0x287   :  { %v2420_v33 = vrot.slane %v2419_v32, 2  ;;  %v1814_v29 = vpop.f32.mrf.mxu3  ;;  %v5317_v2 = vpop.eup %3874  ;;  %v2409_v14 = vrot.slane %v2408_v42, 1  ;;  %v1939_v27 = vsub.f32 0.0, %v5315_v11  ;;  %3886 = vrcp.f32 %v2168_v22 }
 0x288   :  { %v2432_v52 = vadd.f32 %v2431_v21, %v2430_v13  ;;  %v1759_v37 = vpop.f32.mrf.mxu1  ;;  %v2448_v16 = vrot.slane %v2447_v12, 1  ;;  %v5319_v49 = vpop.eup %3876  ;;  %v2170_v58 = vadd.f32 1.0, %v3873_v34  ;;  %v5326_v9 = vadd.f32 %v1756_v15, %v5228_v45 }
 0x289   :  { %v2421_v63 = vadd.f32 %v2420_v33, %v2419_v32  ;;  %v1846_v17 = vpop.f32.mrf.mxu0  ;;  %v5328_v6 = vpop.eup %3878  ;;  %3888 = vrcp.f32 %v2171_v24  ;;  %v2044_v39 = vmul.f32 1.442695, %v1939_v27  ;;  %v1940_v30 = vsub.f32 0.0, %v5323_v47 }
 0x28a   :  { %v2433_v48 = vrot.slane %v2432_v52, 2  ;;  %v2449_v35 = vadd.f32 %v2448_v16, %v2447_v12  ;;  %v3881_v43 = vpop.eup %3880  ;;  %3890 = vrcp.f32 %v2169_v41  ;;  %v1948_v4 = vsub.f32 0.0, %v5326_v9 }
 0x28b   :  { %v2422_v53 = vrot.slane %v2421_v63, 1  ;;  %v2410_v60 = vadd.f32 %v2409_v14, %v2408_v42  ;;  %3892 = vpow2.f32 %v2044_v39  ;;  %v5332_v18 = vpop.eup %3882  ;;  %v2046_v20 = vmul.f32 1.442695, %v1940_v30 }
 0x28c   :  { %v2434_v51 = vadd.f32 %v2433_v48, %v2432_v52  ;;  %3894 = vrcp.f32 %v2170_v58  ;;  %v2062_v13 = vmul.f32 1.442695, %v1948_v4  ;;  %v3885_v32 = vpop.eup %3884  ;;  %v2540_v1 = vrot.slane %v2449_v35, 5 }
 0x28d   :  { %v2423_v55 = vadd.f32 %v2422_v53, %v2421_v63  ;;  %v2178_v21 = vadd.f32 1.0, %v3881_v43  ;;  %v5337_v54 = vadd.f32 %v5312_v28, %v5254_v61  ;;  %v5339_v42 = vpop.eup %3886  ;;  %3896 = vpow2.f32 %v2046_v20 }
 0x28e   :  { %v2435_v40 = vrot.slane %v2434_v51, 1  ;;  %v1788_v19 = vpop.f32.mrf.mxu2  ;;  %v5342_v33 = vadd.f32 %v1785_v57, %v5257_v5  ;;  %v5345_v3 = vadd.f32 %v1814_v29, %v5265_v31  ;;  %3898 = vpow2.f32 %v2062_v13 }
 0x28f   :  { %v2538_v25 = vrot.slane %v2423_v55, 7  ;;  %v1817_v15 = vpop.f32.mrf.mxu3  ;;  %v5347_v52 = vpop.eup %3888  ;;  %v1951_v22 = vsub.f32 0.0, %v5337_v54  ;;  %v5351_v34 = vadd.f32 %v1759_v37, %v5228_v45  ;;  %v2181_v63 = vadd.f32 1.0, %v3885_v32 }
 0x290   :  { %v2436_v46 = vadd.f32 %v2435_v40, %v2434_v51  ;;  %v1761_v56 = vpop.f32.mrf.mxu1  ;;  %v5353_v28 = vpop.eup %3890  ;;  %v1949_v24 = vsub.f32 0.0, %v5342_v33  ;;  %v1950_v57 = vsub.f32 0.0, %v5345_v3  ;;  %v5363_v37 = vadd.f32 %v1846_v17, %v5254_v61  ;;  %v2584_v40 = vld [vmem:[#allocation6 + $0x78] sm:$0xff] }
 0x291   :  { %v2546_v12 = vsel %vm1295_vm3, %v2410_v60, %v2538_v25  ;;  %v1848_v14 = vpop.f32.mrf.mxu0  ;;  %v3893_v29 = vpop.eup %3892  ;;  %v2068_v41 = vmul.f32 1.442695, %v1951_v22  ;;  %v1958_v53 = vsub.f32 0.0, %v5351_v34  ;;  %3900 = vrcp.f32 %v2178_v21  ;;  %2760 = vmatpush.msrb.mxu3 %v2584_v40  ;;  %v2582_v22 = vld [vmem:[#allocation6 + $0x68] sm:$0xff] }
 0x292   :  { %v2539_v36 = vrot.slane %v2436_v46, 6  ;;  %v5365_v27 = vpop.eup %3894  ;;  %v2064_v51 = vmul.f32 1.442695, %v1949_v24  ;;  %v2066_v58 = vmul.f32 1.442695, %v1950_v57  ;;  %v2179_v55 = vadd.f32 1.0, %v3893_v29 }
 0x293   :  { %3902 = vpow2.f32 %v2068_v41  ;;  %v1961_v39 = vsub.f32 0.0, %v5363_v37  ;;  %v5369_v43 = vadd.f32 %v1788_v19, %v5257_v5  ;;  %v3897_v30 = vpop.eup %3896  ;;  %v5372_v4 = vadd.f32 %v1817_v15, %v5265_v31  ;;  %v2600_v46 = vld [vmem:[#allocation6 + $0xf8] sm:$0xff] }
 0x294   :  { %v2547_v16 = vsel %vm1297_vm4, %v2539_v36, %v2540_v1  ;;  %3904 = vrcp.f32 %v2181_v63  ;;  %v5375_v17 = vadd.f32 %v1761_v56, %v5228_v45  ;;  %v3899_v20 = vpop.eup %3898  ;;  %v2180_v13 = vadd.f32 1.0, %v3897_v30  ;;  %2780 = vmatpush.msrb.mxu0 %v2600_v46  ;;  %v2583_v1 = vld [vmem:[#allocation6 + $0x70] sm:$0xff] }
 0x295   :  { %v5359_v48 = vsel %vm132_vm0, %v2546_v12, %v2547_v16  ;;  %3906 = vpow2.f32 %v2064_v51  ;;  %v2082_v32 = vmul.f32 1.442695, %v1958_v53  ;;  %v1959_v19 = vsub.f32 0.0, %v5369_v43  ;;  %v2599_v12 = vld [vmem:[#allocation6 + $0xf0] sm:$0xff]  ;;  %2761 = vmatpush.msrb.mxu3 %v2583_v1  ;;  %v2598_v16 = vld [vmem:[#allocation6 + $0xe8] sm:$0xff] }
 0x296   :  { %5663 = vst [vmem:[#allocation13_spill] sm:$0xff] %v5359_v48  ;;  %v1790_v35 = vpop.f32.mrf.mxu2  ;;  %3908 = vpow2.f32 %v2066_v58  ;;  %v2088_v21 = vmul.f32 1.442695, %v1961_v39  ;;  %v1960_v15 = vsub.f32 0.0, %v5372_v4  ;;  %v5380_v36 = vadd.f32 %v1848_v14, %v5254_v61  ;;  %2781 = vmatpush.msrb.mxu0 %v2599_v12  ;;  %v2581_v58 = vld [vmem:[#allocation6 + $0x60] sm:$0xff] }
 0x297   :  { %v1819_v60 = vpop.f32.mrf.mxu3  ;;  %3910 = vrcp.f32 %v2179_v55  ;;  %v2084_v56 = vmul.f32 1.442695, %v1959_v19  ;;  %v5382_v63 = vpop.eup %3900  ;;  %v2188_v24 = vadd.f32 1.0, %v3899_v20  ;;  %v1968_v57 = vsub.f32 0.0, %v5375_v17  ;;  %2762 = vmatpush.msrb.mxu3 %v2582_v22  ;;  %v2597_v55 = vld [vmem:[#allocation6 + $0xe0] sm:$0xff] }
 0x298   :  { %v1764_v25 = vpop.f32.mrf.mxu1  ;;  %5664 = vst [vmem:[#allocation14_spill] sm:$0xff] %v5380_v36  ;;  %3912 = vrcp.f32 %v2180_v13  ;;  %v2086_v41 = vmul.f32 1.442695, %v1960_v15  ;;  %v1971_v53 = vsub.f32 0.0, %v5380_v36  ;;  %v5387_v51 = vadd.f32 %v1790_v35, %v5257_v5  ;;  %2782 = vmatpush.msrb.mxu0 %v2598_v16  ;;  %v2580_v13 = vld [vmem:[#allocation6 + $0x58] sm:$0xff]  ;;  %v2595_v16 = vld [vmem:[#allocation6 + $0xd0] sm:$0xff] }
 0x299   :  { %v3903_v29 = vpop.eup %3902  ;;  %3914 = vpow2.f32 %v2082_v32  ;;  %v1851_v14 = vpop.f32.mrf.mxu0  ;;  %2763 = vmatpush.msrb.mxu3 %v2581_v58  ;;  %v5392_v20 = vadd.f32 %v1819_v60, %v5265_v31  ;;  %v2596_v32 = vld [vmem:[#allocation6 + $0xd8] sm:$0xff]  ;;  %v2102_v1 = vmul.f32 1.442695, %v1968_v57  ;;  %v5395_v12 = vadd.f32 %v1764_v25, %v5228_v45  ;;  %v2579_v60 = vld [vmem:[#allocation6 + $0x50] sm:$0xff] }
 0x29a   :  { %5665 = vst [vmem:[#allocation15_spill] sm:$0xff] %v5387_v51  ;;  %v5389_v39 = vpop.eup %3904  ;;  %v2191_v40 = vadd.f32 1.0, %v3903_v29  ;;  %3916 = vpow2.f32 %v2088_v21  ;;  %2783 = vmatpush.msrb.mxu0 %v2597_v55  ;;  %v2108_v22 = vmul.f32 1.442695, %v1971_v53  ;;  %v5403_v57 = vadd.f32 %v1851_v14, %v5254_v61  ;;  %v2594_v53 = vld [vmem:[#allocation6 + $0xc8] sm:$0xff] }
 0x29b   :  { %v3907_v46 = vpop.eup %3906  ;;  %3918 = vpow2.f32 %v2084_v56  ;;  %5666 = vst [vmem:[#allocation16_spill] sm:$0xff] %v5392_v20  ;;  %2764 = vmatpush.msrb.mxu3 %v2580_v13  ;;  %v1969_v56 = vsub.f32 0.0, %v5387_v51  ;;  %v1970_v55 = vsub.f32 0.0, %v5392_v20 }
 0x29c   :  { %v3909_v35 = vpop.eup %3908  ;;  %3920 = vrcp.f32 %v2188_v24  ;;  %v2189_v19 = vadd.f32 1.0, %v3907_v46  ;;  %2784 = vmatpush.msrb.mxu0 %v2596_v32  ;;  %5667 = vst [vmem:[#allocation17_spill] sm:$0xff] %v5403_v57  ;;  %v1978_v32 = vsub.f32 0.0, %v5395_v12 }
 0x29d   :  { %v5397_v21 = vpop.eup %3910  ;;  %3922 = vpow2.f32 %v2086_v41  ;;  %v2190_v24 = vadd.f32 1.0, %v3909_v35  ;;  %2765 = vmatpush.msrb.mxu3 %v2579_v60  ;;  %v2578_v41 = vld [vmem:[#allocation6 + $0x48] sm:$0xff]  ;;  %v2104_v60 = vmul.f32 1.442695, %v1969_v56 }
 0x29e   :  { %v1793_v30 = vpop.f32.mrf.mxu2  ;;  %v5400_v29 = vpop.eup %3912  ;;  %3924 = vrcp.f32 %v2191_v40  ;;  %2785 = vmatpush.msrb.mxu0 %v2595_v16  ;;  %v2577_v16 = vld [vmem:[#allocation6 + $0x40] sm:$0xff]  ;;  %v2122_v51 = vmul.f32 1.442695, %v1978_v32  ;;  %v2321_v32 = vmul.f32 %v5319_v49, %v5268_v8  ;;  %v2319_v8 = vmul.f32 %v5328_v6, %v5271_v59 }
 0x29f   :  { %v1822_v25 = vpop.f32.mrf.mxu3  ;;  %v3915_v58 = vpop.eup %3914  ;;  %3926 = vrcp.f32 %v2189_v19  ;;  %v5408_v40 = vadd.f32 %v1793_v30, %v5257_v5  ;;  %2766 = vmatpush.msrb.mxu3 %v2578_v41  ;;  %v2106_v41 = vmul.f32 1.442695, %v1970_v55  ;;  %v2318_v55 = vmul.f32 %v5317_v2, %v5250_v26  ;;  %v2589_v59 = vld [vmem:[#allocation6 + $0xa0] sm:$0xff] }
 0x2a0   :  { %v1766_v15 = vpop.f32.mrf.mxu1  ;;  %v3917_v46 = vpop.eup %3916  ;;  %v2198_v13 = vadd.f32 1.0, %v3915_v58  ;;  %3928 = vpow2.f32 %v2102_v1  ;;  %v5411_v19 = vadd.f32 %v1822_v25, %v5265_v31  ;;  %2786 = vmatpush.msrb.mxu0 %v2594_v53  ;;  %v1981_v58 = vsub.f32 0.0, %v5403_v57  ;;  %v2576_v25 = vld [vmem:[#allocation6 + $0x38] sm:$0xff] }
 0x2a1   :  { %5668 = vst [vmem:[#allocation18_spill] sm:$0xff] %v5408_v40  ;;  %v3919_v14 = vpop.eup %3918  ;;  %v2201_v35 = vadd.f32 1.0, %v3917_v46  ;;  %3930 = vpow2.f32 %v2108_v22  ;;  %2767 = vmatpush.msrb.mxu3 %v2577_v16  ;;  %v5417_v22 = vadd.f32 %v1766_v15, %v5228_v45  ;;  %v1853_v56 = vpop.f32.mrf.mxu0  ;;  %v2592_v53 = vld [vmem:[#allocation6 + $0xb8] sm:$0xff]  ;;  %v2575_v15 = vld [vmem:[#allocation6 + $0x30] sm:$0xff] }
 0x2a2   :  { %v5413_v48 = vpop.eup %3920  ;;  %3932 = vrcp.f32 %v2190_v24  ;;  %v2199_v1 = vadd.f32 1.0, %v3919_v14  ;;  %2787 = vmatpush.msrb.mxu0 %v2593_v38  ;;  %v1979_v24 = vsub.f32 0.0, %v5408_v40  ;;  %v1980_v38 = vsub.f32 0.0, %v5411_v19 }
 0x2a3   :  { %v3923_v30 = vpop.eup %3922  ;;  %3934 = vrcp.f32 %v2198_v13  ;;  %2768 = vmatpush.msrb.mxu3 %v2576_v25  ;;  %v2591_v13 = vld [vmem:[#allocation6 + $0xb0] sm:$0xff]  ;;  %v5432_v25 = vadd.f32 %v1853_v56, %v5254_v61  ;;  %v1988_v26 = vsub.f32 0.0, %v5417_v22  ;;  %v2328_v61 = vmul.f32 %v5339_v42, %v5281_v50 }
 0x2a4   :  { %v5419_v46 = vpop.eup %3924  ;;  %3936 = vrcp.f32 %v2201_v35  ;;  %v2200_v45 = vadd.f32 1.0, %v3923_v30  ;;  %2788 = vmatpush.msrb.mxu0 %v2592_v53  ;;  %v2128_v35 = vmul.f32 1.442695, %v1981_v58  ;;  %v2590_v30 = vld [vmem:[#allocation6 + $0xa8] sm:$0xff]  ;;  %v2124_v49 = vmul.f32 1.442695, %v1979_v24 }
 0x2a5   :  { %v5424_v16 = vpop.eup %3926  ;;  %3938 = vpow2.f32 %v2104_v60  ;;  %2769 = vmatpush.msrb.mxu3 %v2575_v15  ;;  %v2574_v60 = vld [vmem:[#allocation6 + $0x28] sm:$0xff]  ;;  %v2126_v58 = vmul.f32 1.442695, %v1980_v38  ;;  %v2330_v50 = vmul.f32 %v5365_v27, %v5296_v62  ;;  %v2572_v24 = vld [vmem:[#allocation6 + $0x18] sm:$0xff]  ;;  %v2320_v62 = vmul.f32 %v5332_v18, %v5278_v23 }
 0x2a6   :  { %v1795_v20 = vpop.f32.mrf.mxu2  ;;  %v3929_v57 = vpop.eup %3928  ;;  %3940 = vrcp.f32 %v2199_v1  ;;  %2789 = vmatpush.msrb.mxu0 %v2591_v13  ;;  %v2338_v27 = vmul.f32 %v5382_v63, %v5303_v7  ;;  %v2450_v13 = vadd.f32 %v2328_v61, %v2318_v55  ;;  %v1489_v7 = vld [vmem:[%s5650_s4 + $0x8] sm:$0x3] }
 0x2a7   :  { %v3931_v40 = vpop.eup %3930  ;;  %v2208_v36 = vadd.f32 1.0, %v3929_v57  ;;  %3942 = vpow2.f32 %v2106_v41  ;;  %v5436_v2 = vadd.f32 %v1795_v20, %v5257_v5  ;;  %v1824_v57 = vpop.f32.mrf.mxu3  ;;  %2770 = vmatpush.msrb.mxu3 %v2574_v60  ;;  %v2331_v5 = vmul.f32 %v5347_v52, %v5286_v10  ;;  %v2573_v41 = vld [vmem:[#allocation6 + $0x20] sm:$0xff]  ;;  %v2570_v61 = vld [vmem:[#allocation6 + $0x8] sm:$0xff] }
 0x2a8   :  { %v5422_v14 = vpop.f32.mrf.mxu1  ;;  %v5438_v53 = vpop.eup %3932  ;;  %3944 = vpow2.f32 %v2122_v51  ;;  %v2329_v20 = vmul.f32 %v5353_v28, %v5293_v0  ;;  %2790 = vmatpush.msrb.mxu0 %v2590_v30  ;;  %v2211_v42 = vadd.f32 1.0, %v3931_v40  ;;  %v1991_v51 = vsub.f32 0.0, %v5432_v25 }
 0x2a9   :  { %v5444_v1 = vpop.eup %3934  ;;  %3946 = vrcp.f32 %v2200_v45  ;;  %2771 = vmatpush.msrb.mxu3 %v2573_v41  ;;  %v2142_v0 = vmul.f32 1.442695, %v1988_v26  ;;  %v1989_v52 = vsub.f32 0.0, %v5436_v2  ;;  %v5459_v28 = vadd.f32 %v1824_v57, %v5265_v31  ;;  %v2588_v45 = vld [vmem:[#allocation6 + $0x98] sm:$0xff]  ;;  %v2587_v26 = vld [vmem:[#allocation6 + $0x90] sm:$0xff] }
 0x2aa   :  { %v5450_v6 = vpop.eup %3936  ;;  %3948 = vrcp.f32 %v2208_v36  ;;  %2791 = vmatpush.msrb.mxu0 %v2589_v59  ;;  %v2489_v31 = vadd.f32 %v2331_v5, %v2321_v32  ;;  %v2463_v30 = vadd.f32 %v2329_v20, %v2319_v8  ;;  %v2476_v57 = vadd.f32 %v2330_v50, %v2320_v62  ;;  %v2664_v62 = vld [vmem:[#allocation6 + $0x2f8] sm:$0xff] }
 0x2ab   :  { %v3939_v10 = vpop.eup %3938  ;;  %3950 = vpow2.f32 %v2128_v35  ;;  %2772 = vmatpush.msrb.mxu3 %v2572_v24  ;;  %v2571_v35 = vld [vmem:[#allocation6 + $0x10] sm:$0xff]  ;;  %v2148_v23 = vmul.f32 1.442695, %v1991_v51  ;;  %v2144_v55 = vmul.f32 1.442695, %v1989_v52  ;;  %v1990_v32 = vsub.f32 0.0, %v5459_v28  ;;  %2860 = vmatpush.msra.mxu2 %v2664_v62 }
 0x2ac   :  { %v5461_v38 = vpop.eup %3940  ;;  %v2209_v36 = vadd.f32 1.0, %v3939_v10  ;;  %3952 = vpow2.f32 %v2124_v49  ;;  %2792 = vmatpush.msrb.mxu0 %v2588_v45  ;;  %v2586_v49 = vld [vmem:[#allocation6 + $0x88] sm:$0xff]  ;;  %v2451_v8 = vadd.f32 %v2450_v13, %v2338_v27  ;;  %v2341_v20 = vmul.f32 %v5389_v39, %v5307_v44  ;;  %v2569_v51 = vld [vmem:[#allocation6] sm:$0xff]  ;;  %v2615_v13 = vld [vmem:[#allocation6 + $0x170] sm:$0xff] }
 0x2ad   :  { %v3943_v15 = vpop.eup %3942  ;;  %3954 = vpow2.f32 %v2126_v58  ;;  %2773 = vmatpush.msrb.mxu3 %v2571_v35  ;;  %v2339_v59 = vmul.f32 %v5397_v21, %v5315_v11  ;;  %v2340_v50 = vmul.f32 %v5400_v29, %v5323_v47  ;;  %v2585_v10 = vld [vmem:[#allocation6 + $0x80] sm:$0xff]  ;;  %v2351_v44 = vmul.f32 %v5419_v46, %v5337_v54  ;;  %v2616_v11 = vld [vmem:[#allocation6 + $0x178] sm:$0xff]  ;;  %v2631_v35 = vld [vmem:[#allocation6 + $0x1f0] sm:$0xff] }
 0x2ae   :  { %v5455_v56 = vpop.f32.mrf.mxu2  ;;  %v3945_v60 = vpop.eup %3944  ;;  %3956 = vrcp.f32 %v2211_v42  ;;  %2793 = vmatpush.msrb.mxu0 %v2587_v26  ;;  %v2210_v58 = vadd.f32 1.0, %v3943_v15  ;;  %v2348_v42 = vmul.f32 %v5413_v48, %v5326_v9  ;;  %v5487_v52 = vperm.slane %v1489_v7, 0  ;;  %v2632_v47 = vld [vmem:[#allocation6 + $0x1f8] sm:$0xff]  ;;  %v2647_v26 = vld [vmem:[#allocation6 + $0x270] sm:$0xff] }
 0x2af   :  { %v5472_v18 = vpop.eup %3946  ;;  %v2218_v63 = vadd.f32 1.0, %v3945_v60  ;;  %3958 = vpow2.f32 %v2142_v0  ;;  %2774 = vmatpush.msrb.mxu3 %v2570_v61  ;;  %v2648_v21 = vld [vmem:[#allocation6 + $0x278] sm:$0xff]  ;;  %v2146_v48 = vmul.f32 1.442695, %v1990_v32  ;;  %v5491_v45 = vperm.slane %v1489_v7, 1  ;;  %v2630_v32 = vld [vmem:[#allocation6 + $0x1e8] sm:$0xff] }
 0x2b0   :  { %v5467_v40 = vpop.f32.mrf.mxu1  ;;  %v5475_v5 = vpop.eup %3948  ;;  %3960 = vrcp.f32 %v2209_v36  ;;  %2794 = vmatpush.msrb.mxu0 %v2586_v49  ;;  %v2490_v46 = vadd.f32 %v2489_v31, %v2341_v20  ;;  %v2349_v27 = vmul.f32 %v5424_v16, %v5342_v33  ;;  %v2350_v36 = vmul.f32 %v5438_v53, %v5345_v3  ;;  %2840 = vmatpush.msra.mxu1 %v2648_v21  ;;  %v2663_v31 = vld [vmem:[#allocation6 + $0x2f0] sm:$0xff]  ;;  %v2662_v20 = vld [vmem:[#allocation6 + $0x2e8] sm:$0xff] }
 0x2b1   :  { %v3951_v41 = vpop.eup %3950  ;;  %3962 = vrcp.f32 %v2218_v63  ;;  %2775 = vmatpush.msrb.mxu3 %v2569_v51  ;;  %v2477_v7 = vadd.f32 %v2476_v57, %v2340_v50  ;;  %v2452_v63 = vadd.f32 %v2451_v8, %v2348_v42  ;;  %v5505_v53 = vadd.f32 %v5422_v14, %v5487_v52  ;;  %2861 = vmatpush.msra.mxu2 %v2663_v31  ;;  %v2613_v50 = vld [vmem:[#allocation6 + $0x160] sm:$0xff] }
 0x2b2   :  { %v3953_v0 = vpop.eup %3952  ;;  %v2221_v39 = vadd.f32 1.0, %v3951_v41  ;;  %3964 = vpow2.f32 %v2148_v23  ;;  %2795 = vmatpush.msrb.mxu0 %v2585_v10  ;;  %v2464_v23 = vadd.f32 %v2463_v30, %v2339_v59  ;;  %2841 = vmatpush.msra.mxu1 %v2647_v26  ;;  %v2646_v30 = vld [vmem:[#allocation6 + $0x268] sm:$0xff]  ;;  %v2491_v61 = vadd.f32 %v2490_v46, %v2351_v44  ;;  %v2629_v42 = vld [vmem:[#allocation6 + $0x1e0] sm:$0xff] }
 0x2b3   :  { %v3955_v29 = vpop.eup %3954  ;;  %v2219_v9 = vadd.f32 1.0, %v3953_v0  ;;  %3966 = vpow2.f32 %v2144_v55  ;;  %2800 = vmatpush.msra.mxu3 %v2616_v11  ;;  %v2614_v55 = vld [vmem:[#allocation6 + $0x168] sm:$0xff]  ;;  %v2358_v49 = vmul.f32 %v5444_v1, %v5351_v34  ;;  %v5511_v8 = vadd.f32 %v5455_v56, %v5491_v45  ;;  %v2645_v34 = vld [vmem:[#allocation6 + $0x260] sm:$0xff]  ;;  %2862 = vmatpush.msra.mxu2 %v2662_v20  ;;  %v5672_v20 = vld [vmem:[#allocation18_spill] sm:$0xff] }
 0x2b4   :  { %v5493_v54 = vpop.eup %3956  ;;  %3968 = vrcp.f32 %v2210_v58  ;;  %2820 = vmatpush.msra.mxu0 %v2632_v47  ;;  %v2220_v3 = vadd.f32 1.0, %v3955_v29  ;;  %v2465_v58 = vadd.f32 %v2464_v23, %v2349_v27  ;;  %v2478_v41 = vadd.f32 %v2477_v7, %v2350_v36  ;;  %2842 = vmatpush.msra.mxu1 %v2646_v30  ;;  %v2627_v36 = vld [vmem:[#allocation6 + $0x1d0] sm:$0xff]  ;;  %v5670_v23 = vld [vmem:[#allocation15_spill] sm:$0xff]  ;;  %v2610_v30 = vld [vmem:[#allocation6 + $0x148] sm:$0xff] }
 0x2b5   :  { %v3959_v60 = vpop.eup %3958  ;;  %3970 = vrcp.f32 %v2221_v39  ;;  %2801 = vmatpush.msra.mxu3 %v2615_v13  ;;  %v2361_v59 = vmul.f32 %v5450_v6, %v5363_v37  ;;  %v2359_v56 = vmul.f32 %v5461_v38, %v5369_v43  ;;  %v2368_v51 = vmul.f32 %v5475_v5, %v5375_v17  ;;  %v2661_v37 = vld [vmem:[#allocation6 + $0x2e0] sm:$0xff]  ;;  %v2612_v17 = vld [vmem:[#allocation6 + $0x158] sm:$0xff]  ;;  %v2643_v13 = vld [vmem:[#allocation6 + $0x250] sm:$0xff] }
 0x2b6   :  { %v5489_v24 = vpop.f32.mrf.mxu2  ;;  %v5501_v33 = vpop.eup %3960  ;;  %3972 = vrcp.f32 %v2219_v9  ;;  %v2228_v16 = vadd.f32 1.0, %v3959_v60  ;;  %2821 = vmatpush.msra.mxu0 %v2631_v35  ;;  %v5521_v0 = vadd.f32 %v5467_v40, %v5487_v52  ;;  %v2360_v44 = vmul.f32 %v5472_v18, %v5372_v4  ;;  %2843 = vmatpush.msra.mxu1 %v2645_v34  ;;  %v2628_v5 = vld [vmem:[#allocation6 + $0x1d8] sm:$0xff] }
 0x2b7   :  { %v3963_v57 = vpop.eup %3962  ;;  %3974 = vpow2.f32 %v2146_v48  ;;  %2802 = vmatpush.msra.mxu3 %v2614_v55  ;;  %v1922_v43 = vsub.f32 0.0, %v5505_v53  ;;  %v2644_v40 = vld [vmem:[#allocation6 + $0x258] sm:$0xff]  ;;  %v2453_v47 = vadd.f32 %v2452_v63, %v2358_v49  ;;  %v1923_v29 = vsub.f32 0.0, %v5511_v8  ;;  %2863 = vmatpush.msra.mxu2 %v2661_v37  ;;  %v2659_v63 = vld [vmem:[#allocation6 + $0x2d0] sm:$0xff]  ;;  %v5673_v37 = vld [vmem:[#allocation16_spill] sm:$0xff] }
 0x2b8   :  { %v5499_v15 = vpop.f32.mrf.mxu1  ;;  %v3965_v14 = vpop.eup %3964  ;;  %3976 = vrcp.f32 %v2228_v16  ;;  %2822 = vmatpush.msra.mxu0 %v2630_v32  ;;  %v2378_v21 = vmul.f32 %v3963_v57, %v5395_v12  ;;  %v2660_v4 = vld [vmem:[#allocation6 + $0x2d8] sm:$0xff]  ;;  %v2492_v9 = vadd.f32 %v2491_v61, %v2361_v59  ;;  %v5536_v46 = vadd.f32 %v5489_v24, %v5491_v45  ;;  %2844 = vmatpush.msra.mxu1 %v2644_v40  ;;  %v2611_v12 = vld [vmem:[#allocation6 + $0x150] sm:$0xff]  ;;  %v2626_v57 = vld [vmem:[#allocation6 + $0x1c8] sm:$0xff] }
 0x2b9   :  { %v3967_v1 = vpop.eup %3966  ;;  %v2231_v10 = vadd.f32 1.0, %v3965_v14  ;;  %2803 = vmatpush.msra.mxu3 %v2613_v50  ;;  %3978 = vrcp.f32 %v2220_v3  ;;  %v5669_v48 = vld [vmem:[#allocation14_spill] sm:$0xff]  ;;  %v2466_v26 = vadd.f32 %v2465_v58, %v2359_v56  ;;  %v2454_v60 = vadd.f32 %v2453_v47, %v2368_v51  ;;  %2864 = vmatpush.msra.mxu2 %v2660_v4  ;;  %v5671_v3 = vld [vmem:[#allocation17_spill] sm:$0xff]  ;;  %v2625_v56 = vld [vmem:[#allocation6 + $0x1c0] sm:$0xff] }
 0x2ba   :  { %v5523_v6 = vpop.eup %3968  ;;  %v2229_v39 = vadd.f32 1.0, %v3967_v1  ;;  %2823 = vmatpush.msra.mxu0 %v2629_v42  ;;  %v2371_v62 = vmul.f32 %v5493_v54, %v5669_v48  ;;  %v2369_v7 = vmul.f32 %v5501_v33, %v5670_v23  ;;  %v1932_v54 = vsub.f32 0.0, %v5521_v0  ;;  %2845 = vmatpush.msra.mxu1 %v2643_v13  ;;  %v2642_v61 = vld [vmem:[#allocation6 + $0x248] sm:$0xff]  ;;  %v2609_v1 = vld [vmem:[#allocation6 + $0x140] sm:$0xff]  ;;  %v2607_v13 = vld [vmem:[#allocation6 + $0x130] sm:$0xff] }
 0x2bb   :  { %v3971_v11 = vpop.eup %3970  ;;  %3980 = vrcp.f32 %v2231_v10  ;;  %2804 = vmatpush.msra.mxu3 %v2612_v17  ;;  %v2479_v31 = vadd.f32 %v2478_v41, %v2360_v44  ;;  %v2010_v32 = vmul.f32 1.442695, %v1922_v43  ;;  %v2455_v49 = vadd.f32 %v2454_v60, %v2378_v21  ;;  %2865 = vmatpush.msra.mxu2 %v2659_v63  ;;  %v2658_v59 = vld [vmem:[#allocation6 + $0x2c8] sm:$0xff]  ;;  %v2641_v51 = vld [vmem:[#allocation6 + $0x240] sm:$0xff]  ;;  %v2624_v21 = vld [vmem:[#allocation6 + $0x1b8] sm:$0xff] }
 0x2bc   :  { %v3973_v18 = vpop.eup %3972  ;;  %3982 = vrcp.f32 %v2229_v39  ;;  %2824 = vmatpush.msra.mxu0 %v2628_v5  ;;  %v2381_v16 = vmul.f32 %v3971_v11, %v5671_v3  ;;  %v2012_v58 = vmul.f32 1.442695, %v1923_v29  ;;  %v2493_v41 = vadd.f32 %v2492_v9, %v2371_v62  ;;  %2846 = vmatpush.msra.mxu1 %v2642_v61  ;;  %v2657_v17 = vld [vmem:[#allocation6 + $0x2c0] sm:$0xff]  ;;  %v2640_v29 = vld [vmem:[#allocation6 + $0x238] sm:$0xff]  ;;  %v2622_v3 = vld [vmem:[#allocation6 + $0x1a8] sm:$0xff] }
 0x2bd   :  { %v3975_v35 = vpop.eup %3974  ;;  %2805 = vmatpush.msra.mxu3 %v2611_v12  ;;  %v2379_v14 = vmul.f32 %v3973_v18, %v5672_v20  ;;  %v1933_v42 = vsub.f32 0.0, %v5536_v46  ;;  %v5549_v34 = vadd.f32 %v5499_v15, %v5487_v52  ;;  %v2370_v44 = vmul.f32 %v5523_v6, %v5673_v37  ;;  %2866 = vmatpush.msra.mxu2 %v2658_v59  ;;  %v2608_v6 = vld [vmem:[#allocation6 + $0x138] sm:$0xff]  ;;  %v2637_v59 = vld [vmem:[#allocation6 + $0x220] sm:$0xff] }
 0x2be   :  { %v5528_v38 = vpop.f32.mrf.mxu2  ;;  %v3977_v24 = vpop.eup %3976  ;;  %v2230_v55 = vadd.f32 1.0, %v3975_v35  ;;  %2825 = vmatpush.msra.mxu0 %v2627_v36  ;;  %v5553_v43 = vmul.f32 1.442695, %v1932_v54  ;;  %v2494_v40 = vadd.f32 %v2493_v41, %v2381_v16  ;;  %2847 = vmatpush.msra.mxu1 %v2641_v51  ;;  %v2623_v35 = vld [vmem:[#allocation6 + $0x1b0] sm:$0xff]  ;;  %v2638_v16 = vld [vmem:[#allocation6 + $0x228] sm:$0xff]  ;;  %v2636_v37 = vld [vmem:[#allocation6 + $0x218] sm:$0xff] }
 0x2bf   :  { %v2388_v33 = vmul.f32 %v3977_v24, %v5417_v22  ;;  %2806 = vmatpush.msra.mxu3 %v2610_v30  ;;  %v3979_v50 = vpop.eup %3978  ;;  %v2467_v22 = vadd.f32 %v2466_v26, %v2369_v7  ;;  %v5558_v11 = vadd.f32 %v5528_v38, %v5491_v45  ;;  %2867 = vmatpush.msra.mxu2 %v2657_v17  ;;  %v2032_v12 = vmul.f32 1.442695, %v1933_v42  ;;  %v2639_v26 = vld [vmem:[#allocation6 + $0x230] sm:$0xff]  ;;  %v2606_v24 = vld [vmem:[#allocation6 + $0x128] sm:$0xff] }
 0x2c0   :  { %v5538_v27 = vpop.f32.mrf.mxu1  ;;  %3984 = vrcp.f32 %v2230_v55  ;;  %2826 = vmatpush.msra.mxu0 %v2626_v57  ;;  %v2380_v18 = vmul.f32 %v3979_v50, %v5411_v19  ;;  %v1942_v38 = vsub.f32 0.0, %v5549_v34  ;;  %2848 = vmatpush.msra.mxu1 %v2640_v29  ;;  %v2480_v60 = vadd.f32 %v2479_v31, %v2370_v44  ;;  %v2655_v19 = vld [vmem:[#allocation6 + $0x2b0] sm:$0xff]  ;;  %v2654_v57 = vld [vmem:[#allocation6 + $0x2a8] sm:$0xff] }
 0x2c1   :  { %v3981_v10 = vpop.eup %3980  ;;  %v2456_v39 = vadd.f32 %v2455_v49, %v2388_v33  ;;  %2807 = vmatpush.msra.mxu3 %v2609_v1  ;;  %3986 = vpow2.f32 %v2010_v32  ;;  %v2468_v4 = vadd.f32 %v2467_v22, %v2379_v14  ;;  %v1943_v63 = vsub.f32 0.0, %v5558_v11  ;;  %v2605_v33 = vld [vmem:[#allocation6 + $0x120] sm:$0xff]  ;;  %v2620_v22 = vld [vmem:[#allocation6 + $0x198] sm:$0xff]  ;;  %v2619_v29 = vld [vmem:[#allocation6 + $0x190] sm:$0xff] }
 0x2c2   :  { %v3983_v5 = vpop.eup %3982  ;;  %v2391_v15 = vmul.f32 %v3981_v10, %v5432_v25  ;;  %2827 = vmatpush.msra.mxu0 %v2625_v56  ;;  %v2656_v25 = vld [vmem:[#allocation6 + $0x2b8] sm:$0xff]  ;;  %3988 = vpow2.f32 %v2012_v58  ;;  %2849 = vmatpush.msra.mxu1 %v2639_v26  ;;  %v2481_v55 = vadd.f32 %v2480_v60, %v2380_v18  ;;  %v2050_v20 = vmul.f32 1.442695, %v1942_v38  ;;  %v2621_v58 = vld [vmem:[#allocation6 + $0x1a0] sm:$0xff] }
 0x2c3   :  { %v2457_v9 = vrot.slane %v2456_v39, 4  ;;  %v2389_v48 = vmul.f32 %v3983_v5, %v5436_v2  ;;  %2808 = vmatpush.msra.mxu3 %v2608_v6  ;;  %2868 = vmatpush.msra.mxu2 %v2656_v25  ;;  %v5569_v14 = vadd.f32 %v5538_v27, %v5487_v52  ;;  %3990 = vpow2.f32 %v5553_v43  ;;  %v2604_v27 = vld [vmem:[#allocation6 + $0x118] sm:$0xff] }
 0x2c4   :  { %v2495_v62 = vadd.f32 %v2494_v40, %v2391_v15  ;;  %2828 = vmatpush.msra.mxu0 %v2624_v21  ;;  %2850 = vmatpush.msra.mxu1 %v2638_v16  ;;  %v2052_v56 = vmul.f32 1.442695, %v1943_v63  ;;  %3992 = vpow2.f32 %v2032_v12  ;;  %v2652_v5 = vld [vmem:[#allocation6 + $0x298] sm:$0xff]  ;;  %v2603_v21 = vld [vmem:[#allocation6 + $0x110] sm:$0xff]  ;;  %v2617_v63 = vld [vmem:[#allocation6 + $0x180] sm:$0xff] }
 0x2c5   :  { %v2458_v23 = vadd.f32 %v2457_v9, %v2456_v39  ;;  %v2469_v7 = vadd.f32 %v2468_v4, %v2389_v48  ;;  %2809 = vmatpush.msra.mxu3 %v2607_v13  ;;  %2869 = vmatpush.msra.mxu2 %v2655_v19  ;;  %3994 = vpow2.f32 %v2050_v20  ;;  %v1952_v43 = vsub.f32 0.0, %v5569_v14  ;;  %v2635_v4 = vld [vmem:[#allocation6 + $0x210] sm:$0xff]  ;;  %v2618_v13 = vld [vmem:[#allocation6 + $0x188] sm:$0xff] }
 0x2c6   :  { %v5560_v47 = vpop.f32.mrf.mxu2  ;;  %v3985_v2 = vpop.eup %3984  ;;  %v2496_v54 = vrot.slane %v2495_v62, 4  ;;  %2829 = vmatpush.msra.mxu0 %v2623_v35  ;;  %2851 = vmatpush.msra.mxu1 %v2637_v59  ;;  %3996 = vpow2.f32 %v2052_v56  ;;  %v2634_v35 = vld [vmem:[#allocation6 + $0x208] sm:$0xff] }
 0x2c7   :  { %v2459_v32 = vrot.slane %v2458_v23, 2  ;;  %v2470_v30 = vrot.slane %v2469_v7, 4  ;;  %v2390_v31 = vmul.f32 %v3985_v2, %v5459_v28  ;;  %2810 = vmatpush.msra.mxu3 %v2606_v24  ;;  %v3987_v61 = vpop.eup %3986  ;;  %2870 = vmatpush.msra.mxu2 %v2654_v57  ;;  %v2653_v28 = vld [vmem:[#allocation6 + $0x2a0] sm:$0xff]  ;;  %v5578_v25 = vadd.f32 %v5560_v47, %v5491_v45  ;;  %v2650_v47 = vld [vmem:[#allocation6 + $0x288] sm:$0xff] }
 0x2c8   :  { %v1875_v36 = vpop.f32.mrf.mxu1  ;;  %v2497_v49 = vadd.f32 %v2496_v54, %v2495_v62  ;;  %2830 = vmatpush.msra.mxu0 %v2622_v3  ;;  %v3989_v44 = vpop.eup %3988  ;;  %v2162_v15 = vadd.f32 1.0, %v3987_v61  ;;  %2852 = vmatpush.msra.mxu1 %v2636_v37  ;;  %v2651_v62 = vld [vmem:[#allocation6 + $0x290] sm:$0xff]  ;;  %v2070_v2 = vmul.f32 1.442695, %v1952_v43  ;;  %v2601_v54 = vld [vmem:[#allocation6 + $0x100] sm:$0xff] }
 0x2c9   :  { %v2460_v50 = vadd.f32 %v2459_v32, %v2458_v23  ;;  %v2471_v41 = vadd.f32 %v2470_v30, %v2469_v7  ;;  %v2482_v42 = vadd.f32 %v2481_v55, %v2390_v31  ;;  %v5573_v51 = vadd.f32 %v1875_v36, %v5487_v52  ;;  %2811 = vmatpush.msra.mxu3 %v2605_v33  ;;  %v2602_v36 = vld [vmem:[#allocation6 + $0x108] sm:$0xff]  ;;  %v3991_v19 = vpop.eup %3990  ;;  %v2633_v24 = vld [vmem:[#allocation6 + $0x200] sm:$0xff] }
 0x2ca   :  { %v2498_v1 = vrot.slane %v2497_v49, 2  ;;  %2831 = vmatpush.msra.mxu0 %v2621_v58  ;;  %2871 = vmatpush.msra.mxu2 %v2653_v28  ;;  %v2163_v12 = vadd.f32 1.0, %v3989_v44  ;;  %3998 = vrcp.f32 %v2162_v15  ;;  %v3993_v3 = vpop.eup %3992  ;;  %v1953_v30 = vsub.f32 0.0, %v5578_v25  ;;  %v2649_v31 = vld [vmem:[#allocation6 + $0x280] sm:$0xff] }
 0x2cb   :  { %v2472_v39 = vrot.slane %v2471_v41, 2  ;;  %v2483_v17 = vrot.slane %v2482_v42, 4  ;;  %2812 = vmatpush.msra.mxu3 %v2604_v27  ;;  %v2461_v18 = vrot.slane %v2460_v50, 1  ;;  %v1962_v38 = vsub.f32 0.0, %v5573_v51  ;;  %2853 = vmatpush.msra.mxu1 %v2635_v4  ;;  %v3995_v57 = vpop.eup %3994 }
 0x2cc   :  { %v2499_v40 = vadd.f32 %v2498_v1, %v2497_v49  ;;  %2832 = vmatpush.msra.mxu0 %v2620_v22  ;;  %2872 = vmatpush.msra.mxu2 %v2652_v5  ;;  %4000 = vrcp.f32 %v2163_v12  ;;  %v2172_v27 = vadd.f32 1.0, %v3991_v19  ;;  %v2072_v22 = vmul.f32 1.442695, %v1953_v30 }
 0x2cd   :  { %v2473_v9 = vadd.f32 %v2472_v39, %v2471_v41  ;;  %v2484_v48 = vadd.f32 %v2483_v17, %v2482_v42  ;;  %2813 = vmatpush.msra.mxu3 %v2603_v21  ;;  %v2462_v16 = vadd.f32 %v2461_v18, %v2460_v50  ;;  %2854 = vmatpush.msra.mxu1 %v2634_v35  ;;  %v2090_v61 = vmul.f32 1.442695, %v1962_v38  ;;  %v3997_v41 = vpop.eup %3996 }
 0x2ce   :  { %v1904_v10 = vpop.f32.mrf.mxu2  ;;  %v2500_v26 = vrot.slane %v2499_v40, 1  ;;  %2833 = vmatpush.msra.mxu0 %v2619_v29  ;;  %2873 = vmatpush.msra.mxu2 %v2651_v62  ;;  %4002 = vpow2.f32 %v2070_v2  ;;  %v2395_v29 = vld [vmem:[#allocation2 + $0x1] ss:$2 sm:$0xff]  ;;  %v2173_v62 = vadd.f32 1.0, %v3993_v3  ;;  %v2182_v35 = vadd.f32 1.0, %v3995_v57 }
 0x2cf   :  { %v2474_v60 = vrot.slane %v2473_v9, 1  ;;  %v2485_v23 = vrot.slane %v2484_v48, 2  ;;  %v5582_v7 = vadd.f32 %v1904_v10, %v5491_v45  ;;  %2814 = vmatpush.msra.mxu3 %v2602_v36  ;;  %2855 = vmatpush.msra.mxu1 %v2633_v24  ;;  %v2541_v56 = vrot.slane %v2462_v16, 4  ;;  %v5674_v36 = vld [vmem:[#allocation13_spill] sm:$0xff] }
 0x2d0   :  { %v1877_v6 = vpop.f32.mrf.mxu1  ;;  %2834 = vmatpush.msra.mxu0 %v2618_v13  ;;  %2874 = vmatpush.msra.mxu2 %v2650_v47  ;;  %v2501_v33 = vadd.f32 %v2500_v26, %v2499_v40  ;;  %v5593_v37 = vpop.eup %3998  ;;  %4004 = vpow2.f32 %v2090_v61  ;;  %v2183_v47 = vadd.f32 1.0, %v3997_v41 }
 0x2d1   :  { %v2475_v55 = vadd.f32 %v2474_v60, %v2473_v9  ;;  %v2486_v32 = vadd.f32 %v2485_v23, %v2484_v48  ;;  %v5586_v49 = vadd.f32 %v1877_v6, %v5487_v52  ;;  %2815 = vmatpush.msra.mxu3 %v2601_v54  ;;  %v1963_v50 = vsub.f32 0.0, %v5582_v7 }
 0x2d2   :  { %2835 = vmatpush.msra.mxu0 %v2617_v63  ;;  %2875 = vmatpush.msra.mxu2 %v2649_v31  ;;  %v2544_v5 = vrot.slane %v2501_v33, 1  ;;  %v5600_v6 = vpop.eup %4000 }
 0x2d3   :  { %v2542_v58 = vrot.slane %v2475_v55, 3  ;;  %v2487_v59 = vrot.slane %v2486_v32, 1  ;;  %v1972_v42 = vsub.f32 0.0, %v5586_v49  ;;  %v2092_v43 = vmul.f32 1.442695, %v1963_v50 }
 0x2d4   :  { %v4003_v9 = vpop.eup %4002 }
 0x2d5   :  { %v2488_v10 = vadd.f32 %v2487_v59, %v2486_v32  ;;  %v2110_v44 = vmul.f32 1.442695, %v1972_v42  ;;  %v2549_v40 = vsel %vm1300_vm5, %v2541_v56, %v2542_v58  ;;  %v2192_v2 = vadd.f32 1.0, %v4003_v9 }
 0x2d6   :  { %v1906_v20 = vpop.f32.mrf.mxu2  ;;  %v4005_v60 = vpop.eup %4004 }
 0x2d7   :  { %v5591_v28 = vadd.f32 %v1906_v20, %v5491_v45  ;;  %v2543_v15 = vrot.slane %v2488_v10, 2  ;;  %4006 = vpow2.f32 %v2110_v44  ;;  %v2202_v16 = vadd.f32 1.0, %v4005_v60 }
 0x2d8   :  { %v1880_v1 = vpop.f32.mrf.mxu1  ;;  %4008 = vpow2.f32 %v2072_v22 }
 0x2d9   :  { %v1973_v39 = vsub.f32 0.0, %v5591_v28  ;;  %v5597_v17 = vadd.f32 %v1880_v1, %v5487_v52  ;;  %v2550_v4 = vsel %vm1302_vm6, %v2543_v15, %v2544_v5  ;;  %4010 = vrcp.f32 %v2172_v27 }
 0x2da   :  { %v2551_v48 = vsel %vm1304_vm7, %v2549_v40, %v2550_v4  ;;  %4012 = vpow2.f32 %v2092_v43 }
 0x2db   :  { %v1982_v21 = vsub.f32 0.0, %v5597_v17  ;;  %v2112_v18 = vmul.f32 1.442695, %v1973_v39  ;;  %v2552_v13 = vsel %vm1306_vm8, %v5674_v36, %v2551_v48 }
 0x2dc   :  { %v2556_v23 = vadd.f32 %v2552_v13, %v2395_v29 }
 0x2dd   :  { %v2130_v12 = vmul.f32 1.442695, %v1982_v21  ;;  %v4007_v24 = vpop.eup %4006  ;;  %v2322_v21 = vmul.f32 %v5593_v37, %v5505_v53  ;;  %v2323_v37 = vmul.f32 %v5600_v6, %v5511_v8  ;;  %v2679_v6 = vld [vmem:[#allocation6 + $0x370] sm:$0xff] }
 0x2de   :  { %v1909_v38 = vpop.f32.mrf.mxu2  ;;  %2558 = vst [vmem:[#allocation2 + $0x1] ss:$2 sm:$0xff] %v2556_v23  ;;  %v4009_v3 = vpop.eup %4008  ;;  %v2212_v57 = vadd.f32 1.0, %v4007_v24 }
 0x2df   :  { %v5608_v26 = vadd.f32 %v1909_v38, %v5491_v45  ;;  %4014 = vpow2.f32 %v2130_v12  ;;  %v4011_v30 = vpop.eup %4010  ;;  %v2193_v33 = vadd.f32 1.0, %v4009_v3 }
 0x2e0   :  { %v1882_v19 = vpop.f32.mrf.mxu1  ;;  %4016 = vpow2.f32 %v2112_v18  ;;  %v4013_v31 = vpop.eup %4012  ;;  %v2332_v56 = vmul.f32 %v4011_v30, %v5521_v0 }
 0x2e1   :  { %v1983_v54 = vsub.f32 0.0, %v5608_v26  ;;  %v5612_v63 = vadd.f32 %v1882_v19, %v5487_v52  ;;  %4018 = vrcp.f32 %v2173_v62  ;;  %v2203_v42 = vadd.f32 1.0, %v4013_v31  ;;  %v2696_v19 = vld [vmem:[#allocation6 + $0x3f8] sm:$0xff]  ;;  %v2695_v31 = vld [vmem:[#allocation6 + $0x3f0] sm:$0xff] }
 0x2e2   :  { %4020 = vrcp.f32 %v2182_v35  ;;  %v2502_v9 = vadd.f32 %v2332_v56, %v2322_v21  ;;  %v2727_v56 = vld [vmem:[#allocation6 + $0x4f0] sm:$0xff] }
 0x2e3   :  { %v2132_v55 = vmul.f32 1.442695, %v1983_v54  ;;  %v1992_v32 = vsub.f32 0.0, %v5612_v63  ;;  %4022 = vrcp.f32 %v2183_v47  ;;  %v2680_v47 = vld [vmem:[#allocation6 + $0x378] sm:$0xff]  ;;  %v2675_v21 = vld [vmem:[#allocation6 + $0x350] sm:$0xff] }
 0x2e4   :  { %4024 = vrcp.f32 %v2192_v2 }
 0x2e5   :  { %v2150_v61 = vmul.f32 1.442695, %v1992_v32  ;;  %v4015_v20 = vpop.eup %4014  ;;  %4026 = vpow2.f32 %v2132_v55  ;;  %v2563_v27 = vld [vmem:[#allocation2] sm:$0xff]  ;;  %v2564_v22 = vld [vmem:[#allocation2 + $0x8] sm:$0xff] }
 0x2e6   :  { %v1911_v52 = vpop.f32.mrf.mxu2  ;;  %v4017_v58 = vpop.eup %4016  ;;  %4028 = vrcp.f32 %v2202_v16  ;;  %v2222_v59 = vadd.f32 1.0, %v4015_v20  ;;  %v2566_v5 = vmul.f32 0.015625, %v2563_v27  ;;  %v2567_v40 = vmul.f32 0.015625, %v2564_v22  ;;  %v2693_v22 = vld [vmem:[#allocation6 + $0x3e0] sm:$0xff] }
 0x2e7   :  { %v5616_v50 = vadd.f32 %v1911_v52, %v5491_v45  ;;  %v4019_v41 = vpop.eup %4018  ;;  %4030 = vpow2.f32 %v2150_v61  ;;  %v2213_v39 = vadd.f32 1.0, %v4017_v58  ;;  %v2678_v61 = vld [vmem:[#allocation6 + $0x368] sm:$0xff]  ;;  %v2712_v58 = vld [vmem:[#allocation6 + $0x478] sm:$0xff] }
 0x2e8   :  { %v4021_v1 = vpop.eup %4020  ;;  %4032 = vrcp.f32 %v2212_v57  ;;  %2736 = vst [vmem:[#allocation1] ss:$4 sm:$0xff] %v2566_v5  ;;  %v2333_v12 = vmul.f32 %v4019_v41, %v5536_v46  ;;  %v2694_v52 = vld [vmem:[#allocation6 + $0x3e8] sm:$0xff]  ;;  %2920 = vmatpush.msrb.mxu1 %v2712_v58  ;;  %v2667_v58 = vld [vmem:[#allocation6 + $0x310] sm:$0xff] }
 0x2e9   :  { %v1993_v10 = vsub.f32 0.0, %v5616_v50  ;;  %v4023_v44 = vpop.eup %4022  ;;  %4034 = vrcp.f32 %v2193_v33  ;;  %v2342_v29 = vmul.f32 %v4021_v1, %v5549_v34  ;;  %2738 = vst [vmem:[#allocation1 + $0x20] ss:$4 sm:$0xff] %v2567_v40  ;;  %v2711_v1 = vld [vmem:[#allocation6 + $0x470] sm:$0xff]  ;;  %v2692_v40 = vld [vmem:[#allocation6 + $0x3d8] sm:$0xff] }
 0x2ea   :  { %v4025_v15 = vpop.eup %4024  ;;  %4036 = vrcp.f32 %v2222_v59  ;;  %v2343_v35 = vmul.f32 %v4023_v44, %v5558_v11  ;;  %v2515_v2 = vadd.f32 %v2333_v12, %v2323_v37  ;;  %v2728_v59 = vld [vmem:[#allocation6 + $0x4f8] sm:$0xff]  ;;  %2921 = vmatpush.msrb.mxu1 %v2711_v1  ;;  %v2689_v37 = vld [vmem:[#allocation6 + $0x3c0] sm:$0xff]  ;;  %v2683_v1 = vld [vmem:[#allocation6 + $0x390] sm:$0xff] }
 0x2eb   :  { %v2152_v45 = vmul.f32 1.442695, %v1993_v10  ;;  %v4027_v43 = vpop.eup %4026  ;;  %4038 = vrcp.f32 %v2203_v42  ;;  %v2352_v48 = vmul.f32 %v4025_v15, %v5569_v14  ;;  %v2503_v13 = vadd.f32 %v2502_v9, %v2342_v29  ;;  %v2677_v42 = vld [vmem:[#allocation6 + $0x360] sm:$0xff]  ;;  %2940 = vmatpush.msrb.mxu2 %v2728_v59  ;;  %v2718_v59 = vld [vmem:[#allocation6 + $0x4a8] sm:$0xff] }
 0x2ec   :  { %v4029_v0 = vpop.eup %4028  ;;  %v2223_v4 = vadd.f32 1.0, %v4027_v43  ;;  %v2516_v32 = vadd.f32 %v2515_v2, %v2343_v35  ;;  %v2707_v35 = vld [vmem:[#allocation6 + $0x450] sm:$0xff]  ;;  %v2722_v2 = vld [vmem:[#allocation6 + $0x4c8] sm:$0xff] }
 0x2ed   :  { %4040 = vpow2.f32 %v2152_v45  ;;  %v4031_v18 = vpop.eup %4030  ;;  %v2362_v53 = vmul.f32 %v4029_v0, %v5573_v51  ;;  %v2504_v23 = vadd.f32 %v2503_v13, %v2352_v48  ;;  %2941 = vmatpush.msrb.mxu2 %v2727_v56  ;;  %v2674_v48 = vld [vmem:[#allocation6 + $0x348] sm:$0xff]  ;;  %v2673_v13 = vld [vmem:[#allocation6 + $0x340] sm:$0xff] }
 0x2ee   :  { %4042 = vrcp.f32 %v2213_v39  ;;  %v4033_v62 = vpop.eup %4032  ;;  %v2232_v38 = vadd.f32 1.0, %v4031_v18  ;;  %v2709_v18 = vld [vmem:[#allocation6 + $0x460] sm:$0xff] }
 0x2ef   :  { %v4035_v36 = vpop.eup %4034  ;;  %4044 = vrcp.f32 %v2223_v4  ;;  %v2372_v14 = vmul.f32 %v4033_v62, %v5586_v49  ;;  %v2739_v24 = vld.sshfl [vmem:[#allocation1] sm:$0xff pattern:$0x73625140]  ;;  %v2740_v51 = vld.sshfl [vmem:[#allocation1 + $0x8] sm:$0xff pattern:$0x73625140]  ;;  %v2505_v16 = vadd.f32 %v2504_v23, %v2362_v53 }
 0x2f0   :  { %v4037_v34 = vpop.eup %4036  ;;  %4046 = vrcp.f32 %v2232_v38  ;;  %v2353_v54 = vmul.f32 %v4035_v36, %v5578_v25  ;;  %2776 = vmatmul.f32.vlgmr.msrb.gmra.mxu3 %v2739_v24  ;;  %2796 = vmatmul.f32.vlgmr.msrb.gmra.mxu0 %v2740_v51  ;;  %v2743_v11 = vld.sshfl [vmem:[#allocation1 + $0x20] sm:$0xff pattern:$0x73625140]  ;;  %v2744_v30 = vld.sshfl [vmem:[#allocation1 + $0x28] sm:$0xff pattern:$0x73625140] }
 0x2f1   :  { %v4039_v60 = vpop.eup %4038  ;;  %v2382_v55 = vmul.f32 %v4037_v34, %v5597_v17  ;;  %2856 = vmatmul.f32.vlgmr.msra.gmra.mxu1 %v2743_v11  ;;  %2880 = vmatpush.msrb.mxu3 %v2680_v47  ;;  %v2506_v25 = vadd.f32 %v2505_v16, %v2372_v14  ;;  %v2741_v5 = vld.sshfl [vmem:[#allocation1 + $0x10] sm:$0xff pattern:$0x73625140]  ;;  %v2742_v43 = vld.sshfl [vmem:[#allocation1 + $0x18] sm:$0xff pattern:$0x73625140] }
 0x2f2   :  { %v2363_v49 = vmul.f32 %v4039_v60, %v5582_v7  ;;  %2876 = vmatmul.f32.vlgmr.msra.gmra.mxu2 %v2744_v30  ;;  %2900 = vmatpush.msrb.mxu0 %v2696_v19  ;;  %v2517_v17 = vadd.f32 %v2516_v32, %v2353_v54  ;;  %v2691_v4 = vld [vmem:[#allocation6 + $0x3d0] sm:$0xff]  ;;  %v2725_v62 = vld [vmem:[#allocation6 + $0x4e0] sm:$0xff]  ;;  %v2690_v38 = vld [vmem:[#allocation6 + $0x3c8] sm:$0xff] }
 0x2f3   :  { %v4041_v46 = vpop.eup %4040  ;;  %2881 = vmatpush.msrb.mxu3 %v2679_v6  ;;  %v2507_v41 = vadd.f32 %v2506_v25, %v2382_v55  ;;  %v2708_v36 = vld [vmem:[#allocation6 + $0x458] sm:$0xff]  ;;  %v2723_v23 = vld [vmem:[#allocation6 + $0x4d0] sm:$0xff]  ;;  %v2706_v19 = vld [vmem:[#allocation6 + $0x448] sm:$0xff] }
 0x2f4   :  { %v4043_v3 = vpop.eup %4042  ;;  %v2233_v8 = vadd.f32 1.0, %v4041_v46  ;;  %2901 = vmatpush.msrb.mxu0 %v2695_v31  ;;  %v2518_v10 = vadd.f32 %v2517_v17, %v2363_v49  ;;  %v2724_v53 = vld [vmem:[#allocation6 + $0x4d8] sm:$0xff]  ;;  %v2671_v46 = vld [vmem:[#allocation6 + $0x330] sm:$0xff]  ;;  %v2670_v16 = vld [vmem:[#allocation6 + $0x328] sm:$0xff] }
 0x2f5   :  { %v4045_v57 = vpop.eup %4044  ;;  %v2373_v33 = vmul.f32 %v4043_v3, %v5591_v28  ;;  %2882 = vmatpush.msrb.mxu3 %v2678_v61  ;;  %v2676_v28 = vld [vmem:[#allocation6 + $0x358] sm:$0xff]  ;;  %v2687_v51 = vld [vmem:[#allocation6 + $0x3b0] sm:$0xff]  ;;  %v2705_v3 = vld [vmem:[#allocation6 + $0x440] sm:$0xff] }
 0x2f6   :  { %4048 = vrcp.f32 %v2233_v8  ;;  %v4047_v20 = vpop.eup %4046  ;;  %v2383_v27 = vmul.f32 %v4045_v57, %v5608_v26  ;;  %2902 = vmatpush.msrb.mxu0 %v2694_v52  ;;  %v2726_v26 = vld [vmem:[#allocation6 + $0x4e8] sm:$0xff]  ;;  %v2672_v60 = vld [vmem:[#allocation6 + $0x338] sm:$0xff]  ;;  %v2721_v55 = vld [vmem:[#allocation6 + $0x4c0] sm:$0xff] }
 0x2f7   :  { %v2392_v7 = vmul.f32 %v4047_v20, %v5612_v63  ;;  %v2519_v39 = vadd.f32 %v2518_v10, %v2373_v33  ;;  %2883 = vmatpush.msrb.mxu3 %v2677_v42  ;;  %v2710_v63 = vld [vmem:[#allocation6 + $0x468] sm:$0xff]  ;;  %2942 = vmatpush.msrb.mxu2 %v2726_v26  ;;  %v2688_v47 = vld [vmem:[#allocation6 + $0x3b8] sm:$0xff]  ;;  %v2669_v32 = vld [vmem:[#allocation6 + $0x320] sm:$0xff] }
 0x2f8   :  { %2903 = vmatpush.msrb.mxu0 %v2693_v22  ;;  %2816 = vmatmul.f32.vlgmr.msra.gmra.mxu3 %v2741_v5  ;;  %v2686_v11 = vld [vmem:[#allocation6 + $0x3a8] sm:$0xff]  ;;  %v2704_v6 = vld [vmem:[#allocation6 + $0x438] sm:$0xff]  ;;  %v2685_v57 = vld [vmem:[#allocation6 + $0x3a0] sm:$0xff] }
 0x2f9   :  { %v2508_v44 = vadd.f32 %v2507_v41, %v2392_v7  ;;  %v2520_v29 = vadd.f32 %v2519_v39, %v2383_v27  ;;  %2836 = vmatmul.f32.vlgmr.msra.gmra.mxu0 %v2742_v43  ;;  %2884 = vmatpush.msrb.mxu3 %v2676_v28  ;;  %v2720_v49 = vld [vmem:[#allocation6 + $0x4b8] sm:$0xff]  ;;  %v2703_v25 = vld [vmem:[#allocation6 + $0x430] sm:$0xff]  ;;  %v2702_v52 = vld [vmem:[#allocation6 + $0x428] sm:$0xff] }
 0x2fa   :  { %2904 = vmatpush.msrb.mxu0 %v2692_v40  ;;  %2922 = vmatpush.msrb.mxu1 %v2710_v63  ;;  %v2668_v61 = vld [vmem:[#allocation6 + $0x318] sm:$0xff]  ;;  %v2719_v20 = vld [vmem:[#allocation6 + $0x4b0] sm:$0xff]  ;;  %v2701_v56 = vld [vmem:[#allocation6 + $0x420] sm:$0xff] }
 0x2fb   :  { %v2509_v45 = vrot.slane %v2508_v44, 4  ;;  %2885 = vmatpush.msrb.mxu3 %v2675_v21  ;;  %2943 = vmatpush.msrb.mxu2 %v2725_v62  ;;  %v2684_v33 = vld [vmem:[#allocation6 + $0x398] sm:$0xff]  ;;  %v2666_v10 = vld [vmem:[#allocation6 + $0x308] sm:$0xff]  ;;  %v2717_v27 = vld [vmem:[#allocation6 + $0x4a0] sm:$0xff] }
 0x2fc   :  { %v4049_v15 = vpop.eup %4048  ;;  %2905 = vmatpush.msrb.mxu0 %v2691_v4  ;;  %2923 = vmatpush.msrb.mxu1 %v2709_v18  ;;  %v2397_v7 = vld [vmem:[#allocation2 + $0x11] ss:$2 sm:$0x3]  ;;  %v2665_v5 = vld [vmem:[#allocation6 + $0x300] sm:$0xff]  ;;  %v2715_v21 = vld [vmem:[#allocation6 + $0x490] sm:$0xff] }
 0x2fd   :  { %v2393_v0 = vmul.f32 %v4049_v15, %v5616_v50  ;;  %v2510_v9 = vadd.f32 %v2509_v45, %v2508_v44  ;;  %2886 = vmatpush.msrb.mxu3 %v2674_v48  ;;  %2944 = vmatpush.msrb.mxu2 %v2724_v53  ;;  %v2682_v44 = vld [vmem:[#allocation6 + $0x388] sm:$0xff]  ;;  %v2700_v28 = vld [vmem:[#allocation6 + $0x418] sm:$0xff]  ;;  %v2681_v63 = vld [vmem:[#allocation6 + $0x380] sm:$0xff] }
 0x2fe   :  { %2906 = vmatpush.msrb.mxu0 %v2690_v38  ;;  %2924 = vmatpush.msrb.mxu1 %v2708_v36  ;;  %v2716_v40 = vld [vmem:[#allocation6 + $0x498] sm:$0xff]  ;;  %v2699_v45 = vld [vmem:[#allocation6 + $0x410] sm:$0xff]  ;;  %v2697_v4 = vld [vmem:[#allocation6 + $0x400] sm:$0xff] }
 0x2ff   :  { %v2521_v12 = vadd.f32 %v2520_v29, %v2393_v0  ;;  %v2511_v34 = vrot.slane %v2510_v9, 2  ;;  %2887 = vmatpush.msrb.mxu3 %v2673_v13  ;;  %2945 = vmatpush.msrb.mxu2 %v2723_v23  ;;  %v2745_v43 = vld.sshfl [vmem:[#allocation1 + $0x30] sm:$0xff pattern:$0x73625140]  ;;  %v2698_v29 = vld [vmem:[#allocation6 + $0x408] sm:$0xff]  ;;  %v2713_v18 = vld [vmem:[#allocation6 + $0x480] sm:$0xff] }
 0x300   :  { %2907 = vmatpush.msrb.mxu0 %v2689_v37  ;;  %2925 = vmatpush.msrb.mxu1 %v2707_v35  ;;  %v2746_v26 = vld.sshfl [vmem:[#allocation1 + $0x38] sm:$0xff pattern:$0x73625140]  ;;  %v2714_v0 = vld [vmem:[#allocation6 + $0x488] sm:$0xff]  ;;  %v3345_v36 = vld [vmem:[%s5652_s6] ss:$0 sm:$0xff] }
 0x301   :  { %v2522_v50 = vrot.slane %v2521_v12, 4  ;;  %v2512_v54 = vadd.f32 %v2511_v34, %v2510_v9  ;;  %2888 = vmatpush.msrb.mxu3 %v2672_v60  ;;  %2946 = vmatpush.msrb.mxu2 %v2722_v2 }
 0x302   :  { %2908 = vmatpush.msrb.mxu0 %v2688_v47  ;;  %2926 = vmatpush.msrb.mxu1 %v2706_v19 }
 0x303   :  { %v2523_v14 = vadd.f32 %v2522_v50, %v2521_v12  ;;  %2889 = vmatpush.msrb.mxu3 %v2671_v46  ;;  %v2513_v30 = vrot.slane %v2512_v54, 1  ;;  %2947 = vmatpush.msrb.mxu2 %v2721_v55 }
 0x304   :  { %2909 = vmatpush.msrb.mxu0 %v2687_v51  ;;  %2927 = vmatpush.msrb.mxu1 %v2705_v3 }
 0x305   :  { %v2524_v24 = vrot.slane %v2523_v14, 2  ;;  %2890 = vmatpush.msrb.mxu3 %v2670_v16  ;;  %2948 = vmatpush.msrb.mxu2 %v2720_v49  ;;  %v2514_v41 = vadd.f32 %v2513_v30, %v2512_v54 }
 0x306   :  { %2910 = vmatpush.msrb.mxu0 %v2686_v11  ;;  %2928 = vmatpush.msrb.mxu1 %v2704_v6 }
 0x307   :  { %v2525_v8 = vadd.f32 %v2524_v24, %v2523_v14  ;;  %2891 = vmatpush.msrb.mxu3 %v2669_v32  ;;  %2949 = vmatpush.msrb.mxu2 %v2719_v20 }
 0x308   :  { %2911 = vmatpush.msrb.mxu0 %v2685_v57  ;;  %2929 = vmatpush.msrb.mxu1 %v2703_v25 }
 0x309   :  { %v2526_v31 = vrot.slane %v2525_v8, 1  ;;  %2892 = vmatpush.msrb.mxu3 %v2668_v61  ;;  %2950 = vmatpush.msrb.mxu2 %v2718_v59 }
 0x30a   :  { %2912 = vmatpush.msrb.mxu0 %v2684_v33  ;;  %2930 = vmatpush.msrb.mxu1 %v2702_v52 }
 0x30b   :  { %v2527_v17 = vadd.f32 %v2526_v31, %v2525_v8  ;;  %2893 = vmatpush.msrb.mxu3 %v2667_v58  ;;  %2951 = vmatpush.msrb.mxu2 %v2717_v27 }
 0x30c   :  { %2913 = vmatpush.msrb.mxu0 %v2683_v1  ;;  %2931 = vmatpush.msrb.mxu1 %v2701_v56 }
 0x30d   :  { %v2545_v42 = vrot.slane %v2527_v17, 7  ;;  %2894 = vmatpush.msrb.mxu3 %v2666_v10  ;;  %2952 = vmatpush.msrb.mxu2 %v2716_v40 }
 0x30e   :  { %2914 = vmatpush.msrb.mxu0 %v2682_v44  ;;  %2932 = vmatpush.msrb.mxu1 %v2700_v28 }
 0x30f   :  { %v2553_v22 = vsel %vm1295_vm3, %v2514_v41, %v2545_v42  ;;  %2895 = vmatpush.msrb.mxu3 %v2665_v5  ;;  %2953 = vmatpush.msrb.mxu2 %v2715_v21 }
 0x310   :  { %v2557_v39 = vadd.f32 %v2553_v22, %v2397_v7  ;;  %2915 = vmatpush.msrb.mxu0 %v2681_v63  ;;  %2896 = vmatmul.f32.vlgmr.msrb.gmra.mxu3 %v2745_v43 }
 0x311   :  { %2916 = vmatmul.f32.vlgmr.msrb.gmra.mxu0 %v2746_v26  ;;  %2933 = vmatpush.msrb.mxu1 %v2699_v45 }
 0x312   :  { %2559 = vst.msk [vmem:[#allocation2 + $0x11] ss:$2 sm:$0x3] %vm5073_vm9, %v2557_v39  ;;  %2954 = vmatpush.msrb.mxu2 %v2714_v0 }
 0x313   :  { %2934 = vmatpush.msrb.mxu1 %v2698_v29 }
 0x314   :  { %2955 = vmatpush.msrb.mxu2 %v2713_v18 }
 0x315   :  { %2935 = vmatpush.msrb.mxu1 %v2697_v4 }
 0x319   :  { %v2565_v9 = vld [vmem:[#allocation2 + $0x10] sm:$0xf] }
 0x31a   :  { %v2568_v48 = vmul.f32 0.015625, %v2565_v9 }
 0x31c   :  { %2747 = vst [vmem:[#allocation1] ss:$4 sm:$0xff] %v2568_v48 }
 0x323   :  { %v2748_v62 = vld.sshfl [vmem:[#allocation1] sm:$0xff pattern:$0x73625140]  ;;  %v2749_v12 = vld.sshfl [vmem:[#allocation1 + $0x8] sm:$0xff pattern:$0x73625140] }
 0x324   :  { %2936 = vmatmul.f32.vlgmr.msrb.gmra.mxu1 %v2748_v62  ;;  %2956 = vmatmul.f32.vlgmr.msrb.gmra.mxu2 %v2749_v12 }
 0x36d   :  { %v2797_v13 = vpop.f32.mrf.mxu0 }
 0x36e   :  { %v2857_v23 = vpop.f32.mrf.mxu1 }
 0x373   :  { %v2777_v38 = vpop.f32.mrf.mxu3 }
 0x374   :  { %v2778_v53 = vadd.f32 %v3345_v36, %v2777_v38 }
 0x375   :  { %v2877_v47 = vpop.f32.mrf.mxu2 }
 0x376   :  { %v2798_v50 = vadd.f32 %v2797_v13, %v2778_v53  ;;  %v2837_v35 = vpop.f32.mrf.mxu0 }
 0x37b   :  { %v2817_v34 = vpop.f32.mrf.mxu3 }
 0x37c   :  { %v2818_v37 = vadd.f32 %v2817_v34, %v2798_v50 }
 0x37e   :  { %v2838_v60 = vadd.f32 %v2837_v35, %v2818_v37 }
 0x380   :  { %v2858_v14 = vadd.f32 %v2857_v23, %v2838_v60 }
 0x382   :  { %v2878_v46 = vadd.f32 %v2877_v47, %v2858_v14 }
 0x38e   :  { %v2917_v54 = vpop.f32.mrf.mxu0 }
 0x393   :  { %v2897_v19 = vpop.f32.mrf.mxu3 }
 0x394   :  { %v2898_v2 = vadd.f32 %v2897_v19, %v2878_v46 }
 0x396   :  { %v2918_v51 = vadd.f32 %v2917_v54, %v2898_v2 }
 0x3a1   :  { %v2937_v24 = vpop.f32.mrf.mxu1 }
 0x3a2   :  { %v2938_v3 = vadd.f32 %v2937_v24, %v2918_v51 }
 0x3a7   :  { %v2957_v16 = vpop.f32.mrf.mxu2 }
 0x3a8   :  { %v2958_v55 = vadd.f32 %v2957_v16, %v2938_v3 }
 0x3aa   :  { %2960 = vst [vmem:[#allocation8] sm:$0x3] %v2958_v55 }
 0x3ab   :  { %2971 = dma.vmem_to_hbm [thread:$0]  %s2967_s29, 32, %s2969_s8, [#allocation5]  }
 0x3ac   :  { %4127 = dma.done.wait [#allocation5], 32  }
 0x3ad   :  { %4128 = vsyncadd [#allocation5], 4294967264 }
 0x3ae   :  { %2976 = vsyncpa [#allocation4], 1 }
 0x3af   :  { %2977 = vsyncpa [#allocation7], 1 }
 0x3b0   :  { %2978 = vsyncpa [#allocation5], 1 }

</bundles_post_ra>
